<compile_context>
chip_gen: v5e
topology: v5e:2x2
jax: 0.10.0
libtpu: 0.0.40
codegen_flags: <defaults>
</compile_context>

<pallas_src>
import math
from functools import lru_cache, partial

import jax
import jax.numpy as jnp
from jax.experimental import pallas as pl
from jax.experimental.pallas import tpu as pltpu


# ----------------------------- small helpers --------------------------------

def round_up(x, m):
    return ((x + m - 1) // m) * m


def pick_tc(cout, k):
    """Cout tile: full when small, else largest 128-multiple divisor whose bf16
    weight block (K x TC) stays <= ~3 MiB (safe on every generation)."""
    if cout <= 256:
        return cout
    for tc in (512, 256, 128):
        if cout % tc == 0 and k * tc * 2 <= (3 << 20):
            return tc
    return 128


class KeyGen:
    def __init__(self, key):
        self.key = key

    def __call__(self):
        self.key, k = jax.random.split(self.key)
        return k


# ------------------ fused conv(matmul) + FRN (+ReLU / +residual) -------------

@lru_cache(maxsize=None)
def _build_conv_frn(N, P, K, Cout, TC, relu, has_res, post_add_relu):
    """One fused kernel per (shape, fusion) signature.

    Per grid step (i, n):
        acc(P, TC)  = patches[n](P, K) @ w(K, TC)           bf16 MXU, f32 acc
        nu2(1, TC)  = mean_p acc^2                          (FRN statistic over H*W)
        y           = max(gamma * acc * rsqrt(nu2+eps) + beta, tau)   [+ReLU]
        y           = y + residual[n]   [+ReLU]             (bottleneck tail)
    Batch is the innermost grid axis, so the weight / frn blocks keep the same
    block index across n and Pallas skips their re-DMA.
    """

    def kernel(x_ref, w_ref, frn_ref, *rest):
        if has_res:
            res_ref, o_ref = rest
        else:
            (o_ref,) = rest
            res_ref = None

        acc = jnp.dot(x_ref[...], w_ref[...],
                      preferred_element_type=jnp.float32)          # (P, TC) f32
        # FilterResponseNorm: nu2 = per-(n, c) mean of squares over H*W.
        nu2 = jnp.mean(acc * acc, axis=0, keepdims=True)           # (1, TC)
        y = acc * jax.lax.rsqrt(nu2 + 1e-6)                        # eps = |1e-6|
        y = jnp.maximum(frn_ref[0:1, :] * y + frn_ref[1:2, :], frn_ref[2:3, :])
        if relu:
            y = jnp.maximum(y, 0.0)
        if has_res:
            y = y + res_ref[...].astype(jnp.float32)
            if post_add_relu:
                y = jnp.maximum(y, 0.0)
        o_ref[...] = y.astype(o_ref.dtype)

    in_specs = [
        pl.BlockSpec((None, P, K), lambda i, n: (n, 0, 0)),   # patches (bf16)
        pl.BlockSpec((K, TC), lambda i, n: (0, i)),           # weights (bf16), n-indep
        pl.BlockSpec((3, TC), lambda i, n: (0, i)),           # packed gamma/beta/tau
    ]
    if has_res:
        in_specs.append(pl.BlockSpec((None, P, TC), lambda i, n: (n, 0, i)))

    return pl.pallas_call(
        kernel,
        out_shape=jax.ShapeDtypeStruct((N, P, Cout), jnp.bfloat16),
        grid=(Cout // TC, N),                                 # batch innermost
        in_specs=in_specs,
        out_specs=pl.BlockSpec((None, P, TC), lambda i, n: (n, 0, i)),
        compiler_params=pltpu.CompilerParams(
            dimension_semantics=("parallel", "parallel")),
    )


@partial(jax.jit, static_argnames=("kh", "kw", "stride", "padding", "H", "W",
                                   "relu", "post_add_relu"))
def _conv_frn_jit(x, w, frn, residual, *, kh, kw, stride, padding, H, W,
                  relu, post_add_relu):
    """x: (N, H*W, Cin) bf16 channels-last.  w: (Kpad, Cout) bf16 (pre-padded).
    frn: (3, Cout) f32.  residual: (N, Ho*Wo, Cout) bf16 or None."""
    N, P, Cin = x.shape
    Kp, Cout = w.shape
    Ho = (H + 2 * padding - kh) // stride + 1
    Wo = (W + 2 * padding - kw) // stride + 1
    Po = Ho * Wo

    if kh == 1 and kw == 1:
        if stride == 1:
            patches = x
        else:
            patches = x.reshape(N, H, W, Cin)[:, ::stride, ::stride, :]
            patches = patches.reshape(N, Po, Cin)
        K0 = Cin
    else:
        # TODO(synk): fuse this tap gather into the kernel (shifted slices of the
        # padded plane) to remove the im2col patch materialization in HBM.
        xs = x.reshape(N, H, W, Cin)
        xp = jnp.pad(xs, ((0, 0), (padding, padding), (padding, padding), (0, 0)))
        taps = [xp[:, di:di + (Ho - 1) * stride + 1:stride,
                      dj:dj + (Wo - 1) * stride + 1:stride, :]
                for di in range(kh) for dj in range(kw)]
        patches = jnp.stack(taps, axis=3).reshape(N, Po, kh * kw * Cin)
        K0 = kh * kw * Cin

    if Kp != K0:                              # zero-pad K to the 128-multiple of w
        patches = jnp.pad(patches, ((0, 0), (0, 0), (0, Kp - K0)))

    TC = pick_tc(Cout, Kp)
    call = _build_conv_frn(N, Po, Kp, Cout, TC, bool(relu),
                           residual is not None, bool(post_add_relu))
    args = [patches, w, frn]
    if residual is not None:
        args.append(residual)
    return call(*args)


def conv_frn(x, H, W, conv, frn, residual=None, *, stride=1, padding=0,
             relu=False, post_add_relu=False):
    out = _conv_frn_jit(x, conv['w'], frn, residual,
                        kh=conv['kh'], kw=conv['kw'], stride=stride,
                        padding=padding, H=H, W=W, relu=relu,
                        post_add_relu=post_add_relu)
    Ho = (H + 2 * padding - conv['kh']) // stride + 1
    Wo = (W + 2 * padding - conv['kw']) // stride + 1
    return out, Ho, Wo


# ------------------------------- maxpool kernel ------------------------------

@lru_cache(maxsize=None)
def _build_max9(R, L, TR):
    def kernel(*refs):
        o_ref = refs[9]
        y = refs[0][...]
        for r in refs[1:9]:
            y = jnp.maximum(y, r[...])
        o_ref[...] = y

    return pl.pallas_call(
        kernel,
        out_shape=jax.ShapeDtypeStruct((R, L), jnp.bfloat16),
        grid=(R // TR,),
        in_specs=[pl.BlockSpec((TR, L), lambda i: (i, 0)) for _ in range(9)],
        out_specs=pl.BlockSpec((TR, L), lambda i: (i, 0)),
        compiler_params=pltpu.CompilerParams(dimension_semantics=("parallel",)),
    )


@partial(jax.jit, static_argnames=("H", "W"))
def _maxpool_jit(x, *, H, W):
    # x: (N, H*W, C) bf16 -> (N, Ho*Wo, C) bf16, 3x3 window, stride 2, padding 1.
    N, _, C = x.shape
    Ho = (H + 2 - 3) // 2 + 1
    Wo = (W + 2 - 3) // 2 + 1
    xs = x.reshape(N, H, W, C)
    xp = jnp.pad(xs, ((0, 0), (1, 1), (1, 1), (0, 0)), constant_values=-jnp.inf)
    # TODO(synk): build the 9 taps from a VMEM-resident padded plane inside the
    # kernel instead of materializing 9 strided views in HBM.
    views = [xp[:, i:i + (Ho - 1) * 2 + 1:2, j:j + (Wo - 1) * 2 + 1:2, :]
             .reshape(N * Ho, Wo * C)                       # lane-dense (rows, Wo*C)
             for i in range(3) for j in range(3)]
    R, L = N * Ho, Wo * C
    TR = R // 2 if (R % 2 == 0 and (R // 2) % 8 == 0) else R   # >=2 parallel steps
    out = _build_max9(R, L, TR)(*views)
    return out.reshape(N, Ho * Wo, C)


def maxpool3x3_s2_p1(x, H, W):
    Ho = (H + 2 - 3) // 2 + 1
    Wo = (W + 2 - 3) // 2 + 1
    return _maxpool_jit(x, H=H, W=W), Ho, Wo


# ------------------------------- parameter init ------------------------------

def frn_param(c):
    # reset_parameters(): gamma=1, beta=0, tau=0 (eps fixed at 1e-6, non-learnable).
    return jnp.stack([jnp.ones((c,), jnp.float32),
                      jnp.zeros((c,), jnp.float32),
                      jnp.zeros((c,), jnp.float32)], axis=0)        # (3, C)


def conv_param(kg, cout, cin, kh, kw):
    """Weights stored matmul-ready: (K, Cout) bf16 with K = kh*kw*cin ordered
    (kh, kw, cin) to match the im2col tap ordering, zero-padded to a 128-multiple."""
    fan_in = cin * kh * kw
    w = jax.random.normal(kg(), (kh, kw, cin, cout), jnp.float32) / math.sqrt(fan_in)
    w = w.reshape(kh * kw * cin, cout)
    kp = round_up(kh * kw * cin, 128)
    if kp != kh * kw * cin:
        w = jnp.pad(w, ((0, kp - kh * kw * cin), (0, 0)))
    return dict(w=w.astype(jnp.bfloat16), kh=kh, kw=kw)


def init_resnet101(kg):
    p = {'conv1': conv_param(kg, 64, 3, 7, 7), 'bn1': frn_param(64)}
    inplanes = [64]

    def make_layer(planes, blocks, stride):
        layer = []
        for bidx in range(blocks):
            s = stride if bidx == 0 else 1
            ds = None
            if bidx == 0 and (stride != 1 or inplanes[0] != planes * 4):
                ds = dict(conv=conv_param(kg, planes * 4, inplanes[0], 1, 1),
                          bn=frn_param(planes * 4))
            blk = dict(conv1=conv_param(kg, planes, inplanes[0], 1, 1),
                       bn1=frn_param(planes),
                       conv2=conv_param(kg, planes, planes, 3, 3),
                       bn2=frn_param(planes),
                       conv3=conv_param(kg, planes * 4, planes, 1, 1),
                       bn3=frn_param(planes * 4),
                       downsample=ds, stride=s)
            layer.append(blk)
            inplanes[0] = planes * 4
        return layer

    p['layer1'] = make_layer(64, 3, 1)
    p['layer2'] = make_layer(128, 4, 2)
    p['layer3'] = make_layer(256, 23, 2)
    p['layer4'] = make_layer(512, 3, 2)
    return p


# -------------------------------- forward pass --------------------------------

def bottleneck_forward(x, H, W, p):
    # TODO(synk): fuse the whole bottleneck into one kernel for layer3/layer4
    # (weights resident in VMEM, P=16/4 activations fully on-chip).
    s = p['stride']
    if p['downsample'] is not None:
        identity, _, _ = conv_frn(x, H, W, p['downsample']['conv'],
                                  p['downsample']['bn'], stride=s, padding=0,
                                  relu=False)
    else:
        identity = x
    out, H1, W1 = conv_frn(x, H, W, p['conv1'], p['bn1'],
                           stride=1, padding=0, relu=True)
    out, H2, W2 = conv_frn(out, H1, W1, p['conv2'], p['bn2'],
                           stride=s, padding=1, relu=True)
    # conv3 + FRN + residual add + post-add ReLU fused in one kernel.
    out, H3, W3 = conv_frn(out, H2, W2, p['conv3'], p['bn3'], residual=identity,
                           stride=1, padding=0, relu=False, post_add_relu=True)
    return out, H3, W3


def resnet_forward(x, p):
    """x: (N, 3, H, W) f32 NCHW (PyTorch layout). Returns [x1, f2, f3, f4, f5, input]
    as f32 NCHW tensors, matching the reference forward."""
    N, C, H, W = x.shape
    inp = x
    xl = jnp.transpose(x, (0, 2, 3, 1)).reshape(N, H * W, C).astype(jnp.bfloat16)

    x1, H1, W1 = conv_frn(xl, H, W, p['conv1'], p['bn1'],
                          stride=2, padding=3, relu=True)      # conv1 + bn1 + relu
    f, Hc, Wc = maxpool3x3_s2_p1(x1, H1, W1)                   # f1

    feats = []
    for name in ('layer1', 'layer2', 'layer3', 'layer4'):
        for blk in p[name]:
            f, Hc, Wc = bottleneck_forward(f, Hc, Wc, blk)
        feats.append((f, Hc, Wc))

    def to_nchw(t, h, w):
        n, _, c = t.shape
        return jnp.transpose(t.reshape(n, h, w, c), (0, 3, 1, 2)).astype(jnp.float32)

    (f2, h2, w2), (f3, h3, w3), (f4, h4, w4), (f5, h5, w5) = feats
    return [to_nchw(x1, H1, W1), to_nchw(f2, h2, w2), to_nchw(f3, h3, w3),
            to_nchw(f4, h4, w4), to_nchw(f5, h5, w5), inp]


# ------------------------------------ main ------------------------------------

if __name__ == "__main__":
    kg = KeyGen(jax.random.PRNGKey(0))
    params = init_resnet101(kg)

    # Small input; 64x64 keeps all 5 encoder downsamples non-degenerate (64 / 2**5 = 2).
    x = jax.random.normal(jax.random.PRNGKey(0), (2, 3, 64, 64), jnp.float32)

    feats = resnet_forward(x, params)
    feats = jax.block_until_ready(feats)

    expected = [(2, 64, 32, 32), (2, 256, 16, 16), (2, 512, 8, 8),
                (2, 1024, 4, 4), (2, 2048, 2, 2), (2, 3, 64, 64)]
    for f, s in zip(feats, expected):
        assert f.shape == s, (f.shape, s)
        assert bool(jnp.all(jnp.isfinite(f))), "non-finite output"
    print("KERNEL_OK")
</pallas_src>

<mosaic_0001>
module attributes {stable_mosaic.version = 11 : i64} {
  func.func @kernel(%arg0: i32, %arg1: i32, %arg2: memref<1x1024x256xbf16, #tpu.memory_space<vmem>>, %arg3: memref<256x64xbf16, #tpu.memory_space<vmem>>, %arg4: memref<3x64xf32, #tpu.memory_space<vmem>>, %arg5: memref<1x1024x64xbf16, #tpu.memory_space<vmem>>) attributes {dimension_semantics = [#tpu.dimension_semantics<parallel>, #tpu.dimension_semantics<parallel>], iteration_bounds = array<i64: 1, 2>, scalar_prefetch = 0 : i64, scratch_operands = 0 : i64, tpu.core_type = #tpu.core_type<tc>, window_params = [{transform_indices = @transform_0, window_bounds = array<i64: 1, 1024, 256>}, {transform_indices = @transform_1, window_bounds = array<i64: 256, 64>}, {transform_indices = @transform_2, window_bounds = array<i64: 3, 64>}, {transform_indices = @transform_3, window_bounds = array<i64: 1, 1024, 64>}]} {
    %c0 = arith.constant 0 : index
    %c0_0 = arith.constant 0 : index
    %c0_1 = arith.constant 0 : index
    %0 = vector.load %arg2[%c0, %c0_0, %c0_1] : memref<1x1024x256xbf16, #tpu.memory_space<vmem>>, vector<1x1024x256xbf16>
    %1 = vector.shape_cast %0 : vector<1x1024x256xbf16> to vector<1024x256xbf16>
    %c0_2 = arith.constant 0 : index
    %c0_3 = arith.constant 0 : index
    %2 = vector.load %arg3[%c0_2, %c0_3] : memref<256x64xbf16, #tpu.memory_space<vmem>>, vector<256x64xbf16>
    %cst = arith.constant dense<0.000000e+00> : vector<1024x64xf32>
    %3 = tpu.matmul %1, %2, %cst {dimension_numbers = #tpu.dot_dimension_numbers<[1], [0], [0], [1], [0, 0, 1, 1], [], []>} : vector<1024x256xbf16>, vector<256x64xbf16>, vector<1024x64xf32> -> vector<1024x64xf32>
    %4 = arith.mulf %3, %3 : vector<1024x64xf32>
    %cst_4 = arith.constant dense<0.000000e+00> : vector<64xf32>
    %5 = vector.multi_reduction <add>, %4, %cst_4 [0] : vector<1024x64xf32> to vector<64xf32>
    %6 = vector.shape_cast %5 : vector<64xf32> to vector<1x64xf32>
    %cst_5 = arith.constant 1.024000e+03 : f32
    %7 = vector.broadcast %cst_5 : f32 to vector<1x64xf32>
    %8 = arith.divf %6, %7 : vector<1x64xf32>
    %cst_6 = arith.constant 9.99999997E-7 : f32
    %9 = vector.broadcast %cst_6 : f32 to vector<1x64xf32>
    %10 = arith.addf %8, %9 : vector<1x64xf32>
    %11 = math.rsqrt %10 : vector<1x64xf32>
    %12 = vector.broadcast %11 : vector<1x64xf32> to vector<1024x64xf32>
    %13 = arith.mulf %3, %12 : vector<1024x64xf32>
    %c0_7 = arith.constant 0 : index
    %c0_8 = arith.constant 0 : index
    %14 = vector.load %arg4[%c0_7, %c0_8] : memref<3x64xf32, #tpu.memory_space<vmem>>, vector<1x64xf32>
    %15 = vector.broadcast %14 : vector<1x64xf32> to vector<1024x64xf32>
    %16 = arith.mulf %15, %13 : vector<1024x64xf32>
    %c1 = arith.constant 1 : index
    %c0_9 = arith.constant 0 : index
    %17 = vector.load %arg4[%c1, %c0_9] : memref<3x64xf32, #tpu.memory_space<vmem>>, vector<1x64xf32>
    %18 = vector.broadcast %17 : vector<1x64xf32> to vector<1024x64xf32>
    %19 = arith.addf %16, %18 : vector<1024x64xf32>
    %c2 = arith.constant 2 : index
    %c0_10 = arith.constant 0 : index
    %20 = vector.load %arg4[%c2, %c0_10] : memref<3x64xf32, #tpu.memory_space<vmem>>, vector<1x64xf32>
    %21 = vector.broadcast %20 : vector<1x64xf32> to vector<1024x64xf32>
    %22 = arith.maximumf %19, %21 : vector<1024x64xf32>
    %cst_11 = arith.constant 0.000000e+00 : f32
    %23 = vector.broadcast %cst_11 : f32 to vector<1024x64xf32>
    %24 = arith.maximumf %22, %23 : vector<1024x64xf32>
    %25 = arith.truncf %24 : vector<1024x64xf32> to vector<1024x64xbf16>
    %c0_12 = arith.constant 0 : index
    %c0_13 = arith.constant 0 : index
    %c0_14 = arith.constant 0 : index
    %26 = vector.load %arg5[%c0_12, %c0_13, %c0_14] : memref<1x1024x64xbf16, #tpu.memory_space<vmem>>, vector<1x1024x64xbf16>
    %27 = vector.shape_cast %26 : vector<1x1024x64xbf16> to vector<1024x64xbf16>
    %28 = vector.shape_cast %25 : vector<1024x64xbf16> to vector<1x1024x64xbf16>
    tpu.vector_store %arg5[%c0_12, %c0_13, %c0_14], %28 {strides = array<i32>} : memref<1x1024x64xbf16, #tpu.memory_space<vmem>>, vector<1x1024x64xbf16>,
    return
  }
  func.func @transform_0(%arg0: i32, %arg1: i32) -> (i32, i32, i32) {
    %c0_i32 = arith.constant 0 : i32
    %c0_i32_0 = arith.constant 0 : i32
    %c0_i32_1 = arith.constant 0 : i32
    return %arg1, %c0_i32, %c0_i32_0 : i32, i32, i32
  }
  func.func @transform_1(%arg0: i32, %arg1: i32) -> (i32, i32) {
    %c0_i32 = arith.constant 0 : i32
    %c0_i32_0 = arith.constant 0 : i32
    return %c0_i32, %arg0 : i32, i32
  }
  func.func @transform_2(%arg0: i32, %arg1: i32) -> (i32, i32) {
    %c0_i32 = arith.constant 0 : i32
    %c0_i32_0 = arith.constant 0 : i32
    return %c0_i32, %arg0 : i32, i32
  }
  func.func @transform_3(%arg0: i32, %arg1: i32) -> (i32, i32, i32) {
    %c0_i32 = arith.constant 0 : i32
    %c0_i32_0 = arith.constant 0 : i32
    return %arg1, %c0_i32, %arg0 : i32, i32, i32
  }
}

</mosaic_0001>

<bundles_post_ra>
// kernel: _conv_frn_jit.1
= control target key start
LH: loop header
LB: loop body
LE: loop exit
PB: predicated region body
PF: predicated region fallthrough
CT: control target
= control target key end

     0   :  { %s4028_s12 = smov 0   ;;  %s4030_s13 = smov 0   ;;  %s7132_s0 = inlined_call_operand.vmem [shape: bf16[2,1024,256], index: 0, kind: input, shape index: {}]   ;;  %s7133_s1 = inlined_call_operand.vmem [shape: bf16[256,64], index: 1, kind: input, shape index: {}]   ;;  %s7134_s2 = inlined_call_operand.vmem [shape: f32[3,64], index: 2, kind: input, shape index: {}]   ;;  %s7135_s3 = inlined_call_operand.vmem [shape: bf16[2,1024,64], index: 3, kind: output, shape index: {}]  }
   0x1   :  { %s4032_s14 = smov 0  }
   0x2 LB: > { %s22_s15 = sadd.s32 1, %s4001_s13  ;;  %p3205_p0 = scmp.ge.s32.totalorder %s4005_s14, 1  ;;  %s4005_s14 = sphi %s4032_s14, %s13_s14   ;;  %s4001_s13 = sphi %s4030_s13, %s7827_s13   ;;  %s3997_s12 = sphi %s4028_s12, %s7826_s12  }
   0x3   : > { %p23_p1 = scmp.ge.s32.totalorder %s22_s15, 2  ;;  %p169_p2 = scmp.lt.s32.totalorder %s4005_s14, 3 }
   0x5   : > { %s7829_s15 = smov (%p23_p1, %s22_s15), 0  ;;  %p170_p3 = pnand %p3205_p0, %p169_p2 }
   0x7   : > { %173 = sbr.rel (%p170_p3) target bundleno = 1118 (0x45e), region = 32 }
   0xc   : > { %v3925_v0 = vld [vmem:[%s7133_s1 + $0x38] sm:$0xff]  ;;  %v3924_v2 = vld [vmem:[%s7133_s1 + $0x30] sm:$0xff]  ;;  %v3923_v4 = vld [vmem:[%s7133_s1 + $0x28] sm:$0xff]  ;;  %p204_p4 = scmp.lt.s32.totalorder %s3997_s12, 1  ;;  %vm1907_vm0 = vcmask 523264   ;;  %vm2962_vm5 = vcmask 519168  }
   0xd   : > { %v3933_v1 = vld [vmem:[%s7133_s1 + $0x78] sm:$0xff]  ;;  %1121 = vmatpush.bf16.msra.mxu0 %v3925_v0  ;;  %v3932_v3 = vld [vmem:[%s7133_s1 + $0x70] sm:$0xff]  ;;  %3934 = vmatpush.bf16.msra.mxu2 %v3925_v0  ;;  %v3931_v5 = vld [vmem:[%s7133_s1 + $0x68] sm:$0xff] }
   0xe   : > { %1450 = vmatpush.bf16.msra.mxu1 %v3933_v1  ;;  %3942 = vmatpush.bf16.msra.mxu3 %v3933_v1  ;;  %v3922_v6 = vld [vmem:[%s7133_s1 + $0x20] sm:$0xff]  ;;  %v3921_v8 = vld [vmem:[%s7133_s1 + $0x18] sm:$0xff]  ;;  %s7831_s12 = smov (!%p204_p4, %s3997_s12), 1  ;;  %v3920_v10 = vld [vmem:[%s7133_s1 + $0x10] sm:$0xff] }
   0xf   : > { %v3930_v7 = vld [vmem:[%s7133_s1 + $0x60] sm:$0xff]  ;;  %v3929_v9 = vld [vmem:[%s7133_s1 + $0x58] sm:$0xff]  ;;  %v3928_v11 = vld [vmem:[%s7133_s1 + $0x50] sm:$0xff]  ;;  %s3788_s17 = sshll.u32 %s7831_s12, 10  ;;  %s3789_s8 = sshll.u32 %s7831_s12, 9 }
  0x10   : > { %v3919_v12 = vld [vmem:[%s7133_s1 + $0x8] sm:$0xff]  ;;  %s4098_s24 = scalar_lea.vmem %s7132_s0, %s3788_s17  ;;  %v3918_v14 = vld [vmem:[%s7133_s1] sm:$0xff]  ;;  %s6519_s10 = scalar_lea.vmem %s7135_s3, %s3789_s8 }
  0x11   : > { %1122 = vmatpush.bf16.msra.mxu0 %v3924_v2  ;;  %3935 = vmatpush.bf16.msra.mxu2 %v3924_v2  ;;  %v3927_v13 = vld [vmem:[%s7133_s1 + $0x48] sm:$0xff]  ;;  %v3926_v15 = vld [vmem:[%s7133_s1 + $0x40] sm:$0xff]  ;;  %v3220_v22 = vld [vmem:[%s4098_s24 + $0x10] sm:$0xf] }
  0x12   : > { %1451 = vmatpush.bf16.msra.mxu1 %v3932_v3  ;;  %3943 = vmatpush.bf16.msra.mxu3 %v3932_v3  ;;  %v3212_v16 = vld [vmem:[%s4098_s24] sm:$0xf]  ;;  %v3791_v17 = vld [vmem:[%s4098_s24 + $0x4] sm:$0xf0]  ;;  %v3790_v18 = vld [vmem:[%s4098_s24 + $0x4] sm:$0xf] }
  0x13   : > { %v3214_v19 = vld [vmem:[%s4098_s24 + $0x8] sm:$0xf0]  ;;  %v3213_v20 = vor.u32 %v3791_v17, %v3212_v16  ;;  %v3793_v23 = vld [vmem:[%s4098_s24 + $0x14] sm:$0xf0]  ;;  %v3792_v24 = vld [vmem:[%s4098_s24 + $0x14] sm:$0xf] }
  0x14   : > { %v3217_v21 = vor.u32 %v3790_v18, %v3214_v19  ;;  %v3222_v25 = vld [vmem:[%s4098_s24 + $0x18] sm:$0xf0]  ;;  %v3221_v26 = vor.u32 %v3793_v23, %v3220_v22  ;;  %v3228_v28 = vld [vmem:[%s4098_s24 + $0x20] sm:$0xf]  ;;  %v3795_v29 = vld [vmem:[%s4098_s24 + $0x24] sm:$0xf0] }
  0x15   : > { %1123 = vmatpush.bf16.msra.mxu0 %v3923_v4  ;;  %3936 = vmatpush.bf16.msra.mxu2 %v3923_v4  ;;  %v3225_v27 = vor.u32 %v3792_v24, %v3222_v25  ;;  %v3794_v30 = vld [vmem:[%s4098_s24 + $0x24] sm:$0xf]  ;;  %v3230_v31 = vld [vmem:[%s4098_s24 + $0x28] sm:$0xf0]  ;;  %v3229_v32 = vor.u32 %v3795_v29, %v3228_v28  ;;  %v3236_v34 = vld [vmem:[%s4098_s24 + $0x30] sm:$0xf] }
  0x16   : > { %1452 = vmatpush.bf16.msra.mxu1 %v3931_v5  ;;  %3944 = vmatpush.bf16.msra.mxu3 %v3931_v5  ;;  %v3233_v33 = vor.u32 %v3794_v30, %v3230_v31  ;;  %v3797_v35 = vld [vmem:[%s4098_s24 + $0x34] sm:$0xf0]  ;;  %v3796_v36 = vld [vmem:[%s4098_s24 + $0x34] sm:$0xf]  ;;  %v3238_v37 = vld [vmem:[%s4098_s24 + $0x38] sm:$0xf0] }
  0x17   : > { %v3237_v38 = vor.u32 %v3797_v35, %v3236_v34  ;;  %v3241_v39 = vor.u32 %v3796_v36, %v3238_v37  ;;  %v3244_v40 = vld [vmem:[%s4098_s24 + $0x40] sm:$0xf]  ;;  %v3799_v41 = vld [vmem:[%s4098_s24 + $0x44] sm:$0xf0]  ;;  %v3798_v42 = vld [vmem:[%s4098_s24 + $0x44] sm:$0xf] }
  0x18   : > { %v3246_v43 = vld [vmem:[%s4098_s24 + $0x48] sm:$0xf0]  ;;  %v3245_v44 = vor.u32 %v3799_v41, %v3244_v40  ;;  %v3252_v46 = vld [vmem:[%s4098_s24 + $0x50] sm:$0xf]  ;;  %v3801_v47 = vld [vmem:[%s4098_s24 + $0x54] sm:$0xf0] }
  0x19   : > { %1124 = vmatpush.bf16.msra.mxu0 %v3922_v6  ;;  %3937 = vmatpush.bf16.msra.mxu2 %v3922_v6  ;;  %v3249_v45 = vor.u32 %v3798_v42, %v3246_v43  ;;  %v3800_v48 = vld [vmem:[%s4098_s24 + $0x54] sm:$0xf]  ;;  %v3254_v49 = vld [vmem:[%s4098_s24 + $0x58] sm:$0xf0]  ;;  %v3253_v50 = vor.u32 %v3801_v47, %v3252_v46  ;;  %v3468_v52 = vld [vmem:[%s4098_s24 + $0x200] sm:$0xf] }
  0x1a   : > { %1453 = vmatpush.bf16.msra.mxu1 %v3930_v7  ;;  %3945 = vmatpush.bf16.msra.mxu3 %v3930_v7  ;;  %v3257_v51 = vor.u32 %v3800_v48, %v3254_v49  ;;  %v3855_v53 = vld [vmem:[%s4098_s24 + $0x204] sm:$0xf0]  ;;  %v3854_v54 = vld [vmem:[%s4098_s24 + $0x204] sm:$0xf]  ;;  %v3470_v56 = vld [vmem:[%s4098_s24 + $0x208] sm:$0xf0] }
  0x1b   : > { %v3469_v55 = vor.u32 %v3855_v53, %v3468_v52  ;;  %v3473_v57 = vor.u32 %v3854_v54, %v3470_v56  ;;  %v3260_v58 = vld [vmem:[%s4098_s24 + $0x60] sm:$0xf]  ;;  %v3803_v59 = vld [vmem:[%s4098_s24 + $0x64] sm:$0xf0]  ;;  %v3802_v60 = vld [vmem:[%s4098_s24 + $0x64] sm:$0xf] }
  0x1c   : > { %v3262_v61 = vld [vmem:[%s4098_s24 + $0x68] sm:$0xf0]  ;;  %v3261_v62 = vor.u32 %v3803_v59, %v3260_v58  ;;  %v3476_v0 = vld [vmem:[%s4098_s24 + $0x210] sm:$0xf]  ;;  %v3857_v1 = vld [vmem:[%s4098_s24 + $0x214] sm:$0xf0] }
  0x1d   : > { %1125 = vmatpush.bf16.msra.mxu0 %v3921_v8  ;;  %3938 = vmatpush.bf16.msra.mxu2 %v3921_v8  ;;  %v3265_v63 = vor.u32 %v3802_v60, %v3262_v61  ;;  %v3856_v2 = vld [vmem:[%s4098_s24 + $0x214] sm:$0xf]  ;;  %v3477_v3 = vor.u32 %v3857_v1, %v3476_v0  ;;  %v3478_v4 = vld [vmem:[%s4098_s24 + $0x218] sm:$0xf0]  ;;  %v3268_v6 = vld [vmem:[%s4098_s24 + $0x70] sm:$0xf] }
  0x1e   : > { %1454 = vmatpush.bf16.msra.mxu1 %v3929_v9  ;;  %3946 = vmatpush.bf16.msra.mxu3 %v3929_v9  ;;  %v3481_v5 = vor.u32 %v3856_v2, %v3478_v4  ;;  %v3805_v7 = vld [vmem:[%s4098_s24 + $0x74] sm:$0xf0]  ;;  %v3804_v8 = vld [vmem:[%s4098_s24 + $0x74] sm:$0xf]  ;;  %v3270_v9 = vld [vmem:[%s4098_s24 + $0x78] sm:$0xf0] }
  0x1f   : > { %v3486_v16 = vld [vmem:[%s4098_s24 + $0x228] sm:$0xf0]  ;;  %v3276_v18 = vld [vmem:[%s4098_s24 + $0x80] sm:$0xf]  ;;  %v3807_v19 = vld [vmem:[%s4098_s24 + $0x84] sm:$0xf0] }
  0x20   : > { %v3277_v22 = vor.u32 %v3807_v19, %v3276_v18  ;;  %v3861_v28 = vld [vmem:[%s4098_s24 + $0x234] sm:$0xf0]  ;;  %v3860_v29 = vld [vmem:[%s4098_s24 + $0x234] sm:$0xf]  ;;  %v3494_v31 = vld [vmem:[%s4098_s24 + $0x238] sm:$0xf0] }
  0x21   : > { %1126 = vmatpush.bf16.msra.mxu0 %v3920_v10  ;;  %3939 = vmatpush.bf16.msra.mxu2 %v3920_v10  ;;  %v3269_v10 = vor.u32 %v3805_v7, %v3268_v6  ;;  %v3284_v36 = vld [vmem:[%s4098_s24 + $0x90] sm:$0xf]  ;;  %v3809_v37 = vld [vmem:[%s4098_s24 + $0x94] sm:$0xf0]  ;;  %v3863_v46 = vld [vmem:[%s4098_s24 + $0x244] sm:$0xf0] }
  0x22   : > { %1455 = vmatpush.bf16.msra.mxu1 %v3928_v11  ;;  %3947 = vmatpush.bf16.msra.mxu3 %v3928_v11  ;;  %v3273_v11 = vor.u32 %v3804_v8, %v3270_v9  ;;  %v3285_v40 = vor.u32 %v3809_v37, %v3284_v36  ;;  %v3862_v47 = vld [vmem:[%s4098_s24 + $0x244] sm:$0xf]  ;;  %v3502_v49 = vld [vmem:[%s4098_s24 + $0x248] sm:$0xf0]  ;;  %v3292_v54 = vld [vmem:[%s4098_s24 + $0xa0] sm:$0xf] }
  0x23   : > { %v3810_v56 = vld [vmem:[%s4098_s24 + $0xa4] sm:$0xf]  ;;  %v3865_v0 = vld [vmem:[%s4098_s24 + $0x254] sm:$0xf0]  ;;  %v3864_v1 = vld [vmem:[%s4098_s24 + $0x254] sm:$0xf] }
  0x24   : > { %v3300_v8 = vld [vmem:[%s4098_s24 + $0xb0] sm:$0xf]  ;;  %v3813_v9 = vld [vmem:[%s4098_s24 + $0xb4] sm:$0xf0]  ;;  %v3867_v18 = vld [vmem:[%s4098_s24 + $0x264] sm:$0xf0] }
  0x25   : > { %1127 = vmatpush.bf16.msra.mxu0 %v3919_v12  ;;  %3940 = vmatpush.bf16.msra.mxu2 %v3919_v12  ;;  %v3484_v12 = vld [vmem:[%s4098_s24 + $0x220] sm:$0xf]  ;;  %v3866_v19 = vld [vmem:[%s4098_s24 + $0x264] sm:$0xf]  ;;  %v3524_v37 = vld [vmem:[%s4098_s24 + $0x270] sm:$0xf] }
  0x26   : > { %1456 = vmatpush.bf16.msra.mxu1 %v3927_v13  ;;  %3948 = vmatpush.bf16.msra.mxu3 %v3927_v13  ;;  %v3859_v13 = vld [vmem:[%s4098_s24 + $0x224] sm:$0xf0] }
  0x29   : > { %1128 = vmatpush.bf16.msra.mxu0 %v3918_v14  ;;  %3941 = vmatpush.bf16.msra.mxu2 %v3918_v14  ;;  %v3858_v14 = vld [vmem:[%s4098_s24 + $0x224] sm:$0xf] }
  0x2a   : > { %1457 = vmatpush.bf16.msra.mxu1 %v3926_v15  ;;  %3949 = vmatpush.bf16.msra.mxu3 %v3926_v15  ;;  %v3485_v15 = vor.u32 %v3859_v13, %v3484_v12  ;;  %v3489_v17 = vor.u32 %v3858_v14, %v3486_v16  ;;  %v3301_v12 = vor.u32 %v3813_v9, %v3300_v8  ;;  %v3818_v8 = vld [vmem:[%s4098_s24 + $0xe4] sm:$0xf]  ;;  %v3326_v9 = vld [vmem:[%s4098_s24 + $0xe8] sm:$0xf0] }
  0x2c   : > { %1129 = vmatmul.bf16.vlgmr.msra.gmra.mxu0 %v3213_v20  ;;  %1289 = vmatmul.bf16.vlgmr.msra.gmra.mxu2 %v3469_v55  ;;  %v3806_v20 = vld [vmem:[%s4098_s24 + $0x84] sm:$0xf]  ;;  %v3811_v55 = vld [vmem:[%s4098_s24 + $0xa4] sm:$0xf0] }
  0x2d   : > { %1458 = vmatmul.bf16.vlgmr.msra.gmra.mxu1 %v3217_v21  ;;  %1618 = vmatmul.bf16.vlgmr.msra.gmra.mxu3 %v3473_v57  ;;  %v3278_v21 = vld [vmem:[%s4098_s24 + $0x88] sm:$0xf0]  ;;  %v3293_v58 = vor.u32 %v3811_v55, %v3292_v54 }
  0x2e   : > { %v3281_v23 = vor.u32 %v3806_v20, %v3278_v21  ;;  %v3294_v57 = vld [vmem:[%s4098_s24 + $0xa8] sm:$0xf0] }
  0x2f   : > { %v3297_v59 = vor.u32 %v3810_v56, %v3294_v57  ;;  %v3518_v21 = vld [vmem:[%s4098_s24 + $0x268] sm:$0xf0]  ;;  %v3532_v57 = vld [vmem:[%s4098_s24 + $0x280] sm:$0xf] }
  0x3c   : > { %1134 = vmatmul.bf16.gmra.mxu0 %v3221_v26  ;;  %1294 = vmatmul.bf16.gmra.mxu2 %v3477_v3  ;;  %v3510_v3 = vld [vmem:[%s4098_s24 + $0x258] sm:$0xf0] }
  0x3d   : > { %1463 = vmatmul.bf16.gmra.mxu1 %v3225_v27  ;;  %1623 = vmatmul.bf16.gmra.mxu3 %v3481_v5  ;;  %v3492_v27 = vld [vmem:[%s4098_s24 + $0x230] sm:$0xf]  ;;  %v3513_v4 = vor.u32 %v3864_v1, %v3510_v3 }
  0x3e   : > { %v3493_v30 = vor.u32 %v3861_v28, %v3492_v27  ;;  %v3308_v27 = vld [vmem:[%s4098_s24 + $0xc0] sm:$0xf]  ;;  %v3815_v28 = vld [vmem:[%s4098_s24 + $0xc4] sm:$0xf0] }
  0x4c   : > { %1139 = vmatmul.bf16.gmra.mxu0 %v3229_v32  ;;  %1299 = vmatmul.bf16.gmra.mxu2 %v3485_v15  ;;  %v3497_v32 = vor.u32 %v3860_v29, %v3494_v31  ;;  %v3814_v29 = vld [vmem:[%s4098_s24 + $0xc4] sm:$0xf]  ;;  %v3309_v31 = vor.u32 %v3815_v28, %v3308_v27 }
  0x4d   : > { %1468 = vmatmul.bf16.gmra.mxu1 %v3233_v33  ;;  %1628 = vmatmul.bf16.gmra.mxu3 %v3489_v17  ;;  %v3516_v17 = vld [vmem:[%s4098_s24 + $0x260] sm:$0xf] }
  0x4e   : > { %v3517_v20 = vor.u32 %v3867_v18, %v3516_v17 }
  0x5c   : > { %1144 = vmatmul.bf16.gmra.mxu0 %v3237_v38  ;;  %1304 = vmatmul.bf16.gmra.mxu2 %v3493_v30  ;;  %v3808_v38 = vld [vmem:[%s4098_s24 + $0x94] sm:$0xf]  ;;  %v3310_v30 = vld [vmem:[%s4098_s24 + $0xc8] sm:$0xf0] }
  0x5d   : > { %1473 = vmatmul.bf16.gmra.mxu1 %v3241_v39  ;;  %1633 = vmatmul.bf16.gmra.mxu3 %v3497_v32  ;;  %v3286_v39 = vld [vmem:[%s4098_s24 + $0x98] sm:$0xf0]  ;;  %v3313_v32 = vor.u32 %v3814_v29, %v3310_v30 }
  0x5e   : > { %v3289_v41 = vor.u32 %v3808_v38, %v3286_v39  ;;  %v3869_v38 = vld [vmem:[%s4098_s24 + $0x274] sm:$0xf0]  ;;  %v3868_v39 = vld [vmem:[%s4098_s24 + $0x274] sm:$0xf] }
  0x6c   : > { %1149 = vmatmul.bf16.gmra.mxu0 %v3245_v44 }
  0x6d   : > { %1478 = vmatmul.bf16.gmra.mxu1 %v3249_v45  ;;  %v3500_v45 = vld [vmem:[%s4098_s24 + $0x240] sm:$0xf] }
  0x6e   : > { %v3501_v48 = vor.u32 %v3863_v46, %v3500_v45 }
  0x70   : > { %1309 = vmatmul.bf16.gmra.mxu2 %v3501_v48  ;;  %v3817_v48 = vld [vmem:[%s4098_s24 + $0xd4] sm:$0xf0] }
  0x7c   : > { %1154 = vmatmul.bf16.gmra.mxu0 %v3253_v50  ;;  %v3505_v50 = vor.u32 %v3862_v47, %v3502_v49  ;;  %v3316_v47 = vld [vmem:[%s4098_s24 + $0xd0] sm:$0xf]  ;;  %v3816_v49 = vld [vmem:[%s4098_s24 + $0xd4] sm:$0xf] }
  0x7d   : > { %1483 = vmatmul.bf16.gmra.mxu1 %v3257_v51 }
  0x7e   : > { %1638 = vmatmul.bf16.gmra.mxu3 %v3505_v50  ;;  %v3318_v50 = vld [vmem:[%s4098_s24 + $0xd8] sm:$0xf0] }
  0x8c   : > { %1159 = vmatmul.bf16.gmra.mxu0 %v3261_v62 }
  0x8d   : > { %1488 = vmatmul.bf16.gmra.mxu1 %v3265_v63  ;;  %v3508_v63 = vld [vmem:[%s4098_s24 + $0x250] sm:$0xf] }
  0x8e   : > { %v3509_v2 = vor.u32 %v3865_v0, %v3508_v63  ;;  %1643 = vmatmul.bf16.gmra.mxu3 %v3513_v4 }
  0x90   : > { %1314 = vmatmul.bf16.gmra.mxu2 %v3509_v2 }
  0x9c   : > { %1164 = vmatmul.bf16.gmra.mxu0 %v3269_v10  ;;  %v3812_v10 = vld [vmem:[%s4098_s24 + $0xb4] sm:$0xf] }
  0x9d   : > { %1493 = vmatmul.bf16.gmra.mxu1 %v3273_v11  ;;  %v3302_v11 = vld [vmem:[%s4098_s24 + $0xb8] sm:$0xf0] }
  0x9e   : > { %v3305_v13 = vor.u32 %v3812_v10, %v3302_v11 }
  0xa0   : > { %1319 = vmatmul.bf16.gmra.mxu2 %v3517_v20  ;;  %v3540_v20 = vld [vmem:[%s4098_s24 + $0x290] sm:$0xf] }
  0xa9   : > { %v1130_v24 = vpop.f32.mrf.mxu0 }
  0xaa   : > { %v1459_v25 = vpop.f32.mrf.mxu1 }
  0xab   : > { %v4154_v26 = vadd.f32 %v1459_v25, %v1130_v24 }
  0xac   : > { %1169 = vmatmul.bf16.gmra.mxu0 %v3277_v22  ;;  %v3521_v22 = vor.u32 %v3866_v19, %v3518_v21  ;;  %v3873_v21 = vld [vmem:[%s4098_s24 + $0x294] sm:$0xf0] }
  0xad   : > { %7314 = vst [vmem:[#allocation2_spill] sm:$0xff] %v4154_v26  ;;  %1498 = vmatmul.bf16.gmra.mxu1 %v3281_v23 }
  0xae   : > { %1648 = vmatmul.bf16.gmra.mxu3 %v3521_v22  ;;  %v3541_v22 = vor.u32 %v3873_v21, %v3540_v20  ;;  %v3877_v20 = vld [vmem:[%s4098_s24 + $0x2b4] sm:$0xf0] }
  0xaf   : > { %v1290_v3 = vpop.f32.mrf.mxu2 }
  0xb0   : > { %v1619_v4 = vpop.f32.mrf.mxu3 }
  0xb1   : > { %v1132_v33 = vpop.f32.mrf.mxu0  ;;  %v4226_v10 = vadd.f32 %v1619_v4, %v1290_v3  ;;  %v3822_v3 = vld [vmem:[%s4098_s24 + $0x104] sm:$0xf]  ;;  %v3342_v4 = vld [vmem:[%s4098_s24 + $0x108] sm:$0xf0] }
  0xb2   : > { %v1461_v34 = vpop.f32.mrf.mxu1 }
  0xb3   : > { %v4160_v35 = vadd.f32 %v1461_v34, %v1132_v33  ;;  %7326 = vst [vmem:[#allocation14_spill] sm:$0xff] %v4226_v10 }
  0xb5   : > { %7315 = vst [vmem:[#allocation3_spill] sm:$0xff] %v4160_v35 }
  0xb7   : > { %v1292_v17 = vpop.f32.mrf.mxu2 }
  0xb8   : > { %v1621_v18 = vpop.f32.mrf.mxu3 }
  0xb9   : > { %v1135_v42 = vpop.f32.mrf.mxu0  ;;  %v4230_v19 = vadd.f32 %v1621_v18, %v1292_v17  ;;  %v3556_v18 = vld [vmem:[%s4098_s24 + $0x2b0] sm:$0xf] }
  0xba   : > { %v1464_v43 = vpop.f32.mrf.mxu1  ;;  %v3557_v21 = vor.u32 %v3877_v20, %v3556_v18 }
  0xbb   : > { %v4166_v44 = vadd.f32 %v1464_v43, %v1135_v42  ;;  %7328 = vst [vmem:[#allocation16_spill] sm:$0xff] %v4230_v19  ;;  %v3907_v19 = vld [vmem:[%s4098_s24 + $0x3a4] sm:$0xf0] }
  0xbc   : > { %1174 = vmatmul.bf16.gmra.mxu0 %v3285_v40  ;;  %v3525_v40 = vor.u32 %v3869_v38, %v3524_v37  ;;  %v3820_v37 = vld [vmem:[%s4098_s24 + $0xf4] sm:$0xf]  ;;  %v3334_v38 = vld [vmem:[%s4098_s24 + $0xf8] sm:$0xf0] }
  0xbd   : > { %7316 = vst [vmem:[#allocation4_spill] sm:$0xff] %v4166_v44  ;;  %1503 = vmatmul.bf16.gmra.mxu1 %v3289_v41  ;;  %v3526_v41 = vld [vmem:[%s4098_s24 + $0x278] sm:$0xf0] }
  0xbe   : > { %v3529_v42 = vor.u32 %v3868_v39, %v3526_v41  ;;  %1324 = vmatmul.bf16.gmra.mxu2 %v3525_v40  ;;  %v3337_v41 = vor.u32 %v3820_v37, %v3334_v38  ;;  %v3824_v37 = vld [vmem:[%s4098_s24 + $0x114] sm:$0xf]  ;;  %v3350_v38 = vld [vmem:[%s4098_s24 + $0x118] sm:$0xf0] }
  0xc0   : > { %1653 = vmatmul.bf16.gmra.mxu3 %v3529_v42 }
  0xc1   : > { %v1137_v51 = vpop.f32.mrf.mxu0 }
  0xc2   : > { %v1466_v52 = vpop.f32.mrf.mxu1 }
  0xc3   : > { %v4172_v53 = vadd.f32 %v1466_v52, %v1137_v51  ;;  %v3317_v51 = vor.u32 %v3817_v48, %v3316_v47  ;;  %v3321_v52 = vor.u32 %v3816_v49, %v3318_v50  ;;  %v3548_v50 = vld [vmem:[%s4098_s24 + $0x2a0] sm:$0xf] }
  0xc5   : > { %7317 = vst [vmem:[#allocation5_spill] sm:$0xff] %v4172_v53 }
  0xc9   : > { %v1140_v60 = vpop.f32.mrf.mxu0 }
  0xca   : > { %v1469_v61 = vpop.f32.mrf.mxu1 }
  0xcb   : > { %v4178_v62 = vadd.f32 %v1469_v61, %v1140_v60  ;;  %v3534_v61 = vld [vmem:[%s4098_s24 + $0x288] sm:$0xf0] }
  0xcc   : > { %1179 = vmatmul.bf16.gmra.mxu0 %v3293_v58  ;;  %v3871_v58 = vld [vmem:[%s4098_s24 + $0x284] sm:$0xf0] }
  0xcd   : > { %7318 = vst [vmem:[#allocation6_spill] sm:$0xff] %v4178_v62  ;;  %1508 = vmatmul.bf16.gmra.mxu1 %v3297_v59  ;;  %v3870_v59 = vld [vmem:[%s4098_s24 + $0x284] sm:$0xf]  ;;  %v3533_v60 = vor.u32 %v3871_v58, %v3532_v57 }
  0xce   : > { %v3537_v63 = vor.u32 %v3870_v59, %v3534_v61 }
  0xcf   : > { %1329 = vmatmul.bf16.gmra.mxu2 %v3533_v60 }
  0xd0   : > { %1658 = vmatmul.bf16.gmra.mxu3 %v3537_v63 }
  0xd1   : > { %v1142_v5 = vpop.f32.mrf.mxu0 }
  0xd2   : > { %v1471_v6 = vpop.f32.mrf.mxu1 }
  0xd3   : > { %v4184_v7 = vadd.f32 %v1471_v6, %v1142_v5  ;;  %v3324_v5 = vld [vmem:[%s4098_s24 + $0xe0] sm:$0xf]  ;;  %v3819_v6 = vld [vmem:[%s4098_s24 + $0xe4] sm:$0xf0] }
  0xd4   : > { %v3325_v11 = vor.u32 %v3819_v6, %v3324_v5 }
  0xd5   : > { %7319 = vst [vmem:[#allocation7_spill] sm:$0xff] %v4184_v7 }
  0xd9   : > { %v1145_v14 = vpop.f32.mrf.mxu0 }
  0xda   : > { %v1474_v15 = vpop.f32.mrf.mxu1 }
  0xdb   : > { %v4190_v16 = vadd.f32 %v1474_v15, %v1145_v14 }
  0xdc   : > { %1184 = vmatmul.bf16.gmra.mxu0 %v3301_v12  ;;  %v3329_v12 = vor.u32 %v3818_v8, %v3326_v9  ;;  %v3345_v8 = vor.u32 %v3822_v3, %v3342_v4 }
  0xdd   : > { %7320 = vst [vmem:[#allocation8_spill] sm:$0xff] %v4190_v16  ;;  %1513 = vmatmul.bf16.gmra.mxu1 %v3305_v13 }
  0xdf   : > { %1334 = vmatmul.bf16.gmra.mxu2 %v3541_v22  ;;  %v3876_v22 = vld [vmem:[%s4098_s24 + $0x2b4] sm:$0xf] }
  0xe1   : > { %v1147_v23 = vpop.f32.mrf.mxu0 }
  0xe2   : > { %v1476_v24 = vpop.f32.mrf.mxu1 }
  0xe3   : > { %v4196_v25 = vadd.f32 %v1476_v24, %v1147_v23  ;;  %v3872_v23 = vld [vmem:[%s4098_s24 + $0x294] sm:$0xf]  ;;  %v3542_v24 = vld [vmem:[%s4098_s24 + $0x298] sm:$0xf0] }
  0xe4   : > { %v3545_v27 = vor.u32 %v3872_v23, %v3542_v24  ;;  %v3558_v23 = vld [vmem:[%s4098_s24 + $0x2b8] sm:$0xf0] }
  0xe5   : > { %7321 = vst [vmem:[#allocation9_spill] sm:$0xff] %v4196_v25  ;;  %v3561_v24 = vor.u32 %v3876_v22, %v3558_v23 }
  0xe6   : > { %1663 = vmatmul.bf16.gmra.mxu3 %v3545_v27 }
  0xe9   : > { %v1150_v33 = vpop.f32.mrf.mxu0 }
  0xea   : > { %v1479_v34 = vpop.f32.mrf.mxu1 }
  0xeb   : > { %v4202_v36 = vadd.f32 %v1479_v34, %v1150_v33  ;;  %v3332_v33 = vld [vmem:[%s4098_s24 + $0xf0] sm:$0xf]  ;;  %v3821_v34 = vld [vmem:[%s4098_s24 + $0xf4] sm:$0xf0] }
  0xec   : > { %1189 = vmatmul.bf16.gmra.mxu0 %v3309_v31  ;;  %v1295_v31 = vpop.f32.mrf.mxu2  ;;  %v3333_v40 = vor.u32 %v3821_v34, %v3332_v33  ;;  %v3348_v33 = vld [vmem:[%s4098_s24 + $0x110] sm:$0xf]  ;;  %v3825_v34 = vld [vmem:[%s4098_s24 + $0x114] sm:$0xf0] }
  0xed   : > { %7322 = vst [vmem:[#allocation10_spill] sm:$0xff] %v4202_v36  ;;  %1518 = vmatmul.bf16.gmra.mxu1 %v3313_v32  ;;  %v1624_v32 = vpop.f32.mrf.mxu3 }
  0xee   : > { %v4242_v39 = vadd.f32 %v1624_v32, %v1295_v31 }
  0xf0   : > { %7330 = vst [vmem:[#allocation18_spill] sm:$0xff] %v4242_v39  ;;  %v3676_v39 = vld [vmem:[%s4098_s24 + $0x3a0] sm:$0xf] }
  0xf1   : > { %v1152_v43 = vpop.f32.mrf.mxu0  ;;  %v3677_v10 = vor.u32 %v3907_v19, %v3676_v39  ;;  %v1781_v19 = vmul.f32 %v4166_v44, %v4166_v44  ;;  %v1784_v44 = vmul.f32 %v4184_v7, %v4184_v7 }
  0xf2   : > { %v1481_v45 = vpop.f32.mrf.mxu1 }
  0xf3   : > { %v4208_v46 = vadd.f32 %v1481_v45, %v1152_v43 }
  0xf4   : > { %v1297_v47 = vpop.f32.mrf.mxu2 }
  0xf5   : > { %7323 = vst [vmem:[#allocation11_spill] sm:$0xff] %v4208_v46  ;;  %v1626_v48 = vpop.f32.mrf.mxu3 }
  0xf6   : > { %v4246_v49 = vadd.f32 %v1626_v48, %v1297_v47 }
  0xf8   : > { %7332 = vst [vmem:[#allocation20_spill] sm:$0xff] %v4246_v49  ;;  %v3905_v49 = vld [vmem:[%s4098_s24 + $0x394] sm:$0xf0] }
  0xf9   : > { %v1155_v54 = vpop.f32.mrf.mxu0 }
  0xfa   : > { %v1484_v55 = vpop.f32.mrf.mxu1 }
  0xfb   : > { %v4214_v56 = vadd.f32 %v1484_v55, %v1155_v54  ;;  %v3874_v54 = vld [vmem:[%s4098_s24 + $0x2a4] sm:$0xf]  ;;  %v3550_v55 = vld [vmem:[%s4098_s24 + $0x2a8] sm:$0xf0] }
  0xfc   : > { %1194 = vmatmul.bf16.gmra.mxu0 %v3317_v51  ;;  %v3875_v51 = vld [vmem:[%s4098_s24 + $0x2a4] sm:$0xf0]  ;;  %v3553_v57 = vor.u32 %v3874_v54, %v3550_v55  ;;  %v1300_v61 = vpop.f32.mrf.mxu2  ;;  %v3564_v54 = vld [vmem:[%s4098_s24 + $0x2c0] sm:$0xf] }
  0xfd   : > { %7324 = vst [vmem:[#allocation12_spill] sm:$0xff] %v4214_v56  ;;  %1523 = vmatmul.bf16.gmra.mxu1 %v3321_v52  ;;  %v3549_v52 = vor.u32 %v3875_v51, %v3548_v50  ;;  %v1629_v63 = vpop.f32.mrf.mxu3  ;;  %v3879_v55 = vld [vmem:[%s4098_s24 + $0x2c4] sm:$0xf0] }
  0xfe   : > { %1668 = vmatmul.bf16.gmra.mxu3 %v3553_v57  ;;  %v4258_v5 = vadd.f32 %v1629_v63, %v1300_v61  ;;  %v3565_v57 = vor.u32 %v3879_v55, %v3564_v54  ;;  %v3828_v54 = vld [vmem:[%s4098_s24 + $0x134] sm:$0xf]  ;;  %v3366_v55 = vld [vmem:[%s4098_s24 + $0x138] sm:$0xf0] }
  0xff   : > { %1339 = vmatmul.bf16.gmra.mxu2 %v3549_v52 }
 0x100   : > { %7334 = vst [vmem:[#allocation22_spill] sm:$0xff] %v4258_v5  ;;  %v3668_v5 = vld [vmem:[%s4098_s24 + $0x390] sm:$0xf] }
 0x101   : > { %v1157_v0 = vpop.f32.mrf.mxu0 }
 0x102   : > { %v1486_v1 = vpop.f32.mrf.mxu1 }
 0x103   : > { %v4220_v2 = vadd.f32 %v1486_v1, %v1157_v0  ;;  %v3340_v0 = vld [vmem:[%s4098_s24 + $0x100] sm:$0xf]  ;;  %v3823_v1 = vld [vmem:[%s4098_s24 + $0x104] sm:$0xf0] }
 0x104   : > { %v3341_v6 = vor.u32 %v3823_v1, %v3340_v0 }
 0x105   : > { %7325 = vst [vmem:[#allocation13_spill] sm:$0xff] %v4220_v2 }
 0x109   : > { %v1160_v13 = vpop.f32.mrf.mxu0 }
 0x10a   : > { %v1489_v14 = vpop.f32.mrf.mxu1 }
 0x10b   : > { %v4228_v15 = vadd.f32 %v1489_v14, %v1160_v13  ;;  %v1302_v13 = vpop.f32.mrf.mxu2  ;;  %v1631_v14 = vpop.f32.mrf.mxu3 }
 0x10c   : > { %1199 = vmatmul.bf16.gmra.mxu0 %v3325_v11  ;;  %v4262_v17 = vadd.f32 %v1631_v14, %v1302_v13 }
 0x10d   : > { %7327 = vst [vmem:[#allocation15_spill] sm:$0xff] %v4228_v15  ;;  %1528 = vmatmul.bf16.gmra.mxu1 %v3329_v12 }
 0x10e   : > { %7336 = vst [vmem:[#allocation24_spill] sm:$0xff] %v4262_v17  ;;  %1673 = vmatmul.bf16.gmra.mxu3 %v3561_v24  ;;  %v3903_v17 = vld [vmem:[%s4098_s24 + $0x384] sm:$0xf0] }
 0x10f   : > { %1344 = vmatmul.bf16.gmra.mxu2 %v3557_v21 }
 0x111   : > { %v1162_v28 = vpop.f32.mrf.mxu0 }
 0x112   : > { %v1491_v29 = vpop.f32.mrf.mxu1 }
 0x113   : > { %v4236_v30 = vadd.f32 %v1491_v29, %v1162_v28  ;;  %v1305_v31 = vpop.f32.mrf.mxu2  ;;  %v1634_v32 = vpop.f32.mrf.mxu3 }
 0x115   : > { %7329 = vst [vmem:[#allocation17_spill] sm:$0xff] %v4236_v30 }
 0x119   : > { %v1165_v42 = vpop.f32.mrf.mxu0 }
 0x11a   : > { %v1494_v43 = vpop.f32.mrf.mxu1 }
 0x11b   : > { %v4244_v45 = vadd.f32 %v1494_v43, %v1165_v42  ;;  %v3353_v42 = vor.u32 %v3824_v37, %v3350_v38  ;;  %v1307_v50 = vpop.f32.mrf.mxu2  ;;  %v1636_v51 = vpop.f32.mrf.mxu3 }
 0x11c   : > { %1204 = vmatmul.bf16.gmra.mxu0 %v3333_v40  ;;  %v4274_v40 = vadd.f32 %v1634_v32, %v1305_v31  ;;  %v4278_v52 = vadd.f32 %v1636_v51, %v1307_v50  ;;  %v3881_v31 = vld [vmem:[%s4098_s24 + $0x2d4] sm:$0xf0]  ;;  %v3364_v50 = vld [vmem:[%s4098_s24 + $0x130] sm:$0xf] }
 0x11d   : > { %7331 = vst [vmem:[#allocation19_spill] sm:$0xff] %v4244_v45  ;;  %1533 = vmatmul.bf16.gmra.mxu1 %v3337_v41  ;;  %v3349_v41 = vor.u32 %v3825_v34, %v3348_v33  ;;  %v3880_v33 = vld [vmem:[%s4098_s24 + $0x2d4] sm:$0xf]  ;;  %v3574_v34 = vld [vmem:[%s4098_s24 + $0x2d8] sm:$0xf0] }
 0x11e   : > { %7338 = vst [vmem:[#allocation26_spill] sm:$0xff] %v4274_v40  ;;  %v3577_v37 = vor.u32 %v3880_v33, %v3574_v34  ;;  %v3829_v51 = vld [vmem:[%s4098_s24 + $0x134] sm:$0xf0]  ;;  %v3831_v33 = vld [vmem:[%s4098_s24 + $0x144] sm:$0xf0] }
 0x11f   : > { %7340 = vst [vmem:[#allocation28_spill] sm:$0xff] %v4278_v52  ;;  %1349 = vmatmul.bf16.gmra.mxu2 %v3565_v57  ;;  %v3830_v34 = vld [vmem:[%s4098_s24 + $0x144] sm:$0xf]  ;;  %v3901_v52 = vld [vmem:[%s4098_s24 + $0x374] sm:$0xf0] }
 0x120   : > { %v3660_v40 = vld [vmem:[%s4098_s24 + $0x380] sm:$0xf] }
 0x121   : > { %v1167_v58 = vpop.f32.mrf.mxu0 }
 0x122   : > { %v1496_v59 = vpop.f32.mrf.mxu1 }
 0x123   : > { %v4252_v60 = vadd.f32 %v1496_v59, %v1167_v58  ;;  %v3878_v58 = vld [vmem:[%s4098_s24 + $0x2c4] sm:$0xf]  ;;  %v3566_v59 = vld [vmem:[%s4098_s24 + $0x2c8] sm:$0xf0]  ;;  %v1310_v3 = vpop.f32.mrf.mxu2  ;;  %v1639_v4 = vpop.f32.mrf.mxu3 }
 0x124   : > { %v3569_v61 = vor.u32 %v3878_v58, %v3566_v59  ;;  %v4290_v13 = vadd.f32 %v1639_v4, %v1310_v3  ;;  %v3365_v58 = vor.u32 %v3829_v51, %v3364_v50  ;;  %v3369_v59 = vor.u32 %v3828_v54, %v3366_v55 }
 0x125   : > { %7333 = vst [vmem:[#allocation21_spill] sm:$0xff] %v4252_v60 }
 0x126   : > { %1678 = vmatmul.bf16.gmra.mxu3 %v3569_v61  ;;  %7342 = vst [vmem:[#allocation30_spill] sm:$0xff] %v4290_v13  ;;  %v3652_v13 = vld [vmem:[%s4098_s24 + $0x370] sm:$0xf] }
 0x129   : > { %v1170_v9 = vpop.f32.mrf.mxu0 }
 0x12a   : > { %v1499_v11 = vpop.f32.mrf.mxu1 }
 0x12b   : > { %v4260_v12 = vadd.f32 %v1499_v11, %v1170_v9  ;;  %v3826_v9 = vld [vmem:[%s4098_s24 + $0x124] sm:$0xf]  ;;  %v3358_v11 = vld [vmem:[%s4098_s24 + $0x128] sm:$0xf0]  ;;  %v1312_v23 = vpop.f32.mrf.mxu2  ;;  %v1641_v24 = vpop.f32.mrf.mxu3 }
 0x12c   : > { %1209 = vmatmul.bf16.gmra.mxu0 %v3341_v6  ;;  %v3356_v6 = vld [vmem:[%s4098_s24 + $0x120] sm:$0xf]  ;;  %v3361_v18 = vor.u32 %v3826_v9, %v3358_v11  ;;  %v3883_v9 = vld [vmem:[%s4098_s24 + $0x2e4] sm:$0xf0] }
 0x12d   : > { %7335 = vst [vmem:[#allocation23_spill] sm:$0xff] %v4260_v12  ;;  %1538 = vmatmul.bf16.gmra.mxu1 %v3345_v8  ;;  %v3827_v8 = vld [vmem:[%s4098_s24 + $0x124] sm:$0xf0] }
 0x12e   : > { %v3357_v14 = vor.u32 %v3827_v8, %v3356_v6  ;;  %v3580_v8 = vld [vmem:[%s4098_s24 + $0x2e0] sm:$0xf] }
 0x12f   : > { %v3581_v11 = vor.u32 %v3883_v9, %v3580_v8 }
 0x131   : > { %v1172_v27 = vpop.f32.mrf.mxu0 }
 0x132   : > { %v1501_v28 = vpop.f32.mrf.mxu1 }
 0x133   : > { %v4268_v29 = vadd.f32 %v1501_v28, %v1172_v27  ;;  %v4294_v27 = vadd.f32 %v1641_v24, %v1312_v23  ;;  %v3572_v28 = vld [vmem:[%s4098_s24 + $0x2d0] sm:$0xf] }
 0x134   : > { %v3573_v32 = vor.u32 %v3881_v31, %v3572_v28 }
 0x135   : > { %7337 = vst [vmem:[#allocation25_spill] sm:$0xff] %v4268_v29 }
 0x136   : > { %7344 = vst [vmem:[#allocation32_spill] sm:$0xff] %v4294_v27  ;;  %1354 = vmatmul.bf16.gmra.mxu2 %v3573_v32  ;;  %1683 = vmatmul.bf16.gmra.mxu3 %v3577_v37  ;;  %v3372_v32 = vld [vmem:[%s4098_s24 + $0x140] sm:$0xf]  ;;  %v3374_v37 = vld [vmem:[%s4098_s24 + $0x148] sm:$0xf0] }
 0x137   : > { %v3899_v27 = vld [vmem:[%s4098_s24 + $0x364] sm:$0xf0] }
 0x139   : > { %v1175_v43 = vpop.f32.mrf.mxu0 }
 0x13a   : > { %v1504_v47 = vpop.f32.mrf.mxu1 }
 0x13b   : > { %v4276_v48 = vadd.f32 %v1504_v47, %v1175_v43  ;;  %v1315_v43 = vpop.f32.mrf.mxu2  ;;  %v1644_v47 = vpop.f32.mrf.mxu3 }
 0x13c   : > { %1214 = vmatmul.bf16.gmra.mxu0 %v3349_v41  ;;  %v4306_v57 = vadd.f32 %v1644_v47, %v1315_v43  ;;  %v3377_v43 = vor.u32 %v3830_v34, %v3374_v37 }
 0x13d   : > { %7339 = vst [vmem:[#allocation27_spill] sm:$0xff] %v4276_v48  ;;  %1543 = vmatmul.bf16.gmra.mxu1 %v3353_v42 }
 0x13e   : > { %7346 = vst [vmem:[#allocation34_spill] sm:$0xff] %v4306_v57  ;;  %v3644_v57 = vld [vmem:[%s4098_s24 + $0x360] sm:$0xf] }
 0x141   : > { %v1177_v63 = vpop.f32.mrf.mxu0 }
 0x142   : > { %v1506_v0 = vpop.f32.mrf.mxu1 }
 0x143   : > { %v4284_v1 = vadd.f32 %v1506_v0, %v1177_v63  ;;  %v1317_v3 = vpop.f32.mrf.mxu2  ;;  %v1646_v4 = vpop.f32.mrf.mxu3 }
 0x144   : > { %v4310_v6 = vadd.f32 %v1646_v4, %v1317_v3  ;;  %v3884_v3 = vld [vmem:[%s4098_s24 + $0x2f4] sm:$0xf]  ;;  %v3590_v4 = vld [vmem:[%s4098_s24 + $0x2f8] sm:$0xf0] }
 0x145   : > { %7341 = vst [vmem:[#allocation29_spill] sm:$0xff] %v4284_v1  ;;  %v3593_v8 = vor.u32 %v3884_v3, %v3590_v4  ;;  %v3598_v3 = vld [vmem:[%s4098_s24 + $0x308] sm:$0xf0] }
 0x146   : > { %7348 = vst [vmem:[#allocation36_spill] sm:$0xff] %v4310_v6  ;;  %1359 = vmatmul.bf16.gmra.mxu2 %v3581_v11  ;;  %v3897_v6 = vld [vmem:[%s4098_s24 + $0x354] sm:$0xf0] }
 0x149   : > { %v1180_v20 = vpop.f32.mrf.mxu0 }
 0x14a   : > { %v1509_v21 = vpop.f32.mrf.mxu1 }
 0x14b   : > { %v4292_v22 = vadd.f32 %v1509_v21, %v1180_v20  ;;  %v1320_v28 = vpop.f32.mrf.mxu2  ;;  %v1649_v31 = vpop.f32.mrf.mxu3 }
 0x14c   : > { %1219 = vmatmul.bf16.gmra.mxu0 %v3357_v14  ;;  %v3882_v14 = vld [vmem:[%s4098_s24 + $0x2e4] sm:$0xf] }
 0x14d   : > { %7343 = vst [vmem:[#allocation31_spill] sm:$0xff] %v4292_v22  ;;  %1548 = vmatmul.bf16.gmra.mxu1 %v3361_v18  ;;  %v3582_v18 = vld [vmem:[%s4098_s24 + $0x2e8] sm:$0xf0] }
 0x14e   : > { %v3585_v20 = vor.u32 %v3882_v14, %v3582_v18 }
 0x150   : > { %1688 = vmatmul.bf16.gmra.mxu3 %v3585_v20 }
 0x151   : > { %v1182_v38 = vpop.f32.mrf.mxu0 }
 0x152   : > { %v1511_v41 = vpop.f32.mrf.mxu1 }
 0x153   : > { %v4300_v42 = vadd.f32 %v1511_v41, %v1182_v38  ;;  %v4322_v38 = vadd.f32 %v1649_v31, %v1320_v28  ;;  %v3373_v41 = vor.u32 %v3831_v33, %v3372_v32  ;;  %v1322_v54 = vpop.f32.mrf.mxu2  ;;  %v1651_v55 = vpop.f32.mrf.mxu3  ;;  %v3832_v28 = vld [vmem:[%s4098_s24 + $0x154] sm:$0xf]  ;;  %v3382_v31 = vld [vmem:[%s4098_s24 + $0x158] sm:$0xf0] }
 0x154   : > { %v3385_v34 = vor.u32 %v3832_v28, %v3382_v31  ;;  %v3834_v28 = vld [vmem:[%s4098_s24 + $0x164] sm:$0xf]  ;;  %v3390_v31 = vld [vmem:[%s4098_s24 + $0x168] sm:$0xf0] }
 0x155   : > { %7345 = vst [vmem:[#allocation33_spill] sm:$0xff] %v4300_v42 }
 0x156   : > { %7350 = vst [vmem:[#allocation38_spill] sm:$0xff] %v4322_v38  ;;  %v3636_v38 = vld [vmem:[%s4098_s24 + $0x350] sm:$0xf] }
 0x159   : > { %v1185_v61 = vpop.f32.mrf.mxu0 }
 0x15a   : > { %v1514_v63 = vpop.f32.mrf.mxu1 }
 0x15b   : > { %v4308_v0 = vadd.f32 %v1514_v63, %v1185_v61  ;;  %v3885_v61 = vld [vmem:[%s4098_s24 + $0x2f4] sm:$0xf0]  ;;  %v1325_v18 = vpop.f32.mrf.mxu2  ;;  %v1654_v20 = vpop.f32.mrf.mxu3 }
 0x15c   : > { %1224 = vmatmul.bf16.gmra.mxu0 %v3365_v58  ;;  %v4326_v58 = vadd.f32 %v1651_v55, %v1322_v54  ;;  %v4338_v32 = vadd.f32 %v1654_v20, %v1325_v18  ;;  %v3596_v55 = vld [vmem:[%s4098_s24 + $0x300] sm:$0xf] }
 0x15d   : > { %7347 = vst [vmem:[#allocation35_spill] sm:$0xff] %v4308_v0  ;;  %1553 = vmatmul.bf16.gmra.mxu1 %v3369_v59  ;;  %v3588_v59 = vld [vmem:[%s4098_s24 + $0x2f0] sm:$0xf] }
 0x15e   : > { %7352 = vst [vmem:[#allocation40_spill] sm:$0xff] %v4326_v58  ;;  %v3589_v63 = vor.u32 %v3885_v61, %v3588_v59  ;;  %v3887_v59 = vld [vmem:[%s4098_s24 + $0x304] sm:$0xf0] }
 0x15f   : > { %7354 = vst [vmem:[#allocation42_spill] sm:$0xff] %v4338_v32  ;;  %v3597_v61 = vor.u32 %v3887_v59, %v3596_v55  ;;  %v3628_v32 = vld [vmem:[%s4098_s24 + $0x340] sm:$0xf]  ;;  %v3895_v58 = vld [vmem:[%s4098_s24 + $0x344] sm:$0xf0] }
 0x160   : > { %1364 = vmatmul.bf16.gmra.mxu2 %v3589_v63  ;;  %1693 = vmatmul.bf16.gmra.mxu3 %v3593_v8  ;;  %v3886_v63 = vld [vmem:[%s4098_s24 + $0x304] sm:$0xf] }
 0x161   : > { %v1187_v21 = vpop.f32.mrf.mxu0  ;;  %v3601_v4 = vor.u32 %v3886_v63, %v3598_v3  ;;  %v3604_v63 = vld [vmem:[%s4098_s24 + $0x310] sm:$0xf]  ;;  %v3889_v3 = vld [vmem:[%s4098_s24 + $0x314] sm:$0xf0] }
 0x162   : > { %v1516_v23 = vpop.f32.mrf.mxu1 }
 0x163   : > { %v4316_v24 = vadd.f32 %v1516_v23, %v1187_v21  ;;  %v3380_v21 = vld [vmem:[%s4098_s24 + $0x150] sm:$0xf]  ;;  %v3833_v23 = vld [vmem:[%s4098_s24 + $0x154] sm:$0xf0] }
 0x164   : > { %v3381_v33 = vor.u32 %v3833_v23, %v3380_v21  ;;  %v3388_v21 = vld [vmem:[%s4098_s24 + $0x160] sm:$0xf]  ;;  %v3835_v23 = vld [vmem:[%s4098_s24 + $0x164] sm:$0xf0] }
 0x165   : > { %7349 = vst [vmem:[#allocation37_spill] sm:$0xff] %v4316_v24 }
 0x169   : > { %v1190_v47 = vpop.f32.mrf.mxu0 }
 0x16a   : > { %v1519_v50 = vpop.f32.mrf.mxu1 }
 0x16b   : > { %v4324_v51 = vadd.f32 %v1519_v50, %v1190_v47  ;;  %v1327_v47 = vpop.f32.mrf.mxu2  ;;  %v1656_v50 = vpop.f32.mrf.mxu3 }
 0x16c   : > { %1229 = vmatmul.bf16.gmra.mxu0 %v3373_v41  ;;  %v4342_v54 = vadd.f32 %v1656_v50, %v1327_v47 }
 0x16d   : > { %7351 = vst [vmem:[#allocation39_spill] sm:$0xff] %v4324_v51  ;;  %1558 = vmatmul.bf16.gmra.mxu1 %v3377_v43 }
 0x16e   : > { %7356 = vst [vmem:[#allocation44_spill] sm:$0xff] %v4342_v54  ;;  %v3893_v54 = vld [vmem:[%s4098_s24 + $0x334] sm:$0xf0] }
 0x170   : > { %1369 = vmatmul.bf16.gmra.mxu2 %v3597_v61  ;;  %1698 = vmatmul.bf16.gmra.mxu3 %v3601_v4  ;;  %v3605_v4 = vor.u32 %v3889_v3, %v3604_v63 }
 0x171   : > { %v1192_v9 = vpop.f32.mrf.mxu0 }
 0x172   : > { %v1521_v11 = vpop.f32.mrf.mxu1 }
 0x173   : > { %v4332_v14 = vadd.f32 %v1521_v11, %v1192_v9  ;;  %v1330_v18 = vpop.f32.mrf.mxu2  ;;  %v1659_v20 = vpop.f32.mrf.mxu3 }
 0x175   : > { %7353 = vst [vmem:[#allocation41_spill] sm:$0xff] %v4332_v14 }
 0x179   : > { %v1195_v37 = vpop.f32.mrf.mxu0 }
 0x17a   : > { %v1524_v41 = vpop.f32.mrf.mxu1 }
 0x17b   : > { %v4340_v43 = vadd.f32 %v1524_v41, %v1195_v37  ;;  %v3393_v37 = vor.u32 %v3834_v28, %v3390_v31  ;;  %v1332_v55 = vpop.f32.mrf.mxu2  ;;  %v1661_v59 = vpop.f32.mrf.mxu3 }
 0x17c   : > { %1234 = vmatmul.bf16.gmra.mxu0 %v3381_v33  ;;  %v4354_v33 = vadd.f32 %v1659_v20, %v1330_v18  ;;  %v4358_v61 = vadd.f32 %v1661_v59, %v1332_v55  ;;  %v3836_v55 = vld [vmem:[%s4098_s24 + $0x174] sm:$0xf] }
 0x17d   : > { %7355 = vst [vmem:[#allocation43_spill] sm:$0xff] %v4340_v43  ;;  %1563 = vmatmul.bf16.gmra.mxu1 %v3385_v34  ;;  %v3389_v34 = vor.u32 %v3835_v23, %v3388_v21 }
 0x17e   : > { %7358 = vst [vmem:[#allocation46_spill] sm:$0xff] %v4354_v33  ;;  %v3620_v33 = vld [vmem:[%s4098_s24 + $0x330] sm:$0xf] }
 0x17f   : > { %7360 = vst [vmem:[#allocation48_spill] sm:$0xff] %v4358_v61  ;;  %v3891_v61 = vld [vmem:[%s4098_s24 + $0x324] sm:$0xf0] }
 0x180   : > { %1374 = vmatmul.bf16.gmra.mxu2 %v3605_v4 }
 0x181   : > { %v1197_v8 = vpop.f32.mrf.mxu0 }
 0x182   : > { %v1526_v9 = vpop.f32.mrf.mxu1 }
 0x183   : > { %v4348_v11 = vadd.f32 %v1526_v9, %v1197_v8  ;;  %v3888_v8 = vld [vmem:[%s4098_s24 + $0x314] sm:$0xf]  ;;  %v3606_v9 = vld [vmem:[%s4098_s24 + $0x318] sm:$0xf0]  ;;  %v1335_v28 = vpop.f32.mrf.mxu2  ;;  %v1664_v31 = vpop.f32.mrf.mxu3 }
 0x184   : > { %v3609_v18 = vor.u32 %v3888_v8, %v3606_v9 }
 0x185   : > { %7357 = vst [vmem:[#allocation45_spill] sm:$0xff] %v4348_v11 }
 0x186   : > { %1703 = vmatmul.bf16.gmra.mxu3 %v3609_v18 }
 0x189   : > { %v1200_v41 = vpop.f32.mrf.mxu0 }
 0x18a   : > { %v1529_v47 = vpop.f32.mrf.mxu1 }
 0x18b   : > { %v4356_v50 = vadd.f32 %v1529_v47, %v1200_v41  ;;  %v3396_v41 = vld [vmem:[%s4098_s24 + $0x170] sm:$0xf]  ;;  %v3837_v47 = vld [vmem:[%s4098_s24 + $0x174] sm:$0xf0]  ;;  %v1337_v9 = vpop.f32.mrf.mxu2  ;;  %v1666_v18 = vpop.f32.mrf.mxu3 }
 0x18c   : > { %1239 = vmatmul.bf16.gmra.mxu0 %v3389_v34  ;;  %v3398_v34 = vld [vmem:[%s4098_s24 + $0x178] sm:$0xf0]  ;;  %v3397_v59 = vor.u32 %v3837_v47, %v3396_v41  ;;  %v3614_v41 = vld [vmem:[%s4098_s24 + $0x328] sm:$0xf0] }
 0x18d   : > { %7359 = vst [vmem:[#allocation47_spill] sm:$0xff] %v4356_v50  ;;  %1568 = vmatmul.bf16.gmra.mxu1 %v3393_v37  ;;  %v4370_v37 = vadd.f32 %v1664_v31, %v1335_v28  ;;  %v3401_v63 = vor.u32 %v3836_v55, %v3398_v34  ;;  %v3890_v31 = vld [vmem:[%s4098_s24 + $0x324] sm:$0xf] }
 0x18e   : > { %v3617_v47 = vor.u32 %v3890_v31, %v3614_v41 }
 0x18f   : > { %7362 = vst [vmem:[#allocation50_spill] sm:$0xff] %v4370_v37  ;;  %v3838_v37 = vld [vmem:[%s4098_s24 + $0x184] sm:$0xf] }
 0x191   : > { %v1202_v20 = vpop.f32.mrf.mxu0 }
 0x192   : > { %v1531_v21 = vpop.f32.mrf.mxu1 }
 0x193   : > { %v4364_v23 = vadd.f32 %v1531_v21, %v1202_v20  ;;  %v4374_v20 = vadd.f32 %v1666_v18, %v1337_v9  ;;  %v3612_v21 = vld [vmem:[%s4098_s24 + $0x320] sm:$0xf]  ;;  %v1669_v9 = vpop.f32.mrf.mxu3 }
 0x194   : > { %v3613_v28 = vor.u32 %v3891_v61, %v3612_v21  ;;  %v3404_v18 = vld [vmem:[%s4098_s24 + $0x180] sm:$0xf] }
 0x195   : > { %7361 = vst [vmem:[#allocation49_spill] sm:$0xff] %v4364_v23 }
 0x196   : > { %7364 = vst [vmem:[#allocation52_spill] sm:$0xff] %v4374_v20  ;;  %1379 = vmatmul.bf16.gmra.mxu2 %v3613_v28  ;;  %1708 = vmatmul.bf16.gmra.mxu3 %v3617_v47  ;;  %v3839_v20 = vld [vmem:[%s4098_s24 + $0x184] sm:$0xf0] }
 0x199   : > { %v1205_v3 = vpop.f32.mrf.mxu0 }
 0x19a   : > { %v1534_v4 = vpop.f32.mrf.mxu1 }
 0x19b   : > { %v4372_v8 = vadd.f32 %v1534_v4, %v1205_v3  ;;  %v1340_v4 = vpop.f32.mrf.mxu2 }
 0x19c   : > { %1244 = vmatmul.bf16.gmra.mxu0 %v3397_v59  ;;  %v3406_v59 = vld [vmem:[%s4098_s24 + $0x188] sm:$0xf0]  ;;  %v4386_v61 = vadd.f32 %v1669_v9, %v1340_v4  ;;  %v3621_v4 = vor.u32 %v3893_v54, %v3620_v33  ;;  %v3892_v9 = vld [vmem:[%s4098_s24 + $0x334] sm:$0xf] }
 0x19d   : > { %7363 = vst [vmem:[#allocation51_spill] sm:$0xff] %v4372_v8  ;;  %1573 = vmatmul.bf16.gmra.mxu1 %v3401_v63  ;;  %v3405_v63 = vor.u32 %v3839_v20, %v3404_v18  ;;  %v3409_v21 = vor.u32 %v3838_v37, %v3406_v59  ;;  %v3622_v20 = vld [vmem:[%s4098_s24 + $0x338] sm:$0xf0] }
 0x19e   : > { %7366 = vst [vmem:[#allocation54_spill] sm:$0xff] %v4386_v61  ;;  %v3625_v37 = vor.u32 %v3892_v9, %v3622_v20  ;;  %v3840_v61 = vld [vmem:[%s4098_s24 + $0x194] sm:$0xf] }
 0x1a1   : > { %v1207_v55 = vpop.f32.mrf.mxu0 }
 0x1a2   : > { %v1536_v34 = vpop.f32.mrf.mxu1 }
 0x1a3   : > { %v4380_v3 = vadd.f32 %v1536_v34, %v1207_v55  ;;  %v1342_v47 = vpop.f32.mrf.mxu2  ;;  %v1671_v55 = vpop.f32.mrf.mxu3 }
 0x1a4   : > { %v4390_v34 = vadd.f32 %v1671_v55, %v1342_v47  ;;  %v3412_v55 = vld [vmem:[%s4098_s24 + $0x190] sm:$0xf] }
 0x1a5   : > { %7365 = vst [vmem:[#allocation53_spill] sm:$0xff] %v4380_v3 }
 0x1a6   : > { %7368 = vst [vmem:[#allocation56_spill] sm:$0xff] %v4390_v34  ;;  %1384 = vmatmul.bf16.gmra.mxu2 %v3621_v4  ;;  %1713 = vmatmul.bf16.gmra.mxu3 %v3625_v37  ;;  %v3841_v34 = vld [vmem:[%s4098_s24 + $0x194] sm:$0xf0] }
 0x1a7   : > { %v3413_v33 = vor.u32 %v3841_v34, %v3412_v55  ;;  %v3630_v34 = vld [vmem:[%s4098_s24 + $0x348] sm:$0xf0] }
 0x1a9   : > { %v1210_v28 = vpop.f32.mrf.mxu0 }
 0x1aa   : > { %v1539_v31 = vpop.f32.mrf.mxu1 }
 0x1ab   : > { %v4388_v41 = vadd.f32 %v1539_v31, %v1210_v28  ;;  %v1345_v31 = vpop.f32.mrf.mxu2  ;;  %v1674_v47 = vpop.f32.mrf.mxu3 }
 0x1ac   : > { %1249 = vmatmul.bf16.gmra.mxu0 %v3405_v63  ;;  %v3414_v63 = vld [vmem:[%s4098_s24 + $0x198] sm:$0xf0]  ;;  %v4402_v54 = vadd.f32 %v1674_v47, %v1345_v31  ;;  %v3629_v31 = vor.u32 %v3895_v58, %v3628_v32  ;;  %v3894_v47 = vld [vmem:[%s4098_s24 + $0x344] sm:$0xf] }
 0x1ad   : > { %7367 = vst [vmem:[#allocation55_spill] sm:$0xff] %v4388_v41  ;;  %1578 = vmatmul.bf16.gmra.mxu1 %v3409_v21  ;;  %v3417_v21 = vor.u32 %v3840_v61, %v3414_v63  ;;  %v3633_v61 = vor.u32 %v3894_v47, %v3630_v34 }
 0x1ae   : > { %7370 = vst [vmem:[#allocation58_spill] sm:$0xff] %v4402_v54  ;;  %v3842_v54 = vld [vmem:[%s4098_s24 + $0x1a4] sm:$0xf] }
 0x1b1   : > { %v1212_v18 = vpop.f32.mrf.mxu0 }
 0x1b2   : > { %v1541_v59 = vpop.f32.mrf.mxu1 }
 0x1b3   : > { %v4396_v28 = vadd.f32 %v1541_v59, %v1212_v18  ;;  %v1347_v37 = vpop.f32.mrf.mxu2  ;;  %v1676_v18 = vpop.f32.mrf.mxu3 }
 0x1b4   : > { %v4406_v59 = vadd.f32 %v1676_v18, %v1347_v37  ;;  %v3420_v18 = vld [vmem:[%s4098_s24 + $0x1a0] sm:$0xf] }
 0x1b5   : > { %7369 = vst [vmem:[#allocation57_spill] sm:$0xff] %v4396_v28 }
 0x1b6   : > { %7372 = vst [vmem:[#allocation60_spill] sm:$0xff] %v4406_v59  ;;  %1389 = vmatmul.bf16.gmra.mxu2 %v3629_v31  ;;  %1718 = vmatmul.bf16.gmra.mxu3 %v3633_v61  ;;  %v3843_v59 = vld [vmem:[%s4098_s24 + $0x1a4] sm:$0xf0] }
 0x1b7   : > { %v3421_v32 = vor.u32 %v3843_v59, %v3420_v18  ;;  %v3638_v59 = vld [vmem:[%s4098_s24 + $0x358] sm:$0xf0] }
 0x1b9   : > { %v1215_v4 = vpop.f32.mrf.mxu0 }
 0x1ba   : > { %v1544_v9 = vpop.f32.mrf.mxu1 }
 0x1bb   : > { %v4404_v20 = vadd.f32 %v1544_v9, %v1215_v4  ;;  %v1350_v9 = vpop.f32.mrf.mxu2  ;;  %v1679_v37 = vpop.f32.mrf.mxu3 }
 0x1bc   : > { %1254 = vmatmul.bf16.gmra.mxu0 %v3413_v33  ;;  %v3422_v33 = vld [vmem:[%s4098_s24 + $0x1a8] sm:$0xf0]  ;;  %v4418_v58 = vadd.f32 %v1679_v37, %v1350_v9  ;;  %v3637_v9 = vor.u32 %v3897_v6, %v3636_v38  ;;  %v3896_v37 = vld [vmem:[%s4098_s24 + $0x354] sm:$0xf] }
 0x1bd   : > { %7371 = vst [vmem:[#allocation59_spill] sm:$0xff] %v4404_v20  ;;  %1583 = vmatmul.bf16.gmra.mxu1 %v3417_v21  ;;  %v3425_v21 = vor.u32 %v3842_v54, %v3422_v33  ;;  %v3641_v54 = vor.u32 %v3896_v37, %v3638_v59 }
 0x1be   : > { %7374 = vst [vmem:[#allocation62_spill] sm:$0xff] %v4418_v58  ;;  %v3844_v58 = vld [vmem:[%s4098_s24 + $0x1b4] sm:$0xf] }
 0x1c1   : > { %v1217_v55 = vpop.f32.mrf.mxu0 }
 0x1c2   : > { %v1546_v63 = vpop.f32.mrf.mxu1 }
 0x1c3   : > { %v4412_v4 = vadd.f32 %v1546_v63, %v1217_v55  ;;  %v1352_v61 = vpop.f32.mrf.mxu2  ;;  %v1681_v55 = vpop.f32.mrf.mxu3 }
 0x1c4   : > { %v4422_v63 = vadd.f32 %v1681_v55, %v1352_v61  ;;  %v3428_v55 = vld [vmem:[%s4098_s24 + $0x1b0] sm:$0xf] }
 0x1c5   : > { %7373 = vst [vmem:[#allocation61_spill] sm:$0xff] %v4412_v4 }
 0x1c6   : > { %7376 = vst [vmem:[#allocation64_spill] sm:$0xff] %v4422_v63  ;;  %1394 = vmatmul.bf16.gmra.mxu2 %v3637_v9  ;;  %1723 = vmatmul.bf16.gmra.mxu3 %v3641_v54  ;;  %v3845_v63 = vld [vmem:[%s4098_s24 + $0x1b4] sm:$0xf0] }
 0x1c7   : > { %v3429_v38 = vor.u32 %v3845_v63, %v3428_v55  ;;  %v3646_v63 = vld [vmem:[%s4098_s24 + $0x368] sm:$0xf0] }
 0x1c9   : > { %v1220_v31 = vpop.f32.mrf.mxu0 }
 0x1ca   : > { %v1549_v47 = vpop.f32.mrf.mxu1 }
 0x1cb   : > { %v4420_v34 = vadd.f32 %v1549_v47, %v1220_v31  ;;  %v1355_v47 = vpop.f32.mrf.mxu2  ;;  %v1684_v61 = vpop.f32.mrf.mxu3 }
 0x1cc   : > { %1259 = vmatmul.bf16.gmra.mxu0 %v3421_v32  ;;  %v3430_v32 = vld [vmem:[%s4098_s24 + $0x1b8] sm:$0xf0]  ;;  %v4434_v6 = vadd.f32 %v1684_v61, %v1355_v47  ;;  %v3645_v47 = vor.u32 %v3899_v27, %v3644_v57  ;;  %v3898_v61 = vld [vmem:[%s4098_s24 + $0x364] sm:$0xf] }
 0x1cd   : > { %7375 = vst [vmem:[#allocation63_spill] sm:$0xff] %v4420_v34  ;;  %1588 = vmatmul.bf16.gmra.mxu1 %v3425_v21  ;;  %v3433_v21 = vor.u32 %v3844_v58, %v3430_v32  ;;  %v3649_v58 = vor.u32 %v3898_v61, %v3646_v63 }
 0x1ce   : > { %7378 = vst [vmem:[#allocation66_spill] sm:$0xff] %v4434_v6  ;;  %v3846_v6 = vld [vmem:[%s4098_s24 + $0x1c4] sm:$0xf] }
 0x1d1   : > { %v1222_v18 = vpop.f32.mrf.mxu0 }
 0x1d2   : > { %v1551_v33 = vpop.f32.mrf.mxu1 }
 0x1d3   : > { %v4428_v31 = vadd.f32 %v1551_v33, %v1222_v18  ;;  %v1357_v54 = vpop.f32.mrf.mxu2  ;;  %v1686_v18 = vpop.f32.mrf.mxu3 }
 0x1d4   : > { %v4438_v33 = vadd.f32 %v1686_v18, %v1357_v54  ;;  %v3436_v18 = vld [vmem:[%s4098_s24 + $0x1c0] sm:$0xf] }
 0x1d5   : > { %7377 = vst [vmem:[#allocation65_spill] sm:$0xff] %v4428_v31 }
 0x1d6   : > { %7380 = vst [vmem:[#allocation68_spill] sm:$0xff] %v4438_v33  ;;  %1399 = vmatmul.bf16.gmra.mxu2 %v3645_v47  ;;  %1728 = vmatmul.bf16.gmra.mxu3 %v3649_v58  ;;  %v3847_v33 = vld [vmem:[%s4098_s24 + $0x1c4] sm:$0xf0] }
 0x1d7   : > { %v3437_v57 = vor.u32 %v3847_v33, %v3436_v18  ;;  %v3654_v33 = vld [vmem:[%s4098_s24 + $0x378] sm:$0xf0] }
 0x1d9   : > { %v1225_v9 = vpop.f32.mrf.mxu0 }
 0x1da   : > { %v1554_v37 = vpop.f32.mrf.mxu1 }
 0x1db   : > { %v4436_v59 = vadd.f32 %v1554_v37, %v1225_v9  ;;  %v1360_v37 = vpop.f32.mrf.mxu2  ;;  %v1689_v54 = vpop.f32.mrf.mxu3 }
 0x1dc   : > { %1264 = vmatmul.bf16.gmra.mxu0 %v3429_v38  ;;  %v3438_v38 = vld [vmem:[%s4098_s24 + $0x1c8] sm:$0xf0]  ;;  %v4450_v27 = vadd.f32 %v1689_v54, %v1360_v37  ;;  %v3653_v37 = vor.u32 %v3901_v52, %v3652_v13  ;;  %v3900_v54 = vld [vmem:[%s4098_s24 + $0x374] sm:$0xf] }
 0x1dd   : > { %7379 = vst [vmem:[#allocation67_spill] sm:$0xff] %v4436_v59  ;;  %1593 = vmatmul.bf16.gmra.mxu1 %v3433_v21  ;;  %v3441_v21 = vor.u32 %v3846_v6, %v3438_v38  ;;  %v3657_v6 = vor.u32 %v3900_v54, %v3654_v33 }
 0x1de   : > { %7382 = vst [vmem:[#allocation70_spill] sm:$0xff] %v4450_v27  ;;  %v3848_v27 = vld [vmem:[%s4098_s24 + $0x1d4] sm:$0xf] }
 0x1e1   : > { %v1227_v55 = vpop.f32.mrf.mxu0 }
 0x1e2   : > { %v1556_v32 = vpop.f32.mrf.mxu1 }
 0x1e3   : > { %v4444_v9 = vadd.f32 %v1556_v32, %v1227_v55  ;;  %v1362_v58 = vpop.f32.mrf.mxu2  ;;  %v1691_v55 = vpop.f32.mrf.mxu3 }
 0x1e4   : > { %v4454_v32 = vadd.f32 %v1691_v55, %v1362_v58  ;;  %v3444_v55 = vld [vmem:[%s4098_s24 + $0x1d0] sm:$0xf] }
 0x1e5   : > { %7381 = vst [vmem:[#allocation69_spill] sm:$0xff] %v4444_v9 }
 0x1e6   : > { %7384 = vst [vmem:[#allocation72_spill] sm:$0xff] %v4454_v32  ;;  %1404 = vmatmul.bf16.gmra.mxu2 %v3653_v37  ;;  %1733 = vmatmul.bf16.gmra.mxu3 %v3657_v6  ;;  %v3849_v32 = vld [vmem:[%s4098_s24 + $0x1d4] sm:$0xf0] }
 0x1e7   : > { %v3445_v13 = vor.u32 %v3849_v32, %v3444_v55  ;;  %v3662_v32 = vld [vmem:[%s4098_s24 + $0x388] sm:$0xf0] }
 0x1e9   : > { %v1230_v47 = vpop.f32.mrf.mxu0 }
 0x1ea   : > { %v1559_v61 = vpop.f32.mrf.mxu1 }
 0x1eb   : > { %v4452_v63 = vadd.f32 %v1559_v61, %v1230_v47  ;;  %v1365_v61 = vpop.f32.mrf.mxu2  ;;  %v1694_v58 = vpop.f32.mrf.mxu3 }
 0x1ec   : > { %1269 = vmatmul.bf16.gmra.mxu0 %v3437_v57  ;;  %v3446_v57 = vld [vmem:[%s4098_s24 + $0x1d8] sm:$0xf0]  ;;  %v4466_v52 = vadd.f32 %v1694_v58, %v1365_v61  ;;  %v3661_v61 = vor.u32 %v3903_v17, %v3660_v40  ;;  %v3902_v58 = vld [vmem:[%s4098_s24 + $0x384] sm:$0xf] }
 0x1ed   : > { %7383 = vst [vmem:[#allocation71_spill] sm:$0xff] %v4452_v63  ;;  %1598 = vmatmul.bf16.gmra.mxu1 %v3441_v21  ;;  %v3449_v21 = vor.u32 %v3848_v27, %v3446_v57  ;;  %v3665_v27 = vor.u32 %v3902_v58, %v3662_v32 }
 0x1ee   : > { %7386 = vst [vmem:[#allocation74_spill] sm:$0xff] %v4466_v52  ;;  %v3850_v52 = vld [vmem:[%s4098_s24 + $0x1e4] sm:$0xf] }
 0x1f1   : > { %v1232_v18 = vpop.f32.mrf.mxu0 }
 0x1f2   : > { %v1561_v38 = vpop.f32.mrf.mxu1 }
 0x1f3   : > { %v4460_v47 = vadd.f32 %v1561_v38, %v1232_v18  ;;  %v1367_v6 = vpop.f32.mrf.mxu2  ;;  %v1696_v18 = vpop.f32.mrf.mxu3 }
 0x1f4   : > { %v4470_v38 = vadd.f32 %v1696_v18, %v1367_v6  ;;  %v3452_v18 = vld [vmem:[%s4098_s24 + $0x1e0] sm:$0xf] }
 0x1f5   : > { %7385 = vst [vmem:[#allocation73_spill] sm:$0xff] %v4460_v47 }
 0x1f6   : > { %7388 = vst [vmem:[#allocation76_spill] sm:$0xff] %v4470_v38  ;;  %1409 = vmatmul.bf16.gmra.mxu2 %v3661_v61  ;;  %1738 = vmatmul.bf16.gmra.mxu3 %v3665_v27  ;;  %v3851_v38 = vld [vmem:[%s4098_s24 + $0x1e4] sm:$0xf0] }
 0x1f7   : > { %v3453_v40 = vor.u32 %v3851_v38, %v3452_v18  ;;  %v3670_v38 = vld [vmem:[%s4098_s24 + $0x398] sm:$0xf0] }
 0x1f9   : > { %v1235_v37 = vpop.f32.mrf.mxu0 }
 0x1fa   : > { %v1564_v54 = vpop.f32.mrf.mxu1 }
 0x1fb   : > { %v4468_v33 = vadd.f32 %v1564_v54, %v1235_v37  ;;  %v1370_v54 = vpop.f32.mrf.mxu2  ;;  %v1699_v6 = vpop.f32.mrf.mxu3 }
 0x1fc   : > { %1274 = vmatmul.bf16.gmra.mxu0 %v3445_v13  ;;  %v3454_v13 = vld [vmem:[%s4098_s24 + $0x1e8] sm:$0xf0]  ;;  %v4482_v17 = vadd.f32 %v1699_v6, %v1370_v54  ;;  %v3669_v54 = vor.u32 %v3905_v49, %v3668_v5  ;;  %v3904_v6 = vld [vmem:[%s4098_s24 + $0x394] sm:$0xf] }
 0x1fd   : > { %7387 = vst [vmem:[#allocation75_spill] sm:$0xff] %v4468_v33  ;;  %1603 = vmatmul.bf16.gmra.mxu1 %v3449_v21  ;;  %v3457_v21 = vor.u32 %v3850_v52, %v3454_v13  ;;  %v3673_v52 = vor.u32 %v3904_v6, %v3670_v38 }
 0x1fe   : > { %7390 = vst [vmem:[#allocation78_spill] sm:$0xff] %v4482_v17  ;;  %v3852_v17 = vld [vmem:[%s4098_s24 + $0x1f4] sm:$0xf] }
 0x201   : > { %v1237_v55 = vpop.f32.mrf.mxu0 }
 0x202   : > { %v1566_v57 = vpop.f32.mrf.mxu1 }
 0x203   : > { %v4476_v37 = vadd.f32 %v1566_v57, %v1237_v55  ;;  %v1372_v27 = vpop.f32.mrf.mxu2  ;;  %v1701_v55 = vpop.f32.mrf.mxu3 }
 0x204   : > { %v4486_v57 = vadd.f32 %v1701_v55, %v1372_v27  ;;  %v3460_v55 = vld [vmem:[%s4098_s24 + $0x1f0] sm:$0xf] }
 0x205   : > { %7389 = vst [vmem:[#allocation77_spill] sm:$0xff] %v4476_v37 }
 0x206   : > { %7392 = vst [vmem:[#allocation80_spill] sm:$0xff] %v4486_v57  ;;  %1414 = vmatmul.bf16.gmra.mxu2 %v3669_v54  ;;  %1743 = vmatmul.bf16.gmra.mxu3 %v3673_v52  ;;  %v3853_v57 = vld [vmem:[%s4098_s24 + $0x1f4] sm:$0xf0] }
 0x207   : > { %v3461_v5 = vor.u32 %v3853_v57, %v3460_v55 }
 0x209   : > { %v1240_v61 = vpop.f32.mrf.mxu0 }
 0x20a   : > { %v1569_v58 = vpop.f32.mrf.mxu1 }
 0x20b   : > { %v4484_v32 = vadd.f32 %v1569_v58, %v1240_v61  ;;  %v1375_v58 = vpop.f32.mrf.mxu2  ;;  %v1704_v27 = vpop.f32.mrf.mxu3 }
 0x20c   : > { %1279 = vmatmul.bf16.gmra.mxu0 %v3453_v40  ;;  %v3462_v40 = vld [vmem:[%s4098_s24 + $0x1f8] sm:$0xf0]  ;;  %v4498_v49 = vadd.f32 %v1704_v27, %v1375_v58 }
 0x20d   : > { %7391 = vst [vmem:[#allocation79_spill] sm:$0xff] %v4484_v32  ;;  %1608 = vmatmul.bf16.gmra.mxu1 %v3457_v21  ;;  %v3465_v21 = vor.u32 %v3852_v17, %v3462_v40  ;;  %v3678_v32 = vld [vmem:[%s4098_s24 + $0x3a8] sm:$0xf0]  ;;  %v1780_v40 = vmul.f32 %v4160_v35, %v4160_v35  ;;  %v3908_v35 = vld [vmem:[%s4098_s24 + $0x3b4] sm:$0xf] }
 0x20e   : > { %7394 = vst [vmem:[#allocation82_spill] sm:$0xff] %v4498_v49 }
 0x20f   : > { %v1909_v39 = vsel %vm1907_vm0, %v1780_v40, 0.0  ;;  %v3909_v40 = vld [vmem:[%s4098_s24 + $0x3b4] sm:$0xf0] }
 0x211   : > { %v1242_v18 = vpop.f32.mrf.mxu0 }
 0x212   : > { %v1571_v13 = vpop.f32.mrf.mxu1 }
 0x213   : > { %v4492_v61 = vadd.f32 %v1571_v13, %v1242_v18  ;;  %v1377_v52 = vpop.f32.mrf.mxu2  ;;  %v1706_v18 = vpop.f32.mrf.mxu3 }
 0x214   : > { %v4502_v13 = vadd.f32 %v1706_v18, %v1377_v52 }
 0x215   : > { %7393 = vst [vmem:[#allocation81_spill] sm:$0xff] %v4492_v61  ;;  %v3906_v61 = vld [vmem:[%s4098_s24 + $0x3a4] sm:$0xf] }
 0x216   : > { %v3681_v37 = vor.u32 %v3906_v61, %v3678_v32  ;;  %1419 = vmatmul.bf16.gmra.mxu2 %v3677_v10 }
 0x218   : > { %1748 = vmatmul.bf16.gmra.mxu3 %v3681_v37  ;;  %v1782_v37 = vmul.f32 %v4172_v53, %v4172_v53 }
 0x219   : > { %v1245_v54 = vpop.f32.mrf.mxu0 }
 0x21a   : > { %v1574_v6 = vpop.f32.mrf.mxu1  ;;  %v1913_v53 = vsel %vm1907_vm0, %v1782_v37, 0.0  ;;  %v1786_v37 = vmul.f32 %v4196_v25, %v4196_v25 }
 0x21b   : > { %v4500_v38 = vadd.f32 %v1574_v6, %v1245_v54  ;;  %v1380_v27 = vpop.f32.mrf.mxu2  ;;  %v1709_v55 = vpop.f32.mrf.mxu3  ;;  %v1779_v54 = vmul.f32 %v4154_v26, %v4154_v26  ;;  %v1783_v6 = vmul.f32 %v4178_v62, %v4178_v62 }
 0x21c   : > { %1284 = vmatmul.bf16.gmra.mxu0 %v3461_v5  ;;  %v4516_v10 = vadd.f32 %v1709_v55, %v1380_v27  ;;  %v3684_v55 = vld [vmem:[%s4098_s24 + $0x3b0] sm:$0xf] }
 0x21d   : > { %7395 = vst [vmem:[#allocation83_spill] sm:$0xff] %v4500_v38  ;;  %1613 = vmatmul.bf16.gmra.mxu1 %v3465_v21  ;;  %v1908_v5 = vsel %vm1907_vm0, %v1779_v54, 0.0  ;;  %v1911_v21 = vsel %vm1907_vm0, %v1781_v19, 0.0  ;;  %v3685_v54 = vor.u32 %v3909_v40, %v3684_v55  ;;  %v3686_v19 = vld [vmem:[%s4098_s24 + $0x3b8] sm:$0xf0] }
 0x21e   : > { %7397 = vst [vmem:[#allocation85_spill] sm:$0xff] %v4516_v10  ;;  %v3689_v10 = vor.u32 %v3908_v35, %v3686_v19  ;;  %v1787_v35 = vmul.f32 %v4202_v36, %v4202_v36  ;;  %v1789_v19 = vmul.f32 %v4214_v56, %v4214_v56  ;;  %v3910_v56 = vld [vmem:[%s4098_s24 + $0x3c4] sm:$0xf] }
 0x221   : > { %v1247_v57 = vpop.f32.mrf.mxu0 }
 0x222   : > { %v1576_v17 = vpop.f32.mrf.mxu1 }
 0x223   : > { %v4508_v58 = vadd.f32 %v1576_v17, %v1247_v57  ;;  %v1382_v18 = vpop.f32.mrf.mxu2  ;;  %v1711_v57 = vpop.f32.mrf.mxu3  ;;  %v1910_v17 = vadd.f32 %v1909_v39, %v1908_v5  ;;  %v1917_v5 = vsel %vm1907_vm0, %v1784_v44, 0.0  ;;  %v1788_v44 = vmul.f32 %v4208_v46, %v4208_v46 }
 0x224   : > { %v4527_v27 = vadd.f32 %v1711_v57, %v1382_v18 }
 0x225   : > { %7396 = vst [vmem:[#allocation84_spill] sm:$0xff] %v4508_v58  ;;  %v1912_v26 = vadd.f32 %v1911_v21, %v1910_v17 }
 0x226   : > { %1424 = vmatmul.bf16.gmra.mxu2 %v3685_v54 }
 0x227   : > { %v1914_v39 = vadd.f32 %v1913_v53, %v1912_v26  ;;  %v1921_v26 = vsel %vm1907_vm0, %v1786_v37, 0.0 }
 0x228   : > { %1753 = vmatmul.bf16.gmra.mxu3 %v3689_v10  ;;  %v1923_v10 = vsel %vm1907_vm0, %v1787_v35, 0.0 }
 0x229   : > { %v1250_v32 = vpop.f32.mrf.mxu0 }
 0x22a   : > { %v1579_v61 = vpop.f32.mrf.mxu1 }
 0x22b   : > { %v4525_v52 = vadd.f32 %v1579_v61, %v1250_v32  ;;  %v1915_v32 = vsel %vm1907_vm0, %v1783_v6, 0.0  ;;  %v1785_v61 = vmul.f32 %v4190_v16, %v4190_v16  ;;  %v1385_v6 = vpop.f32.mrf.mxu2  ;;  %v1714_v17 = vpop.f32.mrf.mxu3  ;;  %v7444_v16 = vld [vmem:[#allocation60_spill] sm:$0xff] }
 0x22c   : > { %v1916_v18 = vadd.f32 %v1915_v32, %v1914_v39  ;;  %v1925_v39 = vsel %vm1907_vm0, %v1788_v44, 0.0  ;;  %v3692_v44 = vld [vmem:[%s4098_s24 + $0x3c0] sm:$0xf] }
 0x22d   : > { %7398 = vst [vmem:[#allocation86_spill] sm:$0xff] %v4525_v52  ;;  %v1919_v40 = vsel %vm1907_vm0, %v1785_v61, 0.0  ;;  %v4553_v61 = vadd.f32 %v1714_v17, %v1385_v6 }
 0x22e   : > { %v1918_v54 = vadd.f32 %v1917_v5, %v1916_v18  ;;  %v1790_v5 = vmul.f32 %v4220_v2, %v4220_v2 }
 0x230   : > { %v1920_v53 = vadd.f32 %v1919_v40, %v1918_v54  ;;  %v1791_v40 = vmul.f32 %v4228_v15, %v4228_v15  ;;  %v1929_v2 = vsel %vm1907_vm0, %v1790_v5, 0.0  ;;  %v1794_v5 = vmul.f32 %v4252_v60, %v4252_v60  ;;  %v7443_v15 = vld [vmem:[#allocation58_spill] sm:$0xff] }
 0x231   : > { %v1252_v57 = vpop.f32.mrf.mxu0 }
 0x232   : > { %v1581_v55 = vpop.f32.mrf.mxu1  ;;  %v1922_v32 = vadd.f32 %v1921_v26, %v1920_v53  ;;  %v3911_v53 = vld [vmem:[%s4098_s24 + $0x3c4] sm:$0xf0] }
 0x233   : > { %v4545_v21 = vadd.f32 %v1581_v55, %v1252_v57  ;;  %v1927_v55 = vsel %vm1907_vm0, %v1789_v19, 0.0  ;;  %v1387_v54 = vpop.f32.mrf.mxu2  ;;  %v1716_v6 = vpop.f32.mrf.mxu3  ;;  %v3694_v19 = vld [vmem:[%s4098_s24 + $0x3c8] sm:$0xf0] }
 0x234   : > { %v1924_v37 = vadd.f32 %v1923_v10, %v1922_v32  ;;  %v4563_v26 = vadd.f32 %v1716_v6, %v1387_v54  ;;  %v1792_v10 = vmul.f32 %v4236_v30, %v4236_v30  ;;  %v3693_v32 = vor.u32 %v3911_v53, %v3692_v44  ;;  %v7442_v30 = vld [vmem:[#allocation56_spill] sm:$0xff] }
 0x235   : > { %7399 = vst [vmem:[#allocation87_spill] sm:$0xff] %v4545_v21  ;;  %v3697_v36 = vor.u32 %v3910_v56, %v3694_v19  ;;  %v1795_v56 = vmul.f32 %v4260_v12, %v4260_v12  ;;  %v1797_v19 = vmul.f32 %v4276_v48, %v4276_v48  ;;  %v3912_v48 = vld [vmem:[%s4098_s24 + $0x3d4] sm:$0xf] }
 0x236   : > { %v1926_v17 = vadd.f32 %v1925_v39, %v1924_v37  ;;  %7401 = vst [vmem:[#allocation89_spill] sm:$0xff] %v4563_v26  ;;  %1429 = vmatmul.bf16.gmra.mxu2 %v3693_v32  ;;  %v1933_v37 = vsel %vm1907_vm0, %v1792_v10, 0.0 }
 0x237   : > { %v1939_v10 = vsel %vm1907_vm0, %v1795_v56, 0.0 }
 0x238   : > { %v1928_v46 = vadd.f32 %v1927_v55, %v1926_v17  ;;  %1758 = vmatmul.bf16.gmra.mxu3 %v3697_v36  ;;  %v1937_v36 = vsel %vm1907_vm0, %v1794_v5, 0.0 }
 0x239   : > { %v1255_v18 = vpop.f32.mrf.mxu0 }
 0x23a   : > { %v1584_v57 = vpop.f32.mrf.mxu1  ;;  %v1930_v39 = vadd.f32 %v1929_v2, %v1928_v46  ;;  %v1796_v46 = vmul.f32 %v4268_v29, %v4268_v29 }
 0x23b   : > { %v4561_v35 = vadd.f32 %v1584_v57, %v1255_v18  ;;  %v1931_v18 = vsel %vm1907_vm0, %v1791_v40, 0.0  ;;  %v1793_v57 = vmul.f32 %v4244_v45, %v4244_v45  ;;  %v1390_v40 = vpop.f32.mrf.mxu2  ;;  %v1719_v17 = vpop.f32.mrf.mxu3 }
 0x23c   : > { %v1932_v54 = vadd.f32 %v1931_v18, %v1930_v39  ;;  %v1941_v39 = vsel %vm1907_vm0, %v1796_v46, 0.0  ;;  %v3700_v46 = vld [vmem:[%s4098_s24 + $0x3d0] sm:$0xf] }
 0x23d   : > { %7400 = vst [vmem:[#allocation88_spill] sm:$0xff] %v4561_v35  ;;  %v1935_v53 = vsel %vm1907_vm0, %v1793_v57, 0.0  ;;  %v4589_v57 = vadd.f32 %v1719_v17, %v1390_v40 }
 0x23e   : > { %v1934_v32 = vadd.f32 %v1933_v37, %v1932_v54  ;;  %v1798_v37 = vmul.f32 %v4284_v1, %v4284_v1 }
 0x240   : > { %v1936_v2 = vadd.f32 %v1935_v53, %v1934_v32  ;;  %v1799_v53 = vmul.f32 %v4292_v22, %v4292_v22  ;;  %v1945_v1 = vsel %vm1907_vm0, %v1798_v37, 0.0  ;;  %v1802_v37 = vmul.f32 %v4316_v24, %v4316_v24 }
 0x241   : > { %v1257_v6 = vpop.f32.mrf.mxu0 }
 0x242   : > { %v1586_v44 = vpop.f32.mrf.mxu1  ;;  %v1938_v18 = vadd.f32 %v1937_v36, %v1936_v2  ;;  %v3913_v2 = vld [vmem:[%s4098_s24 + $0x3d4] sm:$0xf0] }
 0x243   : > { %v4581_v55 = vadd.f32 %v1586_v44, %v1257_v6  ;;  %v1943_v44 = vsel %vm1907_vm0, %v1797_v19, 0.0  ;;  %v1392_v32 = vpop.f32.mrf.mxu2  ;;  %v1721_v40 = vpop.f32.mrf.mxu3  ;;  %v3702_v19 = vld [vmem:[%s4098_s24 + $0x3d8] sm:$0xf0] }
 0x244   : > { %v1940_v5 = vadd.f32 %v1939_v10, %v1938_v18  ;;  %v4599_v36 = vadd.f32 %v1721_v40, %v1392_v32  ;;  %v1800_v10 = vmul.f32 %v4300_v42, %v4300_v42  ;;  %v3701_v18 = vor.u32 %v3913_v2, %v3700_v46  ;;  %v7439_v42 = vld [vmem:[#allocation50_spill] sm:$0xff] }
 0x245   : > { %7402 = vst [vmem:[#allocation90_spill] sm:$0xff] %v4581_v55  ;;  %v3705_v12 = vor.u32 %v3912_v48, %v3702_v19 }
 0x246   : > { %v1942_v17 = vadd.f32 %v1941_v39, %v1940_v5  ;;  %7404 = vst [vmem:[#allocation92_spill] sm:$0xff] %v4599_v36  ;;  %1434 = vmatmul.bf16.gmra.mxu2 %v3701_v18  ;;  %v1949_v5 = vsel %vm1907_vm0, %v1800_v10, 0.0  ;;  %v1805_v18 = vmul.f32 %v4340_v43, %v4340_v43  ;;  %v3914_v43 = vld [vmem:[%s4098_s24 + $0x3e4] sm:$0xf] }
 0x248   : > { %v1944_v29 = vadd.f32 %v1943_v44, %v1942_v17  ;;  %1763 = vmatmul.bf16.gmra.mxu3 %v3705_v12  ;;  %v1803_v44 = vmul.f32 %v4324_v51, %v4324_v51  ;;  %v1953_v12 = vsel %vm1907_vm0, %v1802_v37, 0.0 }
 0x249   : > { %v1260_v54 = vpop.f32.mrf.mxu0 }
 0x24a   : > { %v1589_v6 = vpop.f32.mrf.mxu1  ;;  %v1946_v39 = vadd.f32 %v1945_v1, %v1944_v29  ;;  %v1804_v29 = vmul.f32 %v4332_v14, %v4332_v14  ;;  %v1955_v10 = vsel %vm1907_vm0, %v1803_v44, 0.0  ;;  %v1807_v44 = vmul.f32 %v4356_v50, %v4356_v50  ;;  %v3710_v14 = vld [vmem:[%s4098_s24 + $0x3e8] sm:$0xf0] }
 0x24b   : > { %v4597_v56 = vadd.f32 %v1589_v6, %v1260_v54  ;;  %v1947_v54 = vsel %vm1907_vm0, %v1799_v53, 0.0  ;;  %v1801_v6 = vmul.f32 %v4308_v0, %v4308_v0  ;;  %v1395_v53 = vpop.f32.mrf.mxu2  ;;  %v1724_v17 = vpop.f32.mrf.mxu3  ;;  %v1809_v50 = vmul.f32 %v4372_v8, %v4372_v8  ;;  %v7437_v8 = vld [vmem:[#allocation46_spill] sm:$0xff] }
 0x24c   : > { %v1948_v32 = vadd.f32 %v1947_v54, %v1946_v39  ;;  %v4627_v54 = vadd.f32 %v1724_v17, %v1395_v53  ;;  %v1806_v39 = vmul.f32 %v4348_v11, %v4348_v11  ;;  %v1963_v24 = vsel %vm1907_vm0, %v1807_v44, 0.0 }
 0x24d   : > { %7403 = vst [vmem:[#allocation91_spill] sm:$0xff] %v4597_v56  ;;  %v1951_v48 = vsel %vm1907_vm0, %v1801_v6, 0.0  ;;  %v1957_v6 = vsel %vm1907_vm0, %v1804_v29, 0.0  ;;  %v3708_v29 = vld [vmem:[%s4098_s24 + $0x3e0] sm:$0xf] }
 0x24e   : > { %v1950_v2 = vadd.f32 %v1949_v5, %v1948_v32  ;;  %v1961_v11 = vsel %vm1907_vm0, %v1806_v39, 0.0  ;;  %v1810_v39 = vmul.f32 %v4380_v3, %v4380_v3 }
 0x250   : > { %v1952_v1 = vadd.f32 %v1951_v48, %v1950_v2  ;;  %v1959_v48 = vsel %vm1907_vm0, %v1805_v18, 0.0  ;;  %v3713_v18 = vor.u32 %v3914_v43, %v3710_v14  ;;  %v1967_v14 = vsel %vm1907_vm0, %v1809_v50, 0.0 }
 0x251   : > { %v4614_v40 = vpop.f32.mrf.mxu0  ;;  %v1811_v43 = vmul.f32 %v4388_v41, %v4388_v41 }
 0x252   : > { %v4616_v46 = vpop.f32.mrf.mxu1  ;;  %v1954_v19 = vadd.f32 %v1953_v12, %v1952_v1  ;;  %v3915_v1 = vld [vmem:[%s4098_s24 + $0x3e4] sm:$0xf0] }
 0x253   : > { %v1397_v2 = vpop.f32.mrf.mxu2  ;;  %v1726_v53 = vpop.f32.mrf.mxu3 }
 0x254   : > { %v1956_v5 = vadd.f32 %v1955_v10, %v1954_v19  ;;  %v4639_v12 = vadd.f32 %v1726_v53, %v1397_v2  ;;  %v1808_v10 = vmul.f32 %v4364_v23, %v4364_v23  ;;  %v3709_v19 = vor.u32 %v3915_v1, %v3708_v29  ;;  %v7438_v23 = vld [vmem:[#allocation48_spill] sm:$0xff] }
 0x256   : > { %v1958_v17 = vadd.f32 %v1957_v6, %v1956_v5  ;;  %1439 = vmatmul.bf16.gmra.mxu2 %v3709_v19  ;;  %v1965_v5 = vsel %vm1907_vm0, %v1808_v10, 0.0  ;;  %v1813_v10 = vmul.f32 %v4404_v20, %v4404_v20  ;;  %v3916_v20 = vld [vmem:[%s4098_s24 + $0x3f4] sm:$0xf] }
 0x258   : > { %v1960_v51 = vadd.f32 %v1959_v48, %v1958_v17  ;;  %1768 = vmatmul.bf16.gmra.mxu3 %v3713_v18 }
 0x259   : > { %v4632_v37 = vpop.f32.mrf.mxu0 }
 0x25a   : > { %v4634_v32 = vpop.f32.mrf.mxu1  ;;  %v1962_v6 = vadd.f32 %v1961_v11, %v1960_v51  ;;  %v1969_v51 = vsel %vm1907_vm0, %v1810_v39, 0.0  ;;  %v1812_v11 = vmul.f32 %v4396_v28, %v4396_v28  ;;  %v3718_v28 = vld [vmem:[%s4098_s24 + $0x3f8] sm:$0xf0] }
 0x25b   : > { %v1400_v48 = vpop.f32.mrf.mxu2  ;;  %v1729_v44 = vpop.f32.mrf.mxu3 }
 0x25c   : > { %v1964_v2 = vadd.f32 %v1963_v24, %v1962_v6  ;;  %v1971_v24 = vsel %vm1907_vm0, %v1811_v43, 0.0  ;;  %v4667_v19 = vadd.f32 %v1729_v44, %v1400_v48  ;;  %v1973_v18 = vsel %vm1907_vm0, %v1812_v11, 0.0  ;;  %v3716_v11 = vld [vmem:[%s4098_s24 + $0x3f0] sm:$0xf] }
 0x25d   : > { %v1814_v6 = vmul.f32 %v4412_v4, %v4412_v4  ;;  %v1815_v43 = vmul.f32 %v4420_v34, %v4420_v34  ;;  %v1817_v34 = vmul.f32 %v4436_v59, %v4436_v59 }
 0x25e   : > { %v1966_v17 = vadd.f32 %v1965_v5, %v1964_v2  ;;  %7405 = vst [vmem:[#allocation93_spill] sm:$0xff] %v4667_v19 }
 0x25f   : > { %v1977_v4 = vsel %vm1907_vm0, %v1814_v6, 0.0  ;;  %v1979_v3 = vsel %vm1907_vm0, %v1815_v43, 0.0  ;;  %v1818_v6 = vmul.f32 %v4444_v9, %v4444_v9 }
 0x260   : > { %v1968_v1 = vadd.f32 %v1967_v14, %v1966_v17  ;;  %v1975_v14 = vsel %vm1907_vm0, %v1813_v10, 0.0  ;;  %v3721_v10 = vor.u32 %v3916_v20, %v3718_v28  ;;  %v1983_v28 = vsel %vm1907_vm0, %v1817_v34, 0.0 }
 0x261   : > { %v4654_v53 = vpop.f32.mrf.mxu0  ;;  %v1819_v20 = vmul.f32 %v4452_v63, %v4452_v63 }
 0x262   : > { %v4656_v29 = vpop.f32.mrf.mxu1  ;;  %v1970_v50 = vadd.f32 %v1969_v51, %v1968_v1  ;;  %v3917_v1 = vld [vmem:[%s4098_s24 + $0x3f4] sm:$0xf0] }
 0x263   : > { %v1402_v17 = vpop.f32.mrf.mxu2  ;;  %v1731_v48 = vpop.f32.mrf.mxu3 }
 0x264   : > { %v1972_v5 = vadd.f32 %v1971_v24, %v1970_v50  ;;  %v4679_v51 = vadd.f32 %v1731_v48, %v1402_v17  ;;  %v1816_v24 = vmul.f32 %v4428_v31, %v4428_v31  ;;  %v3717_v50 = vor.u32 %v3917_v1, %v3716_v11 }
 0x266   : > { %v1974_v44 = vadd.f32 %v1973_v18, %v1972_v5  ;;  %1444 = vmatmul.bf16.gmra.mxu2 %v3717_v50  ;;  %v1981_v5 = vsel %vm1907_vm0, %v1816_v24, 0.0  ;;  %v1821_v24 = vmul.f32 %v4468_v33, %v4468_v33 }
 0x268   : > { %v1976_v41 = vadd.f32 %v1975_v14, %v1974_v44  ;;  %1773 = vmatmul.bf16.gmra.mxu3 %v3721_v10  ;;  %v1991_v9 = vsel %vm1907_vm0, %v1821_v24, 0.0 }
 0x269   : > { %v4672_v39 = vpop.f32.mrf.mxu0 }
 0x26a   : > { %v4674_v2 = vpop.f32.mrf.mxu1  ;;  %v1978_v18 = vadd.f32 %v1977_v4, %v1976_v41  ;;  %v1985_v41 = vsel %vm1907_vm0, %v1818_v6, 0.0  ;;  %v1820_v4 = vmul.f32 %v4460_v47, %v4460_v47  ;;  %v7408_v47 = vld [vmem:[#allocation79_spill] sm:$0xff] }
 0x26b   : > { %v1405_v14 = vpop.f32.mrf.mxu2  ;;  %v1734_v43 = vpop.f32.mrf.mxu3 }
 0x26c   : > { %v1980_v17 = vadd.f32 %v1979_v3, %v1978_v18  ;;  %v1987_v3 = vsel %vm1907_vm0, %v1819_v20, 0.0  ;;  %v4707_v10 = vadd.f32 %v1734_v43, %v1405_v14  ;;  %v1989_v34 = vsel %vm1907_vm0, %v1820_v4, 0.0  ;;  %v7407_v18 = vld [vmem:[#allocation77_spill] sm:$0xff] }
 0x26d   : > { %v1822_v63 = vmul.f32 %v7407_v18, %v7407_v18  ;;  %v7409_v43 = vld [vmem:[#allocation81_spill] sm:$0xff] }
 0x26e   : > { %v1982_v44 = vadd.f32 %v1981_v5, %v1980_v17  ;;  %7406 = vst [vmem:[#allocation94_spill] sm:$0xff] %v4707_v10 }
 0x26f   : > { %v1993_v14 = vsel %vm1907_vm0, %v1822_v63, 0.0 }
 0x270   : > { %v1984_v1 = vadd.f32 %v1983_v28, %v1982_v44  ;;  %v1823_v28 = vmul.f32 %v7408_v47, %v7408_v47  ;;  %v1826_v47 = vmul.f32 %v4508_v58, %v4508_v58 }
 0x271   : > { %v4694_v48 = vpop.f32.mrf.mxu0 }
 0x272   : > { %v4696_v11 = vpop.f32.mrf.mxu1  ;;  %v1986_v50 = vadd.f32 %v1985_v41, %v1984_v1  ;;  %v1824_v41 = vmul.f32 %v7409_v43, %v7409_v43  ;;  %v1995_v1 = vsel %vm1907_vm0, %v1823_v28, 0.0  ;;  %v2001_v43 = vsel %vm1907_vm0, %v1826_v47, 0.0 }
 0x273   : > { %v1407_v20 = vpop.f32.mrf.mxu2  ;;  %v1736_v44 = vpop.f32.mrf.mxu3 }
 0x274   : > { %v1988_v5 = vadd.f32 %v1987_v3, %v1986_v50  ;;  %v4715_v33 = vadd.f32 %v1736_v44, %v1407_v20  ;;  %v1825_v3 = vmul.f32 %v4500_v38, %v4500_v38  ;;  %v1997_v50 = vsel %vm1907_vm0, %v1824_v41, 0.0 }
 0x275   : > { %v1827_v44 = vmul.f32 %v4525_v52, %v4525_v52  ;;  %v1830_v52 = vmul.f32 %v4581_v55, %v4581_v55 }
 0x276   : > { %v1990_v59 = vadd.f32 %v1989_v34, %v1988_v5  ;;  %v1999_v63 = vsel %vm1907_vm0, %v1825_v3, 0.0 }
 0x278   : > { %v1992_v4 = vadd.f32 %v1991_v9, %v1990_v59 }
 0x279   : > { %v1275_v17 = vpop.f32.mrf.mxu0 }
 0x27a   : > { %v1604_v6 = vpop.f32.mrf.mxu1  ;;  %v1994_v24 = vadd.f32 %v1993_v14, %v1992_v4  ;;  %v1828_v14 = vmul.f32 %v4545_v21, %v4545_v21  ;;  %v2003_v4 = vsel %vm1907_vm0, %v1827_v44, 0.0  ;;  %v1831_v44 = vmul.f32 %v4597_v56, %v4597_v56  ;;  %v7434_v21 = vld [vmem:[#allocation40_spill] sm:$0xff] }
 0x27b   : > { %v1410_v59 = vpop.f32.mrf.mxu2  ;;  %v1739_v9 = vpop.f32.mrf.mxu3 }
 0x27c   : > { %v1996_v34 = vadd.f32 %v1995_v1, %v1994_v24  ;;  %v1829_v1 = vmul.f32 %v4561_v35, %v4561_v35  ;;  %v2005_v3 = vsel %vm1907_vm0, %v1828_v14, 0.0 }
 0x27e   : > { %v1998_v28 = vadd.f32 %v1997_v50, %v1996_v34  ;;  %v4740_v50 = vadd.f32 %v4616_v46, %v4614_v40  ;;  %v2009_v40 = vsel %vm1907_vm0, %v1830_v52, 0.0 }
 0x280   : > { %v2000_v41 = vadd.f32 %v1999_v63, %v1998_v28  ;;  %7410 = vst [vmem:[#allocation95_spill] sm:$0xff] %v4740_v50  ;;  %v2007_v63 = vsel %vm1907_vm0, %v1829_v1, 0.0  ;;  %v4749_v28 = vadd.f32 %v1739_v9, %v1410_v59  ;;  %v1832_v46 = vmul.f32 %v4740_v50, %v4740_v50  ;;  %v7433_v50 = vld [vmem:[#allocation38_spill] sm:$0xff] }
 0x281   : > { %v1277_v5 = vpop.f32.mrf.mxu0  ;;  %v4765_v59 = vadd.f32 %v4674_v2, %v4672_v39  ;;  %v4777_v39 = vadd.f32 %v1604_v6, %v1275_v17 }
 0x282   : > { %v1606_v20 = vpop.f32.mrf.mxu1  ;;  %v2002_v24 = vadd.f32 %v2001_v43, %v2000_v41  ;;  %v4747_v43 = vadd.f32 %v4634_v32, %v4632_v37  ;;  %v2011_v37 = vsel %vm1907_vm0, %v1831_v44, 0.0  ;;  %v2013_v52 = vsel %vm1907_vm0, %v1832_v46, 0.0 }
 0x283   : > { %v1412_v14 = vpop.f32.mrf.mxu2  ;;  %v1741_v41 = vpop.f32.mrf.mxu3  ;;  %7413 = vst [vmem:[#allocation98_spill] sm:$0xff] %v4765_v59 }
 0x284   : > { %v2004_v47 = vadd.f32 %v2003_v4, %v2002_v24  ;;  %7411 = vst [vmem:[#allocation96_spill] sm:$0xff] %v4747_v43  ;;  %v4751_v35 = vadd.f32 %v1741_v41, %v1412_v14  ;;  %v4758_v4 = vadd.f32 %v4656_v29, %v4654_v53  ;;  %v1833_v32 = vmul.f32 %v4747_v43, %v4747_v43  ;;  %v7432_v43 = vld [vmem:[#allocation36_spill] sm:$0xff] }
 0x285   : > { %v4772_v53 = vadd.f32 %v4696_v11, %v4694_v48  ;;  %7415 = vst [vmem:[#allocation100_spill] sm:$0xff] %v4777_v39  ;;  %v4782_v48 = vadd.f32 %v1606_v20, %v1277_v5 }
 0x286   : > { %v2006_v55 = vadd.f32 %v2005_v3, %v2004_v47  ;;  %7412 = vst [vmem:[#allocation97_spill] sm:$0xff] %v4758_v4  ;;  %v1834_v24 = vmul.f32 %v4758_v4, %v4758_v4  ;;  %v2015_v47 = vsel %vm1907_vm0, %v1833_v32, 0.0 }
 0x287   : > { %7414 = vst [vmem:[#allocation99_spill] sm:$0xff] %v4772_v53  ;;  %v1838_v32 = vmul.f32 %v4782_v48, %v4782_v48 }
 0x288   : > { %v2008_v1 = vadd.f32 %v2007_v63, %v2006_v55  ;;  %v1835_v63 = vmul.f32 %v4765_v59, %v4765_v59  ;;  %v2017_v41 = vsel %vm1907_vm0, %v1834_v24, 0.0  ;;  %7416 = vst [vmem:[#allocation101_spill] sm:$0xff] %v4782_v48  ;;  %v7427_v48 = vld [vmem:[#allocation26_spill] sm:$0xff] }
 0x289   : > { %v1280_v34 = vpop.f32.mrf.mxu0 }
 0x28a   : > { %v1609_v58 = vpop.f32.mrf.mxu1  ;;  %v2010_v9 = vadd.f32 %v2009_v40, %v2008_v1  ;;  %v1836_v40 = vmul.f32 %v4772_v53, %v4772_v53  ;;  %v2019_v46 = vsel %vm1907_vm0, %v1835_v63, 0.0  ;;  %v1837_v1 = vmul.f32 %v4777_v39, %v4777_v39 }
 0x28b   : > { %v1415_v2 = vpop.f32.mrf.mxu2  ;;  %v1744_v44 = vpop.f32.mrf.mxu3  ;;  %v1849_v39 = vmul.f32 %v7427_v48, %v7427_v48 }
 0x28c   : > { %v2012_v55 = vadd.f32 %v2011_v37, %v2010_v9  ;;  %v4787_v37 = vadd.f32 %v1609_v58, %v1280_v34  ;;  %v2021_v6 = vsel %vm1907_vm0, %v1836_v40, 0.0  ;;  %v2023_v20 = vsel %vm1907_vm0, %v1837_v1, 0.0 }
 0x28d   : > { %v4799_v58 = vadd.f32 %v1744_v44, %v1415_v2 }
 0x28e   : > { %v2014_v14 = vadd.f32 %v2013_v52, %v2012_v55  ;;  %7417 = vst [vmem:[#allocation102_spill] sm:$0xff] %v4787_v37  ;;  %v1839_v55 = vmul.f32 %v4787_v37, %v4787_v37  ;;  %v7426_v37 = vld [vmem:[#allocation24_spill] sm:$0xff] }
 0x290   : > { %v2016_v11 = vadd.f32 %v2015_v47, %v2014_v14 }
 0x291   : > { %v1282_v29 = vpop.f32.mrf.mxu0 }
 0x292   : > { %v1611_v3 = vpop.f32.mrf.mxu1  ;;  %v2018_v17 = vadd.f32 %v2017_v41, %v2016_v11  ;;  %v2027_v11 = vsel %vm1907_vm0, %v1839_v55, 0.0 }
 0x293   : > { %v4792_v9 = vadd.f32 %v1611_v3, %v1282_v29  ;;  %v1417_v34 = vpop.f32.mrf.mxu2  ;;  %v1746_v63 = vpop.f32.mrf.mxu3  ;;  %v2025_v29 = vsel %vm1907_vm0, %v1838_v32, 0.0 }
 0x294   : > { %v2020_v52 = vadd.f32 %v2019_v46, %v2018_v17  ;;  %v4801_v41 = vadd.f32 %v1746_v63, %v1417_v34  ;;  %v7422_v63 = vld [vmem:[#allocation16_spill] sm:$0xff] }
 0x295   : > { %7418 = vst [vmem:[#allocation103_spill] sm:$0xff] %v4792_v9  ;;  %v1840_v3 = vmul.f32 %v4792_v9, %v4792_v9 }
 0x296   : > { %v2022_v14 = vadd.f32 %v2021_v6, %v2020_v52 }
 0x297   : > { %v2029_v2 = vsel %vm1907_vm0, %v1840_v3, 0.0 }
 0x298   : > { %v2024_v40 = vadd.f32 %v2023_v20, %v2022_v14  ;;  %v1844_v14 = vmul.f32 %v7422_v63, %v7422_v63 }
 0x299   : > { %v1285_v24 = vpop.f32.mrf.mxu0 }
 0x29a   : > { %v1614_v5 = vpop.f32.mrf.mxu1  ;;  %v2026_v1 = vadd.f32 %v2025_v29, %v2024_v40 }
 0x29b   : > { %v4797_v47 = vadd.f32 %v1614_v5, %v1285_v24  ;;  %v7421_v5 = vld [vmem:[#allocation14_spill] sm:$0xff] }
 0x29c   : > { %v2028_v44 = vadd.f32 %v2027_v11, %v2026_v1  ;;  %v1843_v34 = vmul.f32 %v7421_v5, %v7421_v5  ;;  %v7423_v11 = vld [vmem:[#allocation18_spill] sm:$0xff] }
 0x29d   : > { %7419 = vst [vmem:[#allocation104_spill] sm:$0xff] %v4797_v47  ;;  %v1841_v46 = vmul.f32 %v4797_v47, %v4797_v47 }
 0x29e   : > { %v2030_v32 = vadd.f32 %v2029_v2, %v2028_v44  ;;  %v2035_v40 = vsel %vm1907_vm0, %v1843_v34, 0.0  ;;  %v1420_v2 = vpop.f32.mrf.mxu2  ;;  %v1749_v44 = vpop.f32.mrf.mxu3 }
 0x29f   : > { %v2031_v6 = vsel %vm1907_vm0, %v1841_v46, 0.0  ;;  %v1845_v46 = vmul.f32 %v7423_v11, %v7423_v11 }
 0x2a0   : > { %v2032_v55 = vadd.f32 %v2031_v6, %v2030_v32  ;;  %v4826_v6 = vadd.f32 %v1749_v44, %v1420_v2  ;;  %v7428_v44 = vld [vmem:[#allocation28_spill] sm:$0xff] }
 0x2a1   : > { %v1287_v17 = vpop.f32.mrf.mxu0  ;;  %v2039_v9 = vsel %vm1907_vm0, %v1845_v46, 0.0  ;;  %v1850_v46 = vmul.f32 %v7428_v44, %v7428_v44 }
 0x2a2   : > { %v1616_v24 = vpop.f32.mrf.mxu1 }
 0x2a3   : > { %v4811_v52 = vadd.f32 %v1616_v24, %v1287_v17  ;;  %v2037_v17 = vsel %vm1907_vm0, %v1844_v14, 0.0  ;;  %v7424_v24 = vld [vmem:[#allocation20_spill] sm:$0xff] }
 0x2a4   : > { %v1846_v47 = vmul.f32 %v7424_v24, %v7424_v24 }
 0x2a5   : > { %7420 = vst [vmem:[#allocation105_spill] sm:$0xff] %v4811_v52  ;;  %v1842_v20 = vmul.f32 %v4811_v52, %v4811_v52 }
 0x2a6   : > { %v4846_v4 = vpop.f32.mrf.mxu2 }
 0x2a7   : > { %v2033_v29 = vsel %vm1907_vm0, %v1842_v20, 0.0  ;;  %v7425_v20 = vld [vmem:[#allocation22_spill] sm:$0xff] }
 0x2a8   : > { %v2034_v3 = vadd.f32 %v2033_v29, %v2032_v55  ;;  %v1847_v55 = vmul.f32 %v7425_v20, %v7425_v20  ;;  %v2041_v29 = vsel %vm1907_vm0, %v1846_v47, 0.0 }
 0x2aa   : > { %v2036_v1 = vadd.f32 %v2035_v40, %v2034_v3  ;;  %v1848_v3 = vmul.f32 %v7426_v37, %v7426_v37  ;;  %v2043_v14 = vsel %vm1907_vm0, %v1847_v55, 0.0 }
 0x2ac   : > { %v2038_v32 = vadd.f32 %v2037_v17, %v2036_v1  ;;  %v2045_v1 = vsel %vm1907_vm0, %v1848_v3, 0.0 }
 0x2ae   : > { %v2040_v34 = vadd.f32 %v2039_v9, %v2038_v32  ;;  %v2047_v9 = vsel %vm1907_vm0, %v1849_v39, 0.0  ;;  %v7429_v32 = vld [vmem:[#allocation30_spill] sm:$0xff]  ;;  %v4865_v31 = vpop.f32.mrf.mxu2 }
 0x2af   : > { %v1851_v47 = vmul.f32 %v7429_v32, %v7429_v32 }
 0x2b0   : > { %v2042_v40 = vadd.f32 %v2041_v29, %v2040_v34  ;;  %v2049_v34 = vsel %vm1907_vm0, %v1850_v46, 0.0  ;;  %v7430_v29 = vld [vmem:[#allocation32_spill] sm:$0xff] }
 0x2b1   : > { %v1852_v55 = vmul.f32 %v7430_v29, %v7430_v29  ;;  %v2051_v3 = vsel %vm1907_vm0, %v1851_v47, 0.0  ;;  %v1856_v47 = vmul.f32 %v7434_v21, %v7434_v21 }
 0x2b2   : > { %v2044_v2 = vadd.f32 %v2043_v14, %v2042_v40  ;;  %v4848_v40 = vpop.f32.mrf.mxu3  ;;  %v7431_v14 = vld [vmem:[#allocation34_spill] sm:$0xff] }
 0x2b4   : > { %v2046_v17 = vadd.f32 %v2045_v1, %v2044_v2  ;;  %v1853_v2 = vmul.f32 %v7431_v14, %v7431_v14  ;;  %v2053_v1 = vsel %vm1907_vm0, %v1852_v55, 0.0 }
 0x2b6   : > { %v2048_v53 = vadd.f32 %v2047_v9, %v2046_v17  ;;  %v1854_v17 = vmul.f32 %v7432_v43, %v7432_v43  ;;  %v2055_v9 = vsel %vm1907_vm0, %v1853_v2, 0.0  ;;  %v2061_v2 = vsel %vm1907_vm0, %v1856_v47, 0.0  ;;  %v4884_v45 = vpop.f32.mrf.mxu2 }
 0x2b7   : > { %v1861_v47 = vmul.f32 %v7439_v42, %v7439_v42 }
 0x2b8   : > { %v2050_v59 = vadd.f32 %v2049_v34, %v2048_v53  ;;  %v1855_v53 = vmul.f32 %v7433_v50, %v7433_v50  ;;  %v2057_v56 = vsel %vm1907_vm0, %v1854_v17, 0.0 }
 0x2ba   : > { %v2052_v39 = vadd.f32 %v2051_v3, %v2050_v59  ;;  %v2059_v59 = vsel %vm1907_vm0, %v1855_v53, 0.0  ;;  %v7435_v3 = vld [vmem:[#allocation42_spill] sm:$0xff] }
 0x2bb   : > { %v1857_v55 = vmul.f32 %v7435_v3, %v7435_v3 }
 0x2bc   : > { %v2054_v46 = vadd.f32 %v2053_v1, %v2052_v39  ;;  %v4867_v39 = vpop.f32.mrf.mxu3  ;;  %v7436_v1 = vld [vmem:[#allocation44_spill] sm:$0xff] }
 0x2be   : > { %v2056_v34 = vadd.f32 %v2055_v9, %v2054_v46  ;;  %v1858_v46 = vmul.f32 %v7436_v1, %v7436_v1  ;;  %v2063_v9 = vsel %vm1907_vm0, %v1857_v55, 0.0  ;;  %v4903_v52 = vpop.f32.mrf.mxu2 }
 0x2c0   : > { %v2058_v38 = vadd.f32 %v2057_v56, %v2056_v34  ;;  %v1859_v56 = vmul.f32 %v7437_v8, %v7437_v8  ;;  %v2065_v34 = vsel %vm1907_vm0, %v1858_v46, 0.0  ;;  %v2071_v46 = vsel %vm1907_vm0, %v1861_v47, 0.0 }
 0x2c1   : > { %v1866_v47 = vmul.f32 %v7444_v16, %v7444_v16  ;;  %v7447_v16 = vld [vmem:[#allocation66_spill] sm:$0xff] }
 0x2c2   : > { %v2060_v18 = vadd.f32 %v2059_v59, %v2058_v38  ;;  %v1860_v38 = vmul.f32 %v7438_v23, %v7438_v23  ;;  %v2067_v0 = vsel %vm1907_vm0, %v1859_v56, 0.0 }
 0x2c4   : > { %v2062_v17 = vadd.f32 %v2061_v2, %v2060_v18  ;;  %v2069_v18 = vsel %vm1907_vm0, %v1860_v38, 0.0  ;;  %v7440_v2 = vld [vmem:[#allocation52_spill] sm:$0xff] }
 0x2c5   : > { %v1862_v55 = vmul.f32 %v7440_v2, %v7440_v2  ;;  %v7454_v2 = vld [vmem:[#allocation80_spill] sm:$0xff] }
 0x2c6   : > { %v2064_v53 = vadd.f32 %v2063_v9, %v2062_v17  ;;  %v4886_v17 = vpop.f32.mrf.mxu3  ;;  %v7441_v9 = vld [vmem:[#allocation54_spill] sm:$0xff] }
 0x2c8   : > { %v2066_v59 = vadd.f32 %v2065_v34, %v2064_v53  ;;  %v1863_v53 = vmul.f32 %v7441_v9, %v7441_v9  ;;  %v2073_v34 = vsel %vm1907_vm0, %v1862_v55, 0.0 }
 0x2ca   : > { %v2068_v22 = vadd.f32 %v2067_v0, %v2066_v59  ;;  %v1864_v0 = vmul.f32 %v7442_v30, %v7442_v30  ;;  %v2075_v59 = vsel %vm1907_vm0, %v1863_v53, 0.0  ;;  %v2081_v53 = vsel %vm1907_vm0, %v1866_v47, 0.0  ;;  %v7449_v30 = vld [vmem:[#allocation70_spill] sm:$0xff] }
 0x2cb   : > { %v1871_v47 = vmul.f32 %v7449_v30, %v7449_v30  ;;  %v7452_v30 = vld [vmem:[#allocation76_spill] sm:$0xff] }
 0x2cc   : > { %v2070_v60 = vadd.f32 %v2069_v18, %v2068_v22  ;;  %v1865_v22 = vmul.f32 %v7443_v15, %v7443_v15  ;;  %v2077_v25 = vsel %vm1907_vm0, %v1864_v0, 0.0 }
 0x2ce   : > { %v2072_v56 = vadd.f32 %v2071_v46, %v2070_v60  ;;  %v2079_v60 = vsel %vm1907_vm0, %v1865_v22, 0.0  ;;  %v7445_v46 = vld [vmem:[#allocation62_spill] sm:$0xff] }
 0x2cf   : > { %v1867_v55 = vmul.f32 %v7445_v46, %v7445_v46  ;;  %v7448_v46 = vld [vmem:[#allocation68_spill] sm:$0xff] }
 0x2d0   : > { %v2074_v38 = vadd.f32 %v2073_v34, %v2072_v56  ;;  %v4905_v56 = vpop.f32.mrf.mxu3  ;;  %v7446_v34 = vld [vmem:[#allocation64_spill] sm:$0xff] }
 0x2d2   : > { %v2076_v18 = vadd.f32 %v2075_v59, %v2074_v38  ;;  %v1868_v38 = vmul.f32 %v7446_v34, %v7446_v34  ;;  %v2083_v59 = vsel %vm1907_vm0, %v1867_v55, 0.0 }
 0x2d4   : > { %v2078_v7 = vadd.f32 %v2077_v25, %v2076_v18  ;;  %v1869_v25 = vmul.f32 %v7447_v16, %v7447_v16  ;;  %v2085_v18 = vsel %vm1907_vm0, %v1868_v38, 0.0  ;;  %v4922_v16 = vpop.f32.mrf.mxu2  ;;  %v2091_v38 = vsel %vm1907_vm0, %v1871_v47, 0.0 }
 0x2d5   : > { %v1876_v47 = vmul.f32 %v7454_v2, %v7454_v2 }
 0x2d6   : > { %v2080_v62 = vadd.f32 %v2079_v60, %v2078_v7  ;;  %v1870_v7 = vmul.f32 %v7448_v46, %v7448_v46  ;;  %v2087_v15 = vsel %vm1907_vm0, %v1869_v25, 0.0 }
 0x2d8   : > { %v2082_v0 = vadd.f32 %v2081_v53, %v2080_v62  ;;  %v2089_v62 = vsel %vm1907_vm0, %v1870_v7, 0.0  ;;  %v7450_v53 = vld [vmem:[#allocation72_spill] sm:$0xff] }
 0x2d9   : > { %v1872_v55 = vmul.f32 %v7450_v53, %v7450_v53  ;;  %v7453_v53 = vld [vmem:[#allocation78_spill] sm:$0xff] }
 0x2da   : > { %v2084_v22 = vadd.f32 %v2083_v59, %v2082_v0  ;;  %v4924_v0 = vpop.f32.mrf.mxu3  ;;  %v7451_v59 = vld [vmem:[#allocation74_spill] sm:$0xff] }
 0x2dc   : > { %v2086_v60 = vadd.f32 %v2085_v18, %v2084_v22  ;;  %v1873_v22 = vmul.f32 %v7451_v59, %v7451_v59  ;;  %v2093_v18 = vsel %vm1907_vm0, %v1872_v55, 0.0  ;;  %v1877_v55 = vmul.f32 %v4498_v49, %v4498_v49 }
 0x2de   : > { %v2088_v9 = vadd.f32 %v2087_v15, %v2086_v60  ;;  %v1874_v15 = vmul.f32 %v7452_v30, %v7452_v30  ;;  %v2095_v60 = vsel %vm1907_vm0, %v1873_v22, 0.0  ;;  %v4941_v30 = vpop.f32.mrf.mxu2  ;;  %v2101_v22 = vsel %vm1907_vm0, %v1876_v47, 0.0 }
 0x2df   : > { %v1881_v47 = vmul.f32 %v4553_v61, %v4553_v61 }
 0x2e0   : > { %v2090_v34 = vadd.f32 %v2089_v62, %v2088_v9  ;;  %v1875_v9 = vmul.f32 %v7453_v53, %v7453_v53  ;;  %v2097_v46 = vsel %vm1907_vm0, %v1874_v15, 0.0 }
 0x2e2   : > { %v2092_v25 = vadd.f32 %v2091_v38, %v2090_v34  ;;  %v2099_v34 = vsel %vm1907_vm0, %v1875_v9, 0.0 }
 0x2e4   : > { %v2094_v7 = vadd.f32 %v2093_v18, %v2092_v25  ;;  %v4943_v25 = vpop.f32.mrf.mxu3  ;;  %v1878_v18 = vmul.f32 %v4502_v13, %v4502_v13 }
 0x2e6   : > { %v2096_v62 = vadd.f32 %v2095_v60, %v2094_v7  ;;  %v2103_v7 = vsel %vm1907_vm0, %v1877_v55, 0.0  ;;  %v7455_v60 = vld [vmem:[#allocation85_spill] sm:$0xff]  ;;  %v1882_v55 = vmul.f32 %v4563_v26, %v4563_v26 }
 0x2e8   : > { %v2098_v42 = vadd.f32 %v2097_v46, %v2096_v62  ;;  %v1879_v46 = vmul.f32 %v7455_v60, %v7455_v60  ;;  %v2105_v62 = vsel %vm1907_vm0, %v1878_v18, 0.0  ;;  %v4960_v60 = vpop.f32.mrf.mxu2  ;;  %v2111_v18 = vsel %vm1907_vm0, %v1881_v47, 0.0 }
 0x2e9   : > { %v1886_v47 = vmul.f32 %v4639_v12, %v4639_v12 }
 0x2ea   : > { %v2100_v38 = vadd.f32 %v2099_v34, %v2098_v42  ;;  %v1880_v42 = vmul.f32 %v4527_v27, %v4527_v27  ;;  %v2107_v49 = vsel %vm1907_vm0, %v1879_v46, 0.0 }
 0x2ec   : > { %v2102_v15 = vadd.f32 %v2101_v22, %v2100_v38  ;;  %v2109_v38 = vsel %vm1907_vm0, %v1880_v42, 0.0 }
 0x2ee   : > { %v2104_v9 = vadd.f32 %v2103_v7, %v2102_v15  ;;  %v4962_v15 = vpop.f32.mrf.mxu3  ;;  %v1883_v7 = vmul.f32 %v4589_v57, %v4589_v57 }
 0x2f0   : > { %v2106_v34 = vadd.f32 %v2105_v62, %v2104_v9  ;;  %v2113_v9 = vsel %vm1907_vm0, %v1882_v55, 0.0  ;;  %v2115_v42 = vsel %vm1907_vm0, %v1883_v7, 0.0  ;;  %v1887_v55 = vmul.f32 %v4667_v19, %v4667_v19 }
 0x2f1   : > { %v2121_v7 = vsel %vm1907_vm0, %v1886_v47, 0.0  ;;  %v1891_v47 = vmul.f32 %v4749_v28, %v4749_v28 }
 0x2f2   : > { %v2108_v2 = vadd.f32 %v2107_v49, %v2106_v34  ;;  %v1884_v49 = vmul.f32 %v4599_v36, %v4599_v36  ;;  %v1440_v36 = vpop.f32.mrf.mxu2 }
 0x2f4   : > { %v2110_v22 = vadd.f32 %v2109_v38, %v2108_v2  ;;  %v1885_v2 = vmul.f32 %v4627_v54, %v4627_v54  ;;  %v2117_v38 = vsel %vm1907_vm0, %v1884_v49, 0.0  ;;  %v2123_v49 = vsel %vm1907_vm0, %v1887_v55, 0.0 }
 0x2f5   : > { %v1892_v55 = vmul.f32 %v4751_v35, %v4751_v35 }
 0x2f6   : > { %v2112_v46 = vadd.f32 %v2111_v18, %v2110_v22  ;;  %v2119_v22 = vsel %vm1907_vm0, %v1885_v2, 0.0 }
 0x2f8   : > { %v2114_v62 = vadd.f32 %v2113_v9, %v2112_v46  ;;  %v1769_v46 = vpop.f32.mrf.mxu3  ;;  %v1888_v9 = vmul.f32 %v4679_v51, %v4679_v51 }
 0x2fa   : > { %v2116_v34 = vadd.f32 %v2115_v42, %v2114_v62  ;;  %v1889_v42 = vmul.f32 %v4707_v10, %v4707_v10  ;;  %v2125_v2 = vsel %vm1907_vm0, %v1888_v9, 0.0  ;;  %v1442_v10 = vpop.f32.mrf.mxu2  ;;  %v2131_v9 = vsel %vm1907_vm0, %v1891_v47, 0.0 }
 0x2fb   : > { %v5009_v47 = vadd.f32 %v4867_v39, %v4865_v31  ;;  %v5023_v31 = vadd.f32 %v4905_v56, %v4903_v52  ;;  %v5037_v52 = vadd.f32 %v4943_v25, %v4941_v30 }
 0x2fc   : > { %v2118_v26 = vadd.f32 %v2117_v38, %v2116_v34  ;;  %v1890_v38 = vmul.f32 %v4715_v33, %v4715_v33 }
 0x2fe   : > { %v2120_v18 = vadd.f32 %v2119_v22, %v2118_v26  ;;  %v2127_v22 = vsel %vm1907_vm0, %v1889_v42, 0.0  ;;  %v2133_v42 = vsel %vm1907_vm0, %v1892_v55, 0.0 }
 0x300   : > { %v2122_v62 = vadd.f32 %v2121_v7, %v2120_v18  ;;  %v2129_v18 = vsel %vm1907_vm0, %v1890_v38, 0.0  ;;  %v5002_v38 = vadd.f32 %v4848_v40, %v4846_v4  ;;  %v5016_v4 = vadd.f32 %v4886_v17, %v4884_v45 }
 0x301   : > { %v5030_v45 = vadd.f32 %v4924_v0, %v4922_v16  ;;  %v5044_v16 = vadd.f32 %v4962_v15, %v4960_v60 }
 0x302   : > { %v2124_v34 = vadd.f32 %v2123_v49, %v2122_v62  ;;  %v1771_v62 = vpop.f32.mrf.mxu3  ;;  %v1893_v49 = vmul.f32 %v4799_v58, %v4799_v58 }
 0x304   : > { %v2126_v26 = vadd.f32 %v2125_v2, %v2124_v34  ;;  %v1894_v2 = vmul.f32 %v4801_v41, %v4801_v41 }
 0x306   : > { %v2128_v19 = vadd.f32 %v2127_v22, %v2126_v26  ;;  %v1895_v22 = vmul.f32 %v4826_v6, %v4826_v6  ;;  %v2137_v55 = vsel %vm1907_vm0, %v1894_v2, 0.0 }
 0x308   : > { %v2130_v7 = vadd.f32 %v2129_v18, %v2128_v19  ;;  %v2135_v19 = vsel %vm1907_vm0, %v1893_v49, 0.0  ;;  %v1897_v49 = vmul.f32 %v5009_v47, %v5009_v47 }
 0x30a   : > { %v2132_v34 = vadd.f32 %v2131_v9, %v2130_v7  ;;  %v1896_v7 = vmul.f32 %v5002_v38, %v5002_v38  ;;  %v2139_v9 = vsel %vm1907_vm0, %v1895_v22, 0.0  ;;  %v1899_v22 = vmul.f32 %v5023_v31, %v5023_v31 }
 0x30c   : > { %v2134_v26 = vadd.f32 %v2133_v42, %v2132_v34  ;;  %v1445_v34 = vpop.f32.mrf.mxu2  ;;  %v1774_v42 = vpop.f32.mrf.mxu3  ;;  %v2141_v2 = vsel %vm1907_vm0, %v1896_v7, 0.0  ;;  %v2147_v7 = vsel %vm1907_vm0, %v1899_v22, 0.0 }
 0x30e   : > { %v2136_v18 = vadd.f32 %v2135_v19, %v2134_v26  ;;  %v1898_v26 = vmul.f32 %v5016_v4, %v5016_v4  ;;  %v2143_v19 = vsel %vm1907_vm0, %v1897_v49, 0.0  ;;  %v1902_v49 = vmul.f32 %v5044_v16, %v5044_v16 }
 0x310   : > { %v2138_v40 = vadd.f32 %v2137_v55, %v2136_v18  ;;  %v2145_v18 = vsel %vm1907_vm0, %v1898_v26, 0.0  ;;  %v1900_v55 = vmul.f32 %v5030_v45, %v5030_v45 }
 0x312   : > { %v2140_v39 = vadd.f32 %v2139_v9, %v2138_v40  ;;  %v1901_v40 = vmul.f32 %v5037_v52, %v5037_v52  ;;  %v5049_v9 = vadd.f32 %v1769_v46, %v1440_v36  ;;  %v2149_v25 = vsel %vm1907_vm0, %v1900_v55, 0.0 }
 0x313   : > { %v2153_v46 = vsel %vm1907_vm0, %v1902_v49, 0.0  ;;  %v4007_v49 = vmov 1024.0  }
 0x314   : > { %v2142_v17 = vadd.f32 %v2141_v2, %v2140_v39  ;;  %v5054_v39 = vadd.f32 %v1771_v62, %v1442_v10  ;;  %v1447_v26 = vpop.f32.mrf.mxu2  ;;  %v1776_v60 = vpop.f32.mrf.mxu3  ;;  %v2151_v15 = vsel %vm1907_vm0, %v1901_v40, 0.0  ;;  %3978 = vrcp.f32 %v4007_v49 }
 0x316   : > { %v2144_v56 = vadd.f32 %v2143_v19, %v2142_v17  ;;  %v1903_v17 = vmul.f32 %v5049_v9, %v5049_v9  ;;  %v5059_v19 = vadd.f32 %v1774_v42, %v1445_v34  ;;  %v1904_v22 = vmul.f32 %v5054_v39, %v5054_v39 }
 0x318   : > { %v2146_v0 = vadd.f32 %v2145_v18, %v2144_v56  ;;  %v5064_v56 = vadd.f32 %v1776_v60, %v1447_v26  ;;  %v2155_v62 = vsel %vm1907_vm0, %v1903_v17, 0.0  ;;  %v1905_v18 = vmul.f32 %v5059_v19, %v5059_v19 }
 0x31a   : > { %v2148_v30 = vadd.f32 %v2147_v7, %v2146_v0  ;;  %7456 = vst [vmem:[#allocation14_spill] sm:$0xff] %v5064_v56  ;;  %v2157_v0 = vsel %vm1907_vm0, %v1904_v22, 0.0  ;;  %v1906_v34 = vmul.f32 %v5064_v56, %v5064_v56  ;;  %v2159_v7 = vsel %vm1907_vm0, %v1905_v18, 0.0  ;;  %v3979_v26 = vpop.eup %3978 }
 0x31b   : > { %vm2174_vm1 = vweird.f32 %v3979_v26 }
 0x31c   : > { %v2150_v2 = vadd.f32 %v2149_v25, %v2148_v30  ;;  %v2161_v30 = vsel %vm1907_vm0, %v1906_v34, 0.0 }
 0x31e   : > { %v2152_v36 = vadd.f32 %v2151_v15, %v2150_v2  ;;  %v2170_v15 = vmul.f32 1024.0, %v3979_v26 }
 0x320   : > { %v2154_v10 = vadd.f32 %v2153_v46, %v2152_v36  ;;  %v2171_v36 = vsub.f32 1.0, %v2170_v15 }
 0x322   : > { %v2156_v55 = vadd.f32 %v2155_v62, %v2154_v10  ;;  %v2172_v22 = vmul.f32 %v3979_v26, %v2171_v36  ;;  %v7459_v36 = vld [vmem:[#allocation52_spill] sm:$0xff] }
 0x324   : > { %v2158_v42 = vadd.f32 %v2157_v0, %v2156_v55  ;;  %v2173_v62 = vadd.f32 %v3979_v26, %v2172_v22  ;;  %v7461_v22 = vld [vmem:[#allocation56_spill] sm:$0xff] }
 0x326   : > { %v2160_v40 = vadd.f32 %v2159_v7, %v2158_v42  ;;  %v2175_v0 = vsel %vm2174_vm1, %v3979_v26, %v2173_v62  ;;  %v7463_v62 = vld [vmem:[#allocation60_spill] sm:$0xff] }
 0x328   : > { %v2162_v25 = vadd.f32 %v2161_v30, %v2160_v40 }
 0x32a   : > { %v2163_v2 = vrot.slane %v2162_v25, 4 }
 0x32c   : > { %v2164_v60 = vadd.f32 %v2163_v2, %v2162_v25 }
 0x32e   : > { %v2165_v17 = vrot.slane %v2164_v60, 2 }
 0x330   : > { %v2166_v46 = vadd.f32 %v2165_v17, %v2164_v60  ;;  %v7458_v17 = vld [vmem:[#allocation50_spill] sm:$0xff] }
 0x332   : > { %v2167_v10 = vrot.slane %v2166_v46, 1 }
 0x334   : > { %v2168_v55 = vadd.f32 %v2167_v10, %v2166_v46  ;;  %v7460_v46 = vld [vmem:[#allocation54_spill] sm:$0xff] }
 0x335   : > { %v7462_v10 = vld [vmem:[#allocation58_spill] sm:$0xff] }
 0x336   : > { %v2176_v18 = vmul.f32 %v2175_v0, %v2168_v55  ;;  %v7464_v0 = vld [vmem:[#allocation62_spill] sm:$0xff] }
 0x338   : > { %v2177_v42 = vadd.f32 1e-06, %v2176_v18 }
 0x33a   : > { %3980 = vrsqrt.f32 %v2177_v42  ;;  %vm2184_vm3 = vweird.f32 %v2177_v42 }
 0x340   : > { %v3981_v34 = vpop.eup %3980 }
 0x341   : > { %v2179_v7 = vmul.f32 %v3981_v34, %v2177_v42  ;;  %vm2185_vm2 = vweird.f32 %v3981_v34  ;;  %v7465_v42 = vld [vmem:[#allocation64_spill] sm:$0xff] }
 0x342   : > { %vm2186_vm4 = vmor %vm2184_vm3, %vm2185_vm2 }
 0x343   : > { %v2180_v40 = vmul.f32 %v3981_v34, %v2179_v7  ;;  %v7466_v7 = vld [vmem:[#allocation66_spill] sm:$0xff] }
 0x345   : > { %v2181_v30 = vmul.f32 0.5, %v2180_v40 }
 0x347   : > { %v2182_v49 = vsub.f32 1.5, %v2181_v30  ;;  %v7467_v30 = vld [vmem:[#allocation68_spill] sm:$0xff] }
 0x349   : > { %v2183_v56 = vmul.f32 %v3981_v34, %v2182_v49 }
 0x34b   : > { %v5074_v25 = vsel %vm2186_vm4, %v3981_v34, %v2183_v56 }
 0x34c   : > { %7457 = vst [vmem:[#allocation16_spill] sm:$0xff] %v5074_v25  ;;  %v5078_v2 = vmul.f32 %v5074_v25, %v7421_v5  ;;  %v5082_v26 = vmul.f32 %v5074_v25, %v7422_v63  ;;  %v5086_v60 = vmul.f32 %v5074_v25, %v7423_v11  ;;  %v5090_v15 = vmul.f32 %v5074_v25, %v7424_v24 }
 0x34d   : > { %v5094_v56 = vmul.f32 %v5074_v25, %v7425_v20  ;;  %v5098_v5 = vmul.f32 %v5074_v25, %v7426_v37  ;;  %v5102_v63 = vmul.f32 %v5074_v25, %v7427_v48  ;;  %v5106_v11 = vmul.f32 %v5074_v25, %v7428_v44 }
 0x34e   : > { %v5110_v24 = vmul.f32 %v5074_v25, %v7429_v32  ;;  %v5114_v20 = vmul.f32 %v5074_v25, %v7430_v29  ;;  %v5118_v37 = vmul.f32 %v5074_v25, %v7431_v14  ;;  %v5122_v48 = vmul.f32 %v5074_v25, %v7432_v43 }
 0x34f   : > { %v5126_v44 = vmul.f32 %v5074_v25, %v7433_v50  ;;  %v5130_v32 = vmul.f32 %v5074_v25, %v7434_v21  ;;  %v5134_v29 = vmul.f32 %v5074_v25, %v7435_v3  ;;  %v5138_v14 = vmul.f32 %v5074_v25, %v7436_v1 }
 0x350   : > { %v5142_v43 = vmul.f32 %v5074_v25, %v7437_v8  ;;  %v5146_v50 = vmul.f32 %v5074_v25, %v7438_v23  ;;  %v5150_v21 = vmul.f32 %v5074_v25, %v7458_v17  ;;  %v5154_v3 = vmul.f32 %v5074_v25, %v7459_v36  ;;  %v7468_v17 = vld [vmem:[#allocation70_spill] sm:$0xff] }
 0x351   : > { %v5158_v1 = vmul.f32 %v5074_v25, %v7460_v46  ;;  %v5162_v8 = vmul.f32 %v5074_v25, %v7461_v22  ;;  %v5166_v23 = vmul.f32 %v5074_v25, %v7462_v10  ;;  %v5170_v55 = vmul.f32 %v5074_v25, %v7463_v62  ;;  %v7469_v46 = vld [vmem:[#allocation72_spill] sm:$0xff] }
 0x352   : > { %v5174_v18 = vmul.f32 %v5074_v25, %v7464_v0  ;;  %v5178_v34 = vmul.f32 %v5074_v25, %v7465_v42  ;;  %v5182_v40 = vmul.f32 %v5074_v25, %v7466_v7  ;;  %v5186_v49 = vmul.f32 %v5074_v25, %v7467_v30  ;;  %v7471_v62 = vld [vmem:[#allocation76_spill] sm:$0xff] }
 0x353   : > { %v5190_v36 = vmul.f32 %v5074_v25, %v7468_v17  ;;  %v5194_v22 = vmul.f32 %v5074_v25, %v7469_v46  ;;  %v5198_v10 = vmul.f32 %v5074_v25, %v7451_v59  ;;  %v5202_v0 = vmul.f32 %v5074_v25, %v7471_v62  ;;  %v7472_v7 = vld [vmem:[#allocation80_spill] sm:$0xff]  ;;  %v7474_v17 = vld [vmem:[#allocation82_spill] sm:$0xff] }
 0x354   : > { %v5206_v42 = vmul.f32 %v5074_v25, %v7453_v53  ;;  %v5210_v30 = vmul.f32 %v5074_v25, %v7472_v7  ;;  %v5214_v46 = vmul.f32 %v5074_v25, %v7474_v17  ;;  %v5218_v59 = vmul.f32 %v5074_v25, %v4502_v13 }
 0x355   : > { %7470 = vst [vmem:[#allocation18_spill] sm:$0xff] %v5198_v10  ;;  %v7476_v10 = vld [vmem:[#allocation85_spill] sm:$0xff]  ;;  %v5226_v53 = vmul.f32 %v5074_v25, %v4527_v27  ;;  %v5230_v7 = vmul.f32 %v5074_v25, %v4553_v61  ;;  %v5238_v13 = vmul.f32 %v5074_v25, %v4589_v57  ;;  %v5246_v27 = vmul.f32 %v5074_v25, %v4627_v54 }
 0x356   : > { %7473 = vst [vmem:[#allocation20_spill] sm:$0xff] %v5210_v30  ;;  %v5222_v62 = vmul.f32 %v5074_v25, %v7476_v10  ;;  %v7478_v30 = vld [vmem:[#allocation89_spill] sm:$0xff]  ;;  %v5250_v61 = vmul.f32 %v5074_v25, %v4639_v12  ;;  %v5258_v57 = vmul.f32 %v5074_v25, %v4679_v51  ;;  %v5266_v54 = vmul.f32 %v5074_v25, %v4715_v33  ;;  %v5287_v33 = vld [vmem:[%s7134_s2] ss:$0 sm:$0xff] }
 0x357   : > { %7475 = vst [vmem:[#allocation22_spill] sm:$0xff] %v5218_v59  ;;  %v5234_v17 = vmul.f32 %v5074_v25, %v7478_v30  ;;  %v7480_v59 = vld [vmem:[#allocation92_spill] sm:$0xff]  ;;  %v5270_v12 = vmul.f32 %v5074_v25, %v4749_v28  ;;  %v5278_v51 = vmul.f32 %v5074_v25, %v4799_v58  ;;  %v5291_v28 = vmul.f32 %v5074_v25, %v4826_v6 }
 0x358   : > { %7477 = vst [vmem:[#allocation24_spill] sm:$0xff] %v5230_v7  ;;  %v5242_v10 = vmul.f32 %v5074_v25, %v7480_v59  ;;  %v7481_v7 = vld [vmem:[#allocation93_spill] sm:$0xff]  ;;  %v5299_v58 = vmul.f32 %v5074_v25, %v5009_v47  ;;  %v5311_v6 = vmul.f32 %v5074_v25, %v5030_v45  ;;  %v5319_v47 = vmul.f32 %v5074_v25, %v5044_v16 }
 0x359   : > { %7479 = vst [vmem:[#allocation26_spill] sm:$0xff] %v5238_v13  ;;  %v5254_v30 = vmul.f32 %v5074_v25, %v7481_v7  ;;  %v7482_v13 = vld [vmem:[#allocation94_spill] sm:$0xff]  ;;  %v5274_v7 = vmul.f32 %v5074_v25, %v4751_v35  ;;  %v5295_v35 = vmul.f32 %v5074_v25, %v5002_v38  ;;  %v5315_v38 = vmul.f32 %v5074_v25, %v5037_v52 }
 0x35a   : > { %v5262_v59 = vmul.f32 %v5074_v25, %v7482_v13  ;;  %v5282_v13 = vmul.f32 %v5074_v25, %v4801_v41  ;;  %7484 = vst [vmem:[#allocation30_spill] sm:$0xff] %v5287_v33  ;;  %v5303_v41 = vmul.f32 %v5074_v25, %v5016_v4  ;;  %v5323_v4 = vmul.f32 %v5074_v25, %v5049_v9 }
 0x35b   : > { %7485 = vst [vmem:[#allocation32_spill] sm:$0xff] %v5311_v6  ;;  %v5331_v45 = vmul.f32 %v5074_v25, %v5059_v19  ;;  %v7486_v6 = vld [vmem:[#allocation14_spill] sm:$0xff]  ;;  %v5339_v16 = vmul.f32 %v5287_v33, %v5078_v2  ;;  %v5343_v9 = vmul.f32 %v5287_v33, %v5082_v26  ;;  %v5351_v19 = vmul.f32 %v5287_v33, %v5090_v15 }
 0x35c   : > { %7483 = vst [vmem:[#allocation28_spill] sm:$0xff] %v5282_v13  ;;  %v5307_v13 = vmul.f32 %v5074_v25, %v5023_v31  ;;  %v5327_v31 = vmul.f32 %v5074_v25, %v5054_v39  ;;  %v5335_v52 = vmul.f32 %v5074_v25, %v7486_v6  ;;  %v5347_v39 = vmul.f32 %v5287_v33, %v5086_v60 }
 0x35d   : > { %v5355_v6 = vmul.f32 %v5287_v33, %v5094_v56  ;;  %v5359_v2 = vmul.f32 %v5287_v33, %v5098_v5  ;;  %v5363_v26 = vmul.f32 %v5287_v33, %v5102_v63  ;;  %v5367_v60 = vmul.f32 %v5287_v33, %v5106_v11 }
 0x35e   : > { %v5371_v15 = vmul.f32 %v5287_v33, %v5110_v24  ;;  %v5375_v56 = vmul.f32 %v5287_v33, %v5114_v20  ;;  %v5379_v5 = vmul.f32 %v5287_v33, %v5118_v37  ;;  %v5383_v63 = vmul.f32 %v5287_v33, %v5122_v48 }
 0x35f   : > { %v5387_v11 = vmul.f32 %v5287_v33, %v5126_v44  ;;  %v5391_v24 = vmul.f32 %v5287_v33, %v5130_v32  ;;  %v5395_v20 = vmul.f32 %v5287_v33, %v5134_v29  ;;  %v5399_v37 = vmul.f32 %v5287_v33, %v5138_v14 }
 0x360   : > { %v5403_v48 = vmul.f32 %v5287_v33, %v5142_v43  ;;  %v5407_v44 = vmul.f32 %v5287_v33, %v5146_v50  ;;  %v5411_v32 = vmul.f32 %v5287_v33, %v5150_v21  ;;  %v5415_v29 = vmul.f32 %v5287_v33, %v5154_v3 }
 0x361   : > { %v5419_v14 = vmul.f32 %v5287_v33, %v5158_v1  ;;  %v5423_v43 = vmul.f32 %v5287_v33, %v5162_v8  ;;  %v5427_v50 = vmul.f32 %v5287_v33, %v5166_v23  ;;  %v5431_v21 = vmul.f32 %v5287_v33, %v5170_v55 }
 0x362   : > { %v5435_v3 = vmul.f32 %v5287_v33, %v5174_v18  ;;  %v5439_v1 = vmul.f32 %v5287_v33, %v5178_v34  ;;  %v5443_v8 = vmul.f32 %v5287_v33, %v5182_v40  ;;  %v5447_v23 = vmul.f32 %v5287_v33, %v5186_v49 }
 0x363   : > { %v5451_v55 = vmul.f32 %v5287_v33, %v5190_v36  ;;  %v5455_v18 = vmul.f32 %v5287_v33, %v5194_v22  ;;  %v5463_v40 = vmul.f32 %v5287_v33, %v5202_v0  ;;  %v5467_v49 = vmul.f32 %v5287_v33, %v5206_v42 }
 0x364   : > { %7487 = vst [vmem:[#allocation34_spill] sm:$0xff] %v5435_v3  ;;  %v7490_v3 = vld [vmem:[#allocation18_spill] sm:$0xff]  ;;  %v5475_v22 = vmul.f32 %v5287_v33, %v5214_v46  ;;  %v5483_v0 = vmul.f32 %v5287_v33, %v5222_v62  ;;  %v5487_v42 = vmul.f32 %v5287_v33, %v5226_v53  ;;  %v5495_v46 = vmul.f32 %v5287_v33, %v5234_v17 }
 0x365   : > { %7488 = vst [vmem:[#allocation36_spill] sm:$0xff] %v5447_v23  ;;  %v5459_v34 = vmul.f32 %v5287_v33, %v7490_v3  ;;  %v7492_v23 = vld [vmem:[#allocation20_spill] sm:$0xff]  ;;  %v5503_v62 = vmul.f32 %v5287_v33, %v5242_v10  ;;  %v5507_v53 = vmul.f32 %v5287_v33, %v5246_v27  ;;  %v5515_v17 = vmul.f32 %v5287_v33, %v5254_v30 }
 0x366   : > { %7489 = vst [vmem:[#allocation38_spill] sm:$0xff] %v5455_v18  ;;  %v5471_v36 = vmul.f32 %v5287_v33, %v7492_v23  ;;  %v7494_v18 = vld [vmem:[#allocation22_spill] sm:$0xff]  ;;  %v5523_v10 = vmul.f32 %v5287_v33, %v5262_v59  ;;  %v5527_v27 = vmul.f32 %v5287_v33, %v5266_v54  ;;  %v5535_v30 = vmul.f32 %v5287_v33, %v5274_v7 }
 0x367   : > { %7491 = vst [vmem:[#allocation40_spill] sm:$0xff] %v5467_v49  ;;  %v5479_v3 = vmul.f32 %v5287_v33, %v7494_v18  ;;  %v7495_v49 = vld [vmem:[#allocation24_spill] sm:$0xff]  ;;  %v5547_v54 = vmul.f32 %v5287_v33, %v5291_v28  ;;  %v5555_v7 = vmul.f32 %v5287_v33, %v5299_v58  ;;  %v5575_v58 = vmul.f32 %v5287_v33, %v5319_v47 }
 0x368   : > { %7493 = vst [vmem:[#allocation42_spill] sm:$0xff] %v5475_v22  ;;  %v5491_v23 = vmul.f32 %v5287_v33, %v7495_v49  ;;  %v7496_v22 = vld [vmem:[#allocation26_spill] sm:$0xff]  ;;  %v5511_v49 = vmul.f32 %v5287_v33, %v5250_v61  ;;  %v5531_v61 = vmul.f32 %v5287_v33, %v5270_v12  ;;  %v5551_v12 = vmul.f32 %v5287_v33, %v5295_v35 }
 0x369   : > { %v5499_v18 = vmul.f32 %v5287_v33, %v7496_v22  ;;  %v5519_v22 = vmul.f32 %v5287_v33, %v5258_v57  ;;  %v5539_v57 = vmul.f32 %v5287_v33, %v5278_v51  ;;  %v5559_v51 = vmul.f32 %v5287_v33, %v5303_v41  ;;  %7502 = vst [vmem:[#allocation74_spill] sm:$0xff] %v5575_v58 }
 0x36a   : > { %v5571_v35 = vmul.f32 %v5287_v33, %v5315_v38  ;;  %v5579_v41 = vmul.f32 %v5287_v33, %v5323_v4  ;;  %v5591_v38 = vmul.f32 %v5287_v33, %v5335_v52  ;;  %v5599_v4 = vld [vmem:[%s7134_s2 + $0x1] ss:$0 sm:$0xff] }
 0x36b   : > { %7497 = vst [vmem:[#allocation44_spill] sm:$0xff] %v5519_v22  ;;  %v7498_v22 = vld [vmem:[#allocation28_spill] sm:$0xff]  ;;  %v5610_v52 = vadd.f32 %v5599_v4, %v5343_v9  ;;  %v5630_v9 = vadd.f32 %v5599_v4, %v5363_v26  ;;  %v5650_v26 = vadd.f32 %v5599_v4, %v5383_v63  ;;  %v5670_v63 = vadd.f32 %v5599_v4, %v5403_v48 }
 0x36c   : > { %v5543_v59 = vmul.f32 %v5287_v33, %v7498_v22  ;;  %v5563_v22 = vmul.f32 %v5287_v33, %v5307_v13  ;;  %7501 = vst [vmem:[#allocation48_spill] sm:$0xff] %v5571_v35  ;;  %v5583_v13 = vmul.f32 %v5287_v33, %v5327_v31  ;;  %v7503_v35 = vld [vmem:[#allocation105_spill] sm:$0xff]  ;;  %v5690_v48 = vadd.f32 %v5599_v4, %v5423_v43 }
 0x36d   : > { %v2251_v47 = vmul.f32 %v5074_v25, %v7503_v35  ;;  %7504 = vst [vmem:[#allocation78_spill] sm:$0xff] %v5599_v4  ;;  %v5614_v35 = vadd.f32 %v5599_v4, %v5347_v39  ;;  %v5634_v39 = vadd.f32 %v5599_v4, %v5367_v60  ;;  %v5654_v60 = vadd.f32 %v5599_v4, %v5387_v11  ;;  %v7534_v25 = vld [vmem:[#allocation36_spill] sm:$0xff] }
 0x36e   : > { %7499 = vst [vmem:[#allocation46_spill] sm:$0xff] %v5543_v59  ;;  %v7500_v59 = vld [vmem:[#allocation32_spill] sm:$0xff]  ;;  %v5674_v11 = vadd.f32 %v5599_v4, %v5407_v44  ;;  %v5694_v44 = vadd.f32 %v5599_v4, %v5427_v50  ;;  %v5710_v43 = vadd.f32 %v5599_v4, %v5443_v8  ;;  %v5714_v50 = vadd.f32 %v5599_v4, %v7534_v25 }
 0x36f   : > { %v5567_v28 = vmul.f32 %v5287_v33, %v7500_v59  ;;  %v5587_v59 = vmul.f32 %v5287_v33, %v5331_v45  ;;  %v2381_v58 = vmul.f32 %v5287_v33, %v2251_v47  ;;  %v5606_v45 = vadd.f32 %v5599_v4, %v5339_v16  ;;  %7507 = vst [vmem:[#allocation54_spill] sm:$0xff] %v5610_v52  ;;  %v7530_v33 = vld [vmem:[#allocation34_spill] sm:$0xff]  ;;  %v7646_v52 = vld [vmem:[#allocation96_spill] sm:$0xff] }
 0x370   : > { %7508 = vst [vmem:[#allocation56_spill] sm:$0xff] %v5614_v35  ;;  %v5618_v47 = vadd.f32 %v5599_v4, %v5351_v19  ;;  %v5626_v16 = vadd.f32 %v5599_v4, %v5359_v2  ;;  %v5638_v19 = vadd.f32 %v5599_v4, %v5371_v15  ;;  %v5646_v2 = vadd.f32 %v5599_v4, %v5379_v5  ;;  %v7644_v35 = vld [vmem:[#allocation95_spill] sm:$0xff] }
 0x371   : > { %v5602_v31 = vadd.f32 %v5599_v4, %v2381_v58  ;;  %7506 = vst [vmem:[#allocation52_spill] sm:$0xff] %v5606_v45  ;;  %v5622_v58 = vadd.f32 %v5599_v4, %v5355_v6  ;;  %v5642_v6 = vadd.f32 %v5599_v4, %v5375_v56  ;;  %v5658_v15 = vadd.f32 %v5599_v4, %v5391_v24  ;;  %v7648_v45 = vld [vmem:[#allocation97_spill] sm:$0xff] }
 0x372   : > { %7509 = vst [vmem:[#allocation58_spill] sm:$0xff] %v5618_v47  ;;  %v5662_v56 = vadd.f32 %v5599_v4, %v5395_v20  ;;  %v5666_v5 = vadd.f32 %v5599_v4, %v5399_v37  ;;  %v5678_v24 = vadd.f32 %v5599_v4, %v5411_v32  ;;  %v5682_v20 = vadd.f32 %v5599_v4, %v5415_v29  ;;  %v7642_v47 = vld [vmem:[#allocation91_spill] sm:$0xff] }
 0x373   : > { %7505 = vst [vmem:[#allocation50_spill] sm:$0xff] %v5602_v31  ;;  %v5686_v37 = vadd.f32 %v5599_v4, %v5419_v14  ;;  %v5698_v32 = vadd.f32 %v5599_v4, %v5431_v21  ;;  %v5702_v29 = vadd.f32 %v5599_v4, %v7530_v33  ;;  %v5706_v14 = vadd.f32 %v5599_v4, %v5439_v1  ;;  %v7650_v31 = vld [vmem:[#allocation98_spill] sm:$0xff] }
 0x374   : > { %7510 = vst [vmem:[#allocation60_spill] sm:$0xff] %v5622_v58  ;;  %v5718_v21 = vadd.f32 %v5599_v4, %v5451_v55  ;;  %v5726_v1 = vadd.f32 %v5599_v4, %v5459_v34  ;;  %v5730_v8 = vadd.f32 %v5599_v4, %v5463_v40  ;;  %v5738_v55 = vadd.f32 %v5599_v4, %v5471_v36  ;;  %v7641_v58 = vld [vmem:[#allocation90_spill] sm:$0xff] }
 0x375   : > { %7511 = vst [vmem:[#allocation62_spill] sm:$0xff] %v5626_v16  ;;  %v5746_v34 = vadd.f32 %v5599_v4, %v5479_v3  ;;  %v5750_v40 = vadd.f32 %v5599_v4, %v5483_v0  ;;  %v5758_v36 = vadd.f32 %v5599_v4, %v5491_v23  ;;  %v5766_v3 = vadd.f32 %v5599_v4, %v5499_v18  ;;  %v7640_v16 = vld [vmem:[#allocation88_spill] sm:$0xff] }
 0x376   : > { %7512 = vst [vmem:[#allocation64_spill] sm:$0xff] %v5630_v9  ;;  %v5770_v0 = vadd.f32 %v5599_v4, %v5503_v62  ;;  %v5778_v23 = vadd.f32 %v5599_v4, %v5511_v49  ;;  %v5790_v62 = vadd.f32 %v5599_v4, %v5523_v10  ;;  %v5798_v49 = vadd.f32 %v5599_v4, %v5531_v61  ;;  %v7639_v9 = vld [vmem:[#allocation87_spill] sm:$0xff] }
 0x377   : > { %7513 = vst [vmem:[#allocation66_spill] sm:$0xff] %v5634_v39  ;;  %v5818_v61 = vadd.f32 %v5599_v4, %v5551_v12  ;;  %v7638_v39 = vld [vmem:[#allocation86_spill] sm:$0xff] }
 0x378   : > { %7514 = vst [vmem:[#allocation68_spill] sm:$0xff] %v5638_v19  ;;  %v7637_v19 = vld [vmem:[#allocation84_spill] sm:$0xff] }
 0x379   : > { %7515 = vst [vmem:[#allocation70_spill] sm:$0xff] %v5642_v6  ;;  %v7636_v6 = vld [vmem:[#allocation83_spill] sm:$0xff] }
 0x37a   : > { %7516 = vst [vmem:[#allocation72_spill] sm:$0xff] %v5646_v2  ;;  %v7635_v2 = vld [vmem:[#allocation81_spill] sm:$0xff] }
 0x37b   : > { %7517 = vst [vmem:[#allocation76_spill] sm:$0xff] %v5650_v26  ;;  %v7634_v26 = vld [vmem:[#allocation79_spill] sm:$0xff] }
 0x37c   : > { %7518 = vst [vmem:[#allocation80_spill] sm:$0xff] %v5654_v60  ;;  %v7633_v60 = vld [vmem:[#allocation77_spill] sm:$0xff] }
 0x37d   : > { %7519 = vst [vmem:[#allocation82_spill] sm:$0xff] %v5658_v15  ;;  %v7632_v15 = vld [vmem:[#allocation75_spill] sm:$0xff] }
 0x37e   : > { %7520 = vst [vmem:[#allocation85_spill] sm:$0xff] %v5662_v56  ;;  %v7631_v56 = vld [vmem:[#allocation73_spill] sm:$0xff] }
 0x37f   : > { %7521 = vst [vmem:[#allocation89_spill] sm:$0xff] %v5666_v5  ;;  %v7630_v5 = vld [vmem:[#allocation71_spill] sm:$0xff] }
 0x380   : > { %7522 = vst [vmem:[#allocation92_spill] sm:$0xff] %v5670_v63  ;;  %v7591_v63 = vld [vmem:[#allocation3_spill] sm:$0xff] }
 0x381   : > { %7523 = vst [vmem:[#allocation93_spill] sm:$0xff] %v5674_v11  ;;  %v7629_v11 = vld [vmem:[#allocation69_spill] sm:$0xff] }
 0x382   : > { %7524 = vst [vmem:[#allocation94_spill] sm:$0xff] %v5678_v24  ;;  %v7628_v24 = vld [vmem:[#allocation67_spill] sm:$0xff] }
 0x383   : > { %7525 = vst [vmem:[#allocation14_spill] sm:$0xff] %v5682_v20  ;;  %v7597_v20 = vld [vmem:[#allocation9_spill] sm:$0xff] }
 0x384   : > { %7526 = vst [vmem:[#allocation18_spill] sm:$0xff] %v5686_v37  ;;  %v7627_v37 = vld [vmem:[#allocation65_spill] sm:$0xff] }
 0x385   : > { %7527 = vst [vmem:[#allocation20_spill] sm:$0xff] %v5690_v48  ;;  %v7596_v48 = vld [vmem:[#allocation8_spill] sm:$0xff] }
 0x386   : > { %7528 = vst [vmem:[#allocation22_spill] sm:$0xff] %v5694_v44  ;;  %v7626_v44 = vld [vmem:[#allocation63_spill] sm:$0xff] }
 0x387   : > { %7529 = vst [vmem:[#allocation24_spill] sm:$0xff] %v5698_v32  ;;  %v7537_v32 = vld [vmem:[#allocation38_spill] sm:$0xff] }
 0x388   : > { %7531 = vst [vmem:[#allocation26_spill] sm:$0xff] %v5702_v29  ;;  %v5722_v33 = vadd.f32 %v5599_v4, %v7537_v32  ;;  %v7624_v29 = vld [vmem:[#allocation59_spill] sm:$0xff] }
 0x389   : > { %7532 = vst [vmem:[#allocation28_spill] sm:$0xff] %v5706_v14  ;;  %v7623_v14 = vld [vmem:[#allocation57_spill] sm:$0xff] }
 0x38a   : > { %7533 = vst [vmem:[#allocation32_spill] sm:$0xff] %v5710_v43  ;;  %v7541_v43 = vld [vmem:[#allocation40_spill] sm:$0xff] }
 0x38b   : > { %7535 = vst [vmem:[#allocation105_spill] sm:$0xff] %v5714_v50  ;;  %v5734_v25 = vadd.f32 %v5599_v4, %v7541_v43  ;;  %v5754_v43 = vadd.f32 %v5599_v4, %v5487_v42  ;;  %v5774_v42 = vadd.f32 %v5599_v4, %v5507_v53  ;;  %v5794_v53 = vadd.f32 %v5599_v4, %v5527_v27  ;;  %v7621_v50 = vld [vmem:[#allocation53_spill] sm:$0xff] }
 0x38c   : > { %7536 = vst [vmem:[#allocation34_spill] sm:$0xff] %v5718_v21  ;;  %v7544_v21 = vld [vmem:[#allocation42_spill] sm:$0xff]  ;;  %v5814_v27 = vadd.f32 %v5599_v4, %v5547_v54  ;;  %v5834_v54 = vadd.f32 %v5599_v4, %v5567_v28  ;;  %v5854_v28 = vadd.f32 %v5599_v4, %v5587_v59  ;;  %v7625_v59 = vld [vmem:[#allocation61_spill] sm:$0xff] }
 0x38d   : > { %7538 = vst [vmem:[#allocation36_spill] sm:$0xff] %v5722_v33  ;;  %v5742_v32 = vadd.f32 %v5599_v4, %v7544_v21  ;;  %v5762_v21 = vadd.f32 %v5599_v4, %v5495_v46  ;;  %v5782_v46 = vadd.f32 %v5599_v4, %v5515_v17  ;;  %v5802_v17 = vadd.f32 %v5599_v4, %v5535_v30  ;;  %v7619_v33 = vld [vmem:[#allocation49_spill] sm:$0xff] }
 0x38e   : > { %7539 = vst [vmem:[#allocation38_spill] sm:$0xff] %v5726_v1  ;;  %v5822_v30 = vadd.f32 %v5599_v4, %v5555_v7  ;;  %v7618_v1 = vld [vmem:[#allocation47_spill] sm:$0xff] }
 0x38f   : > { %7540 = vst [vmem:[#allocation106_spill] sm:$0xff] %v5730_v8  ;;  %v7617_v8 = vld [vmem:[#allocation45_spill] sm:$0xff] }
 0x390   : > { %7542 = vst [vmem:[#allocation40_spill] sm:$0xff] %v5734_v25  ;;  %v7599_v25 = vld [vmem:[#allocation11_spill] sm:$0xff] }
 0x391   : > { %7543 = vst [vmem:[#allocation107_spill] sm:$0xff] %v5738_v55  ;;  %v7616_v55 = vld [vmem:[#allocation43_spill] sm:$0xff] }
 0x392   : > { %7545 = vst [vmem:[#allocation42_spill] sm:$0xff] %v5742_v32  ;;  %v7615_v32 = vld [vmem:[#allocation41_spill] sm:$0xff] }
 0x393   : > { %7546 = vst [vmem:[#allocation108_spill] sm:$0xff] %v5746_v34  ;;  %v7614_v34 = vld [vmem:[#allocation39_spill] sm:$0xff] }
 0x394   : > { %7547 = vst [vmem:[#allocation109_spill] sm:$0xff] %v5750_v40  ;;  %v7613_v40 = vld [vmem:[#allocation37_spill] sm:$0xff] }
 0x395   : > { %7548 = vst [vmem:[#allocation110_spill] sm:$0xff] %v5754_v43  ;;  %v7612_v43 = vld [vmem:[#allocation35_spill] sm:$0xff] }
 0x396   : > { %7549 = vst [vmem:[#allocation111_spill] sm:$0xff] %v5758_v36  ;;  %v7600_v36 = vld [vmem:[#allocation12_spill] sm:$0xff] }
 0x397   : > { %7550 = vst [vmem:[#allocation112_spill] sm:$0xff] %v5762_v21  ;;  %v7556_v21 = vld [vmem:[#allocation44_spill] sm:$0xff] }
 0x398   : > { %7551 = vst [vmem:[#allocation113_spill] sm:$0xff] %v5766_v3  ;;  %v5786_v18 = vadd.f32 %v5599_v4, %v7556_v21  ;;  %v5806_v21 = vadd.f32 %v5599_v4, %v5539_v57  ;;  %v5826_v57 = vadd.f32 %v5599_v4, %v5559_v51  ;;  %v5846_v51 = vadd.f32 %v5599_v4, %v5579_v41  ;;  %v7594_v41 = vld [vmem:[#allocation6_spill] sm:$0xff]  ;;  %v7610_v3 = vld [vmem:[#allocation31_spill] sm:$0xff] }
 0x399   : > { %7552 = vst [vmem:[#allocation114_spill] sm:$0xff] %v5770_v0  ;;  %v7609_v0 = vld [vmem:[#allocation29_spill] sm:$0xff] }
 0x39a   : > { %7553 = vst [vmem:[#allocation115_spill] sm:$0xff] %v5774_v42  ;;  %v7608_v42 = vld [vmem:[#allocation27_spill] sm:$0xff] }
 0x39b   : > { %7554 = vst [vmem:[#allocation116_spill] sm:$0xff] %v5778_v23  ;;  %v7607_v23 = vld [vmem:[#allocation25_spill] sm:$0xff] }
 0x39c   : > { %7555 = vst [vmem:[#allocation117_spill] sm:$0xff] %v5782_v46  ;;  %v7606_v46 = vld [vmem:[#allocation23_spill] sm:$0xff] }
 0x39d   : > { %7557 = vst [vmem:[#allocation44_spill] sm:$0xff] %v5786_v18  ;;  %v7563_v18 = vld [vmem:[#allocation46_spill] sm:$0xff] }
 0x39e   : > { %7558 = vst [vmem:[#allocation118_spill] sm:$0xff] %v5790_v62  ;;  %v5810_v10 = vadd.f32 %v5599_v4, %v7563_v18  ;;  %v5830_v18 = vadd.f32 %v5599_v4, %v5563_v22  ;;  %v5850_v22 = vadd.f32 %v5599_v4, %v5583_v13  ;;  %v7620_v13 = vld [vmem:[#allocation51_spill] sm:$0xff] }
 0x39f   : > { %7559 = vst [vmem:[#allocation119_spill] sm:$0xff] %v5794_v53  ;;  %v7605_v53 = vld [vmem:[#allocation21_spill] sm:$0xff] }
 0x3a0   : > { %7560 = vst [vmem:[#allocation120_spill] sm:$0xff] %v5798_v49  ;;  %v7604_v49 = vld [vmem:[#allocation19_spill] sm:$0xff] }
 0x3a1   : > { %7561 = vst [vmem:[#allocation121_spill] sm:$0xff] %v5802_v17  ;;  %v7603_v17 = vld [vmem:[#allocation17_spill] sm:$0xff] }
 0x3a2   : > { %7562 = vst [vmem:[#allocation122_spill] sm:$0xff] %v5806_v21  ;;  %v7602_v21 = vld [vmem:[#allocation15_spill] sm:$0xff] }
 0x3a3   : > { %7564 = vst [vmem:[#allocation46_spill] sm:$0xff] %v5810_v10  ;;  %v7601_v10 = vld [vmem:[#allocation13_spill] sm:$0xff] }
 0x3a4   : > { %7565 = vst [vmem:[#allocation123_spill] sm:$0xff] %v5814_v27  ;;  %v7571_v27 = vld [vmem:[#allocation48_spill] sm:$0xff] }
 0x3a5   : > { %7566 = vst [vmem:[#allocation124_spill] sm:$0xff] %v5818_v61  ;;  %v5838_v12 = vadd.f32 %v5599_v4, %v7571_v27  ;;  %v7573_v61 = vld [vmem:[#allocation74_spill] sm:$0xff]  ;;  %v5858_v27 = vadd.f32 %v5599_v4, %v5591_v38  ;;  %v7592_v38 = vld [vmem:[#allocation4_spill] sm:$0xff] }
 0x3a6   : > { %7567 = vst [vmem:[#allocation125_spill] sm:$0xff] %v5822_v30  ;;  %v5842_v7 = vadd.f32 %v5599_v4, %v7573_v61  ;;  %v5863_v61 = vld [vmem:[%s7134_s2 + $0x2] ss:$0 sm:$0xff]  ;;  %v7611_v4 = vld [vmem:[#allocation33_spill] sm:$0xff] }
 0x3a7   : > { %7568 = vst [vmem:[#allocation126_spill] sm:$0xff] %v5826_v57  ;;  %v7589_v57 = vld [vmem:[#allocation2_spill] sm:$0xff] }
 0x3a8   : > { %7569 = vst [vmem:[#allocation127_spill] sm:$0xff] %v5830_v18  ;;  %v7595_v18 = vld [vmem:[#allocation7_spill] sm:$0xff] }
 0x3a9   : > { %7570 = vst [vmem:[#allocation128_spill] sm:$0xff] %v5834_v54 }
 0x3aa   : > { %7572 = vst [vmem:[#allocation48_spill] sm:$0xff] %v5838_v12 }
 0x3ab   : > { %7574 = vst [vmem:[#allocation74_spill] sm:$0xff] %v5842_v7  ;;  %v7598_v7 = vld [vmem:[#allocation10_spill] sm:$0xff] }
 0x3ac   : > { %7575 = vst [vmem:[#allocation129_spill] sm:$0xff] %v5846_v51  ;;  %v7593_v51 = vld [vmem:[#allocation5_spill] sm:$0xff] }
 0x3ad   : > { %7576 = vst [vmem:[#allocation130_spill] sm:$0xff] %v5850_v22  ;;  %v7590_v22 = vld [vmem:[#allocation16_spill] sm:$0xff] }
 0x3ae   : > { %7577 = vst [vmem:[#allocation131_spill] sm:$0xff] %v5854_v28  ;;  %v5997_v54 = vmul.f32 %v7590_v22, %v7589_v57  ;;  %v6001_v12 = vmul.f32 %v7590_v22, %v7591_v63  ;;  %v6005_v62 = vmul.f32 %v7590_v22, %v7592_v38  ;;  %v6009_v30 = vmul.f32 %v7590_v22, %v7593_v51 }
 0x3af   : > { %7578 = vst [vmem:[#allocation132_spill] sm:$0xff] %v5858_v27  ;;  %v6013_v28 = vmul.f32 %v7590_v22, %v7594_v41  ;;  %v6017_v57 = vmul.f32 %v7590_v22, %v7595_v18  ;;  %v6021_v63 = vmul.f32 %v7590_v22, %v7596_v48  ;;  %v6025_v38 = vmul.f32 %v7590_v22, %v7597_v20  ;;  %v7622_v27 = vld [vmem:[#allocation55_spill] sm:$0xff] }
 0x3b0   : > { %7579 = vst [vmem:[#allocation133_spill] sm:$0xff] %v5863_v61  ;;  %v6029_v51 = vmul.f32 %v7590_v22, %v7598_v7  ;;  %v6033_v41 = vmul.f32 %v7590_v22, %v7599_v25  ;;  %v6037_v18 = vmul.f32 %v7590_v22, %v7600_v36  ;;  %v6041_v48 = vmul.f32 %v7590_v22, %v7601_v10  ;;  %v7652_v61 = vld [vmem:[#allocation99_spill] sm:$0xff] }
 0x3b1   : > { %v6045_v20 = vmul.f32 %v7590_v22, %v7602_v21  ;;  %v6049_v7 = vmul.f32 %v7590_v22, %v7603_v17  ;;  %v6053_v25 = vmul.f32 %v7590_v22, %v7604_v49  ;;  %v6057_v36 = vmul.f32 %v7590_v22, %v7605_v53 }
 0x3b2   : > { %v6061_v10 = vmul.f32 %v7590_v22, %v7606_v46  ;;  %v6065_v21 = vmul.f32 %v7590_v22, %v7607_v23  ;;  %v6069_v17 = vmul.f32 %v7590_v22, %v7608_v42  ;;  %v6073_v49 = vmul.f32 %v7590_v22, %v7609_v0 }
 0x3b3   : > { %v6077_v53 = vmul.f32 %v7590_v22, %v7610_v3  ;;  %v6081_v46 = vmul.f32 %v7590_v22, %v7611_v4  ;;  %v6085_v23 = vmul.f32 %v7590_v22, %v7612_v43  ;;  %v6089_v42 = vmul.f32 %v7590_v22, %v7613_v40 }
 0x3b4   : > { %v6093_v0 = vmul.f32 %v7590_v22, %v7614_v34  ;;  %v6097_v3 = vmul.f32 %v7590_v22, %v7615_v32  ;;  %v6101_v4 = vmul.f32 %v7590_v22, %v7616_v55  ;;  %v6105_v43 = vmul.f32 %v7590_v22, %v7617_v8 }
 0x3b5   : > { %v6109_v40 = vmul.f32 %v7590_v22, %v7618_v1  ;;  %v6113_v34 = vmul.f32 %v7590_v22, %v7619_v33  ;;  %v6117_v32 = vmul.f32 %v7590_v22, %v7620_v13  ;;  %v6121_v55 = vmul.f32 %v7590_v22, %v7621_v50 }
 0x3b6   : > { %v6125_v8 = vmul.f32 %v7590_v22, %v7622_v27  ;;  %v6129_v1 = vmul.f32 %v7590_v22, %v7623_v14  ;;  %v6133_v33 = vmul.f32 %v7590_v22, %v7624_v29  ;;  %v6137_v13 = vmul.f32 %v7590_v22, %v7625_v59 }
 0x3b7   : > { %v6141_v50 = vmul.f32 %v7590_v22, %v7626_v44  ;;  %v6145_v27 = vmul.f32 %v7590_v22, %v7627_v37  ;;  %v6149_v14 = vmul.f32 %v7590_v22, %v7628_v24  ;;  %v6153_v29 = vmul.f32 %v7590_v22, %v7629_v11 }
 0x3b8   : > { %v6157_v59 = vmul.f32 %v7590_v22, %v7630_v5  ;;  %v6161_v44 = vmul.f32 %v7590_v22, %v7631_v56  ;;  %v6165_v37 = vmul.f32 %v7590_v22, %v7632_v15  ;;  %v6169_v24 = vmul.f32 %v7590_v22, %v7633_v60 }
 0x3b9   : > { %v6173_v11 = vmul.f32 %v7590_v22, %v7634_v26  ;;  %v6177_v5 = vmul.f32 %v7590_v22, %v7635_v2  ;;  %v6181_v56 = vmul.f32 %v7590_v22, %v7636_v6  ;;  %v6185_v15 = vmul.f32 %v7590_v22, %v7637_v19 }
 0x3ba   : > { %v6189_v60 = vmul.f32 %v7590_v22, %v7638_v39  ;;  %v6193_v26 = vmul.f32 %v7590_v22, %v7639_v9  ;;  %v6197_v2 = vmul.f32 %v7590_v22, %v7640_v16  ;;  %v6201_v6 = vmul.f32 %v7590_v22, %v7641_v58 }
 0x3bb   : > { %v6205_v19 = vmul.f32 %v7590_v22, %v7642_v47  ;;  %v6209_v39 = vmul.f32 %v7590_v22, %v7644_v35  ;;  %v6213_v9 = vmul.f32 %v7590_v22, %v7646_v52  ;;  %v6217_v16 = vmul.f32 %v7590_v22, %v7648_v45 }
 0x3bc   : > { %v6221_v58 = vmul.f32 %v7590_v22, %v7650_v31  ;;  %v6225_v47 = vmul.f32 %v7590_v22, %v7652_v61 }
 0x3bd   : > { %7643 = vst [vmem:[#allocation2_spill] sm:$0xff] %v6205_v19  ;;  %v7654_v19 = vld [vmem:[#allocation100_spill] sm:$0xff] }
 0x3be   : > { %7645 = vst [vmem:[#allocation16_spill] sm:$0xff] %v6209_v39  ;;  %v6229_v35 = vmul.f32 %v7590_v22, %v7654_v19  ;;  %v7656_v39 = vld [vmem:[#allocation101_spill] sm:$0xff] }
 0x3bf   : > { %7647 = vst [vmem:[#allocation3_spill] sm:$0xff] %v6213_v9  ;;  %v6233_v52 = vmul.f32 %v7590_v22, %v7656_v39  ;;  %v7657_v9 = vld [vmem:[#allocation102_spill] sm:$0xff] }
 0x3c0   : > { %7649 = vst [vmem:[#allocation4_spill] sm:$0xff] %v6217_v16  ;;  %v6237_v45 = vmul.f32 %v7590_v22, %v7657_v9  ;;  %v7658_v16 = vld [vmem:[#allocation103_spill] sm:$0xff] }
 0x3c1   : > { %7651 = vst [vmem:[#allocation5_spill] sm:$0xff] %v6221_v58  ;;  %v6241_v31 = vmul.f32 %v7590_v22, %v7658_v16  ;;  %v7660_v58 = vld [vmem:[#allocation104_spill] sm:$0xff] }
 0x3c2   : > { %7653 = vst [vmem:[#allocation6_spill] sm:$0xff] %v6225_v47  ;;  %v6245_v61 = vmul.f32 %v7590_v22, %v7660_v58  ;;  %v7661_v47 = vld [vmem:[#allocation30_spill] sm:$0xff] }
 0x3c3   : > { %7655 = vst [vmem:[#allocation7_spill] sm:$0xff] %v6229_v35  ;;  %v2318_v19 = vmul.f32 %v7661_v47, %v5997_v54  ;;  %v2319_v35 = vmul.f32 %v7661_v47, %v6001_v12  ;;  %v2320_v39 = vmul.f32 %v7661_v47, %v6005_v62  ;;  %v2321_v9 = vmul.f32 %v7661_v47, %v6009_v30 }
 0x3c4   : > { %7659 = vst [vmem:[#allocation8_spill] sm:$0xff] %v6241_v31  ;;  %v2322_v16 = vmul.f32 %v7661_v47, %v6013_v28  ;;  %v2323_v31 = vmul.f32 %v7661_v47, %v6017_v57  ;;  %v2324_v22 = vmul.f32 %v7661_v47, %v6021_v63  ;;  %v6263_v54 = vmul.f32 %v7661_v47, %v6025_v38 }
 0x3c5   : > { %v6267_v12 = vmul.f32 %v7661_v47, %v6029_v51  ;;  %v6271_v62 = vmul.f32 %v7661_v47, %v6033_v41  ;;  %v6275_v30 = vmul.f32 %v7661_v47, %v6037_v18  ;;  %v6279_v28 = vmul.f32 %v7661_v47, %v6041_v48 }
 0x3c6   : > { %v6283_v57 = vmul.f32 %v7661_v47, %v6045_v20  ;;  %v6287_v63 = vmul.f32 %v7661_v47, %v6049_v7  ;;  %v6291_v38 = vmul.f32 %v7661_v47, %v6053_v25  ;;  %v6295_v51 = vmul.f32 %v7661_v47, %v6057_v36 }
 0x3c7   : > { %v6299_v41 = vmul.f32 %v7661_v47, %v6061_v10  ;;  %v6303_v18 = vmul.f32 %v7661_v47, %v6065_v21  ;;  %v6307_v48 = vmul.f32 %v7661_v47, %v6069_v17  ;;  %v6311_v20 = vmul.f32 %v7661_v47, %v6073_v49 }
 0x3c8   : > { %v6315_v7 = vmul.f32 %v7661_v47, %v6077_v53  ;;  %v6319_v25 = vmul.f32 %v7661_v47, %v6081_v46  ;;  %v6323_v36 = vmul.f32 %v7661_v47, %v6085_v23  ;;  %v6327_v10 = vmul.f32 %v7661_v47, %v6089_v42 }
 0x3c9   : > { %v6331_v21 = vmul.f32 %v7661_v47, %v6093_v0  ;;  %v6335_v17 = vmul.f32 %v7661_v47, %v6097_v3  ;;  %v6339_v49 = vmul.f32 %v7661_v47, %v6101_v4  ;;  %v6343_v53 = vmul.f32 %v7661_v47, %v6105_v43 }
 0x3ca   : > { %v6347_v46 = vmul.f32 %v7661_v47, %v6109_v40  ;;  %v6351_v23 = vmul.f32 %v7661_v47, %v6113_v34  ;;  %v6355_v42 = vmul.f32 %v7661_v47, %v6117_v32  ;;  %v6359_v0 = vmul.f32 %v7661_v47, %v6121_v55 }
 0x3cb   : > { %v6363_v3 = vmul.f32 %v7661_v47, %v6125_v8  ;;  %v6367_v4 = vmul.f32 %v7661_v47, %v6129_v1  ;;  %v6371_v43 = vmul.f32 %v7661_v47, %v6133_v33  ;;  %v6375_v40 = vmul.f32 %v7661_v47, %v6137_v13 }
 0x3cc   : > { %v6379_v34 = vmul.f32 %v7661_v47, %v6141_v50  ;;  %v6383_v32 = vmul.f32 %v7661_v47, %v6145_v27  ;;  %v6387_v55 = vmul.f32 %v7661_v47, %v6149_v14  ;;  %v6391_v8 = vmul.f32 %v7661_v47, %v6153_v29  ;;  %v7662_v50 = vld [vmem:[#allocation78_spill] sm:$0xff] }
 0x3cd   : > { %v6395_v1 = vmul.f32 %v7661_v47, %v6157_v59  ;;  %v6399_v33 = vmul.f32 %v7661_v47, %v6161_v44  ;;  %v6403_v13 = vmul.f32 %v7661_v47, %v6165_v37  ;;  %v2448_v27 = vadd.f32 %v7662_v50, %v2318_v19  ;;  %v7668_v19 = vld [vmem:[#allocation2_spill] sm:$0xff] }
 0x3ce   : > { %v6408_v14 = vmul.f32 %v7661_v47, %v6169_v24  ;;  %v6412_v29 = vmul.f32 %v7661_v47, %v6173_v11  ;;  %v6416_v59 = vmul.f32 %v7661_v47, %v6177_v5  ;;  %v2449_v44 = vadd.f32 %v7662_v50, %v2319_v35 }
 0x3cf   : > { %v6421_v37 = vmul.f32 %v7661_v47, %v6181_v56  ;;  %v6425_v58 = vmul.f32 %v7661_v47, %v6185_v15  ;;  %v6429_v24 = vmul.f32 %v7661_v47, %v6189_v60  ;;  %v2450_v11 = vadd.f32 %v7662_v50, %v2320_v39 }
 0x3d0   : > { %v6434_v5 = vmul.f32 %v7661_v47, %v6193_v26  ;;  %v6438_v35 = vmul.f32 %v7661_v47, %v6197_v2  ;;  %v6442_v56 = vmul.f32 %v7661_v47, %v6201_v6  ;;  %v2451_v15 = vadd.f32 %v7662_v50, %v2321_v9  ;;  %v7673_v2 = vld [vmem:[#allocation3_spill] sm:$0xff]  ;;  %v7675_v6 = vld [vmem:[#allocation4_spill] sm:$0xff] }
 0x3d1   : > { %7663 = vst [vmem:[#allocation9_spill] sm:$0xff] %v6425_v58  ;;  %v6447_v60 = vmul.f32 %v7661_v47, %v7668_v19  ;;  %v2452_v26 = vadd.f32 %v7662_v50, %v2322_v16  ;;  %v2453_v9 = vadd.f32 %v7662_v50, %v2323_v31  ;;  %v6481_v31 = vmul.f32 %v7661_v47, %v6233_v52 }
 0x3d2   : > { %7664 = vst [vmem:[#allocation10_spill] sm:$0xff] %v6429_v24  ;;  %v7670_v24 = vld [vmem:[#allocation16_spill] sm:$0xff]  ;;  %v2457_v52 = vadd.f32 %v7662_v50, %v6271_v62  ;;  %v2460_v62 = vadd.f32 %v7662_v50, %v6283_v57 }
 0x3d3   : > { %7665 = vst [vmem:[#allocation11_spill] sm:$0xff] %v6434_v5  ;;  %v6451_v39 = vmul.f32 %v7661_v47, %v7670_v24  ;;  %v7672_v5 = vld [vmem:[#allocation133_spill] sm:$0xff] }
 0x3d4   : > { %7666 = vst [vmem:[#allocation12_spill] sm:$0xff] %v6438_v35  ;;  %v2578_v58 = vmax.f32 %v2448_v27, %v7672_v5  ;;  %v6457_v35 = vmul.f32 %v7661_v47, %v7673_v2  ;;  %v2579_v19 = vmax.f32 %v2449_v44, %v7672_v5  ;;  %v2454_v27 = vadd.f32 %v7662_v50, %v2324_v22 }
 0x3d5   : > { %7667 = vst [vmem:[#allocation13_spill] sm:$0xff] %v6442_v56  ;;  %v6461_v56 = vmul.f32 %v7661_v47, %v7675_v6  ;;  %v2580_v2 = vmax.f32 %v2450_v11, %v7672_v5  ;;  %v2455_v44 = vadd.f32 %v7662_v50, %v6263_v54  ;;  %v2456_v22 = vadd.f32 %v7662_v50, %v6267_v12 }
 0x3d6   : > { %7669 = vst [vmem:[#allocation15_spill] sm:$0xff] %v6447_v60  ;;  %v7676_v60 = vld [vmem:[#allocation5_spill] sm:$0xff]  ;;  %v2582_v11 = vmax.f32 %v2452_v26, %v7672_v5  ;;  %v2583_v54 = vmax.f32 %v2453_v9, %v7672_v5  ;;  %v2458_v12 = vadd.f32 %v7662_v50, %v6275_v30  ;;  %v2462_v30 = vadd.f32 %v7662_v50, %v6291_v38 }
 0x3d7   : > { %7671 = vst [vmem:[#allocation17_spill] sm:$0xff] %v6451_v39  ;;  %v6467_v24 = vmul.f32 %v7661_v47, %v7676_v60  ;;  %v7677_v39 = vld [vmem:[#allocation6_spill] sm:$0xff]  ;;  %v2581_v60 = vmax.f32 %v2451_v15, %v7672_v5  ;;  %v2707_v15 = vmax.f32 %v2579_v19, 0.0  ;;  %v2708_v26 = vmax.f32 %v2580_v2, 0.0 }
 0x3d8   : > { %7674 = vst [vmem:[#allocation19_spill] sm:$0xff] %v6457_v35  ;;  %v6471_v16 = vmul.f32 %v7661_v47, %v7677_v39  ;;  %v7679_v35 = vld [vmem:[#allocation7_spill] sm:$0xff]  ;;  %v6488_v39 = vmul.f32 %v7661_v47, %v6237_v45  ;;  %v6503_v45 = vmul.f32 %v7661_v47, %v6245_v61  ;;  %v2585_v9 = vmax.f32 %v2455_v44, %v7672_v5 }
 0x3d9   : > { %v6477_v6 = vmul.f32 %v7661_v47, %v7679_v35  ;;  %v2706_v35 = vmax.f32 %v2578_v58, 0.0  ;;  %v2584_v58 = vmax.f32 %v2454_v27, %v7672_v5  ;;  %v2709_v19 = vmax.f32 %v2581_v60, 0.0 }
 0x3da   : > { %7678 = vst [vmem:[#allocation21_spill] sm:$0xff] %v6471_v16  ;;  %v2710_v61 = vmax.f32 %v2582_v11, 0.0  ;;  %v2711_v57 = vmax.f32 %v2583_v54, 0.0  ;;  %v2835_v27 = vpack.c.bf16 %v2707_v15, %v2707_v15  ;;  %v2588_v2 = vmax.f32 %v2458_v12, %v7672_v5 }
 0x3db   : > { %7680 = vst [vmem:[#allocation23_spill] sm:$0xff] %v6477_v6  ;;  %v7681_v6 = vld [vmem:[#allocation8_spill] sm:$0xff]  ;;  %v2712_v44 = vmax.f32 %v2584_v58, 0.0  ;;  %v2836_v60 = vpack.c.bf16 %v2708_v26, %v2708_v26  ;;  %v2713_v11 = vmax.f32 %v2585_v9, 0.0  ;;  %v2464_v38 = vadd.f32 %v7662_v50, %v6299_v41 }
 0x3dc   : > { %v6495_v16 = vmul.f32 %v7661_v47, %v7681_v6  ;;  %7683 = vst [vmem:[#allocation27_spill] sm:$0xff] %v6503_v45  ;;  %v2459_v6 = vadd.f32 %v7662_v50, %v6279_v28  ;;  %v2586_v47 = vmax.f32 %v2456_v22, %v7672_v5  ;;  %v2834_v45 = vpack.c.bf16 %v2706_v35, %v2706_v35 }
 0x3dd   : > { %v2587_v28 = vmax.f32 %v2457_v52, %v7672_v5  ;;  %v2837_v35 = vpack.c.bf16 %v2709_v19, %v2709_v19  ;;  %v2590_v52 = vmax.f32 %v2460_v62, %v7672_v5  ;;  %v2838_v15 = vpack.c.bf16 %v2710_v61, %v2710_v61  ;;  %2964 = vst.msk [vmem:[%s6519_s10 + $0x4] sm:$0xf] %vm2962_vm5, %v2835_v27 }
 0x3de   : > { %7682 = vst [vmem:[#allocation25_spill] sm:$0xff] %v6495_v16  ;;  %v2461_v16 = vadd.f32 %v7662_v50, %v6287_v63  ;;  %v2463_v63 = vadd.f32 %v7662_v50, %v6295_v51  ;;  %v2589_v22 = vmax.f32 %v2459_v6, %v7672_v5  ;;  %v2714_v54 = vmax.f32 %v2586_v47, 0.0 }
 0x3df   : > { %2963 = vst.msk [vmem:[%s6519_s10] sm:$0xf] %vm2962_vm5, %v2834_v45  ;;  %v2465_v51 = vadd.f32 %v7662_v50, %v6303_v18  ;;  %v2715_v58 = vmax.f32 %v2587_v28, 0.0  ;;  %v2839_v26 = vpack.c.bf16 %v2711_v57, %v2711_v57  ;;  %v2466_v41 = vadd.f32 %v7662_v50, %v6307_v48 }
 0x3e0   : > { %v2591_v12 = vmax.f32 %v2461_v16, %v7672_v5  ;;  %v2592_v6 = vmax.f32 %v2462_v30, %v7672_v5  ;;  %v2716_v62 = vmax.f32 %v2588_v2, 0.0  ;;  %v2840_v9 = vpack.c.bf16 %v2712_v44, %v2712_v44  ;;  %2965 = vst.msk [vmem:[%s6519_s10 + $0x8] sm:$0xf] %vm2962_vm5, %v2836_v60 }
 0x3e1   : > { %v2467_v18 = vadd.f32 %v7662_v50, %v6311_v20  ;;  %v2593_v16 = vmax.f32 %v2463_v63, %v7672_v5  ;;  %v2717_v45 = vmax.f32 %v2589_v22, 0.0  ;;  %v2841_v19 = vpack.c.bf16 %v2713_v11, %v2713_v11  ;;  %2966 = vst.msk [vmem:[%s6519_s10 + $0xc] sm:$0xf] %vm2962_vm5, %v2837_v35 }
 0x3e2   : > { %v2468_v48 = vadd.f32 %v7662_v50, %v6315_v7  ;;  %v2594_v47 = vmax.f32 %v2464_v38, %v7672_v5  ;;  %v2718_v61 = vmax.f32 %v2590_v52, 0.0  ;;  %v2842_v30 = vpack.c.bf16 %v2714_v54, %v2714_v54  ;;  %2967 = vst.msk [vmem:[%s6519_s10 + $0x10] sm:$0xf] %vm2962_vm5, %v2838_v15 }
 0x3e3   : > { %v2469_v20 = vadd.f32 %v7662_v50, %v6319_v25  ;;  %v2595_v28 = vmax.f32 %v2465_v51, %v7672_v5  ;;  %v2719_v57 = vmax.f32 %v2591_v12, 0.0  ;;  %v2843_v27 = vpack.c.bf16 %v2715_v58, %v2715_v58  ;;  %2968 = vst.msk [vmem:[%s6519_s10 + $0x14] sm:$0xf] %vm2962_vm5, %v2839_v26 }
 0x3e4   : > { %v2470_v7 = vadd.f32 %v7662_v50, %v6323_v36  ;;  %v2596_v63 = vmax.f32 %v2466_v41, %v7672_v5  ;;  %v2720_v2 = vmax.f32 %v2592_v6, 0.0  ;;  %v2844_v44 = vpack.c.bf16 %v2716_v62, %v2716_v62  ;;  %2969 = vst.msk [vmem:[%s6519_s10 + $0x18] sm:$0xf] %vm2962_vm5, %v2840_v9 }
 0x3e5   : > { %v2471_v25 = vadd.f32 %v7662_v50, %v6327_v10  ;;  %v2597_v60 = vmax.f32 %v2467_v18, %v7672_v5  ;;  %v2721_v22 = vmax.f32 %v2593_v16, 0.0  ;;  %v2845_v11 = vpack.c.bf16 %v2717_v45, %v2717_v45  ;;  %2970 = vst.msk [vmem:[%s6519_s10 + $0x1c] sm:$0xf] %vm2962_vm5, %v2841_v19 }
 0x3e6   : > { %v2472_v36 = vadd.f32 %v7662_v50, %v6331_v21  ;;  %v2598_v35 = vmax.f32 %v2468_v48, %v7672_v5  ;;  %v2722_v38 = vmax.f32 %v2594_v47, 0.0  ;;  %v2846_v52 = vpack.c.bf16 %v2718_v61, %v2718_v61  ;;  %2971 = vst.msk [vmem:[%s6519_s10 + $0x20] sm:$0xf] %vm2962_vm5, %v2842_v30 }
 0x3e7   : > { %v2473_v10 = vadd.f32 %v7662_v50, %v6335_v17  ;;  %v2599_v54 = vmax.f32 %v2469_v20, %v7672_v5  ;;  %v2723_v15 = vmax.f32 %v2595_v28, 0.0  ;;  %v2847_v51 = vpack.c.bf16 %v2719_v57, %v2719_v57  ;;  %2972 = vst.msk [vmem:[%s6519_s10 + $0x24] sm:$0xf] %vm2962_vm5, %v2843_v27 }
 0x3e8   : > { %v2474_v21 = vadd.f32 %v7662_v50, %v6339_v49  ;;  %v2600_v12 = vmax.f32 %v2470_v7, %v7672_v5  ;;  %v2724_v58 = vmax.f32 %v2596_v63, 0.0  ;;  %v2848_v26 = vpack.c.bf16 %v2720_v2, %v2720_v2  ;;  %2973 = vst.msk [vmem:[%s6519_s10 + $0x28] sm:$0xf] %vm2962_vm5, %v2844_v44 }
 0x3e9   : > { %v2475_v17 = vadd.f32 %v7662_v50, %v6343_v53  ;;  %v2601_v41 = vmax.f32 %v2471_v25, %v7672_v5  ;;  %v2725_v6 = vmax.f32 %v2597_v60, 0.0  ;;  %v2849_v62 = vpack.c.bf16 %v2721_v22, %v2721_v22  ;;  %2974 = vst.msk [vmem:[%s6519_s10 + $0x2c] sm:$0xf] %vm2962_vm5, %v2845_v11 }
 0x3ea   : > { %v2476_v49 = vadd.f32 %v7662_v50, %v6347_v46  ;;  %v2602_v9 = vmax.f32 %v2472_v36, %v7672_v5  ;;  %v2726_v18 = vmax.f32 %v2598_v35, 0.0  ;;  %v2850_v16 = vpack.c.bf16 %v2722_v38, %v2722_v38  ;;  %2975 = vst.msk [vmem:[%s6519_s10 + $0x30] sm:$0xf] %vm2962_vm5, %v2846_v52 }
 0x3eb   : > { %v2477_v53 = vadd.f32 %v7662_v50, %v6351_v23  ;;  %v2603_v45 = vmax.f32 %v2473_v10, %v7672_v5  ;;  %v2727_v19 = vmax.f32 %v2599_v54, 0.0  ;;  %v2851_v48 = vpack.c.bf16 %v2723_v15, %v2723_v15  ;;  %2976 = vst.msk [vmem:[%s6519_s10 + $0x34] sm:$0xf] %vm2962_vm5, %v2847_v51 }
 0x3ec   : > { %v2478_v46 = vadd.f32 %v7662_v50, %v6355_v42  ;;  %v2604_v47 = vmax.f32 %v2474_v21, %v7672_v5  ;;  %v2728_v61 = vmax.f32 %v2600_v12, 0.0  ;;  %v2852_v30 = vpack.c.bf16 %v2724_v58, %v2724_v58  ;;  %2977 = vst.msk [vmem:[%s6519_s10 + $0x38] sm:$0xf] %vm2962_vm5, %v2848_v26 }
 0x3ed   : > { %v2479_v23 = vadd.f32 %v7662_v50, %v6359_v0  ;;  %v2605_v20 = vmax.f32 %v2475_v17, %v7672_v5  ;;  %v2729_v28 = vmax.f32 %v2601_v41, 0.0  ;;  %v2853_v57 = vpack.c.bf16 %v2725_v6, %v2725_v6  ;;  %2978 = vst.msk [vmem:[%s6519_s10 + $0x3c] sm:$0xf] %vm2962_vm5, %v2849_v62 }
 0x3ee   : > { %v2480_v42 = vadd.f32 %v7662_v50, %v6363_v3  ;;  %v2606_v27 = vmax.f32 %v2476_v49, %v7672_v5  ;;  %v2730_v7 = vmax.f32 %v2602_v9, 0.0  ;;  %v2854_v63 = vpack.c.bf16 %v2726_v18, %v2726_v18  ;;  %2979 = vst.msk [vmem:[%s6519_s10 + $0x40] sm:$0xf] %vm2962_vm5, %v2850_v16 }
 0x3ef   : > { %v2481_v0 = vadd.f32 %v7662_v50, %v6367_v4  ;;  %v2607_v2 = vmax.f32 %v2477_v53, %v7672_v5  ;;  %v2731_v44 = vmax.f32 %v2603_v45, 0.0  ;;  %v2855_v25 = vpack.c.bf16 %v2727_v19, %v2727_v19  ;;  %2980 = vst.msk [vmem:[%s6519_s10 + $0x44] sm:$0xf] %vm2962_vm5, %v2851_v48 }
 0x3f0   : > { %v2482_v3 = vadd.f32 %v7662_v50, %v6371_v43  ;;  %v2608_v60 = vmax.f32 %v2478_v46, %v7672_v5  ;;  %v2732_v22 = vmax.f32 %v2604_v47, 0.0  ;;  %v2856_v11 = vpack.c.bf16 %v2728_v61, %v2728_v61  ;;  %2981 = vst.msk [vmem:[%s6519_s10 + $0x48] sm:$0xf] %vm2962_vm5, %v2852_v30 }
 0x3f1   : > { %v2483_v4 = vadd.f32 %v7662_v50, %v6375_v40  ;;  %v2609_v36 = vmax.f32 %v2479_v23, %v7672_v5  ;;  %v2733_v35 = vmax.f32 %v2605_v20, 0.0  ;;  %v2857_v38 = vpack.c.bf16 %v2729_v28, %v2729_v28  ;;  %2982 = vst.msk [vmem:[%s6519_s10 + $0x4c] sm:$0xf] %vm2962_vm5, %v2853_v57 }
 0x3f2   : > { %v2484_v43 = vadd.f32 %v7662_v50, %v6379_v34  ;;  %v2610_v52 = vmax.f32 %v2480_v42, %v7672_v5  ;;  %v2734_v10 = vmax.f32 %v2606_v27, 0.0  ;;  %v2858_v54 = vpack.c.bf16 %v2730_v7, %v2730_v7  ;;  %2983 = vst.msk [vmem:[%s6519_s10 + $0x50] sm:$0xf] %vm2962_vm5, %v2854_v63 }
 0x3f3   : > { %v2485_v40 = vadd.f32 %v7662_v50, %v6383_v32  ;;  %v2611_v15 = vmax.f32 %v2481_v0, %v7672_v5  ;;  %v2735_v51 = vmax.f32 %v2607_v2, 0.0  ;;  %v2859_v21 = vpack.c.bf16 %v2731_v44, %v2731_v44  ;;  %2984 = vst.msk [vmem:[%s6519_s10 + $0x54] sm:$0xf] %vm2962_vm5, %v2855_v25  ;;  %v7684_v0 = vld [vmem:[#allocation9_spill] sm:$0xff] }
 0x3f4   : > { %v2486_v34 = vadd.f32 %v7662_v50, %v6387_v55  ;;  %v2612_v12 = vmax.f32 %v2482_v3, %v7672_v5  ;;  %v2736_v58 = vmax.f32 %v2608_v60, 0.0  ;;  %v2860_v26 = vpack.c.bf16 %v2732_v22, %v2732_v22  ;;  %2985 = vst.msk [vmem:[%s6519_s10 + $0x58] sm:$0xf] %vm2962_vm5, %v2856_v11  ;;  %v7685_v3 = vld [vmem:[#allocation10_spill] sm:$0xff] }
 0x3f5   : > { %v2487_v32 = vadd.f32 %v7662_v50, %v6391_v8  ;;  %v2613_v17 = vmax.f32 %v2483_v4, %v7672_v5  ;;  %v2737_v41 = vmax.f32 %v2609_v36, 0.0  ;;  %v2861_v6 = vpack.c.bf16 %v2733_v35, %v2733_v35  ;;  %2986 = vst.msk [vmem:[%s6519_s10 + $0x5c] sm:$0xf] %vm2962_vm5, %v2857_v38  ;;  %v7686_v4 = vld [vmem:[#allocation11_spill] sm:$0xff] }
 0x3f6   : > { %v2488_v55 = vadd.f32 %v7662_v50, %v6395_v1  ;;  %v2614_v62 = vmax.f32 %v2484_v43, %v7672_v5  ;;  %v2738_v49 = vmax.f32 %v2610_v52, 0.0  ;;  %v2862_v9 = vpack.c.bf16 %v2734_v10, %v2734_v10  ;;  %2987 = vst.msk [vmem:[%s6519_s10 + $0x60] sm:$0xf] %vm2962_vm5, %v2858_v54  ;;  %v7687_v52 = vld [vmem:[#allocation12_spill] sm:$0xff] }
 0x3f7   : > { %v2489_v8 = vadd.f32 %v7662_v50, %v6399_v33  ;;  %v2615_v18 = vmax.f32 %v2485_v40, %v7672_v5  ;;  %v2739_v16 = vmax.f32 %v2611_v15, 0.0  ;;  %v2863_v53 = vpack.c.bf16 %v2735_v51, %v2735_v51  ;;  %2988 = vst.msk [vmem:[%s6519_s10 + $0x64] sm:$0xf] %vm2962_vm5, %v2859_v21  ;;  %v7688_v51 = vld [vmem:[#allocation13_spill] sm:$0xff] }
 0x3f8   : > { %v2490_v1 = vadd.f32 %v7662_v50, %v6403_v13  ;;  %v2616_v45 = vmax.f32 %v2486_v34, %v7672_v5  ;;  %v2740_v19 = vmax.f32 %v2612_v12, 0.0  ;;  %v2864_v48 = vpack.c.bf16 %v2736_v58, %v2736_v58  ;;  %2989 = vst.msk [vmem:[%s6519_s10 + $0x68] sm:$0xf] %vm2962_vm5, %v2860_v26  ;;  %v7689_v26 = vld [vmem:[#allocation15_spill] sm:$0xff] }
 0x3f9   : > { %v2491_v33 = vadd.f32 %v7662_v50, %v6408_v14  ;;  %v2617_v46 = vmax.f32 %v2487_v32, %v7672_v5  ;;  %v2741_v47 = vmax.f32 %v2613_v17, 0.0  ;;  %v2865_v61 = vpack.c.bf16 %v2737_v41, %v2737_v41  ;;  %2990 = vst.msk [vmem:[%s6519_s10 + $0x6c] sm:$0xf] %vm2962_vm5, %v2861_v6 }
 0x3fa   : > { %v2492_v13 = vadd.f32 %v7662_v50, %v6412_v29  ;;  %v2618_v30 = vmax.f32 %v2488_v55, %v7672_v5  ;;  %v2742_v23 = vmax.f32 %v2614_v62, 0.0  ;;  %v2866_v20 = vpack.c.bf16 %v2738_v49, %v2738_v49  ;;  %2991 = vst.msk [vmem:[%s6519_s10 + $0x70] sm:$0xf] %vm2962_vm5, %v2862_v9  ;;  %v7690_v55 = vld [vmem:[#allocation17_spill] sm:$0xff] }
 0x3fb   : > { %v2493_v14 = vadd.f32 %v7662_v50, %v6416_v59  ;;  %v2619_v28 = vmax.f32 %v2489_v8, %v7672_v5  ;;  %v2743_v57 = vmax.f32 %v2615_v18, 0.0  ;;  %v2867_v42 = vpack.c.bf16 %v2739_v16, %v2739_v16  ;;  %2992 = vst.msk [vmem:[%s6519_s10 + $0x74] sm:$0xf] %vm2962_vm5, %v2863_v53  ;;  %v7691_v18 = vld [vmem:[#allocation19_spill] sm:$0xff] }
 0x3fc   : > { %v2494_v29 = vadd.f32 %v7662_v50, %v6421_v37  ;;  %v2620_v27 = vmax.f32 %v2490_v1, %v7672_v5  ;;  %v2744_v7 = vmax.f32 %v2616_v45, 0.0  ;;  %v2868_v63 = vpack.c.bf16 %v2740_v19, %v2740_v19  ;;  %2993 = vst.msk [vmem:[%s6519_s10 + $0x78] sm:$0xf] %vm2962_vm5, %v2864_v48 }
 0x3fd   : > { %v2495_v59 = vadd.f32 %v7662_v50, %v7684_v0  ;;  %v2621_v2 = vmax.f32 %v2491_v33, %v7672_v5  ;;  %v2745_v44 = vmax.f32 %v2617_v46, 0.0  ;;  %v2869_v25 = vpack.c.bf16 %v2741_v47, %v2741_v47  ;;  %2994 = vst.msk [vmem:[%s6519_s10 + $0x7c] sm:$0xf] %vm2962_vm5, %v2865_v61 }
 0x3fe   : > { %v2496_v37 = vadd.f32 %v7662_v50, %v7685_v3  ;;  %v2622_v60 = vmax.f32 %v2492_v13, %v7672_v5  ;;  %v2746_v22 = vmax.f32 %v2618_v30, 0.0  ;;  %v2870_v11 = vpack.c.bf16 %v2742_v23, %v2742_v23  ;;  %2995 = vst.msk [vmem:[%s6519_s10 + $0x80] sm:$0xf] %vm2962_vm5, %v2866_v20  ;;  %v7692_v23 = vld [vmem:[#allocation21_spill] sm:$0xff] }
 0x3ff   : > { %v2497_v36 = vadd.f32 %v7662_v50, %v7686_v4  ;;  %v2623_v35 = vmax.f32 %v2493_v14, %v7672_v5  ;;  %v2747_v38 = vmax.f32 %v2619_v28, 0.0  ;;  %v2871_v43 = vpack.c.bf16 %v2743_v57, %v2743_v57  ;;  %2996 = vst.msk [vmem:[%s6519_s10 + $0x84] sm:$0xf] %vm2962_vm5, %v2867_v42  ;;  %v7693_v57 = vld [vmem:[#allocation23_spill] sm:$0xff] }
 0x400   : > { %v2498_v10 = vadd.f32 %v7662_v50, %v7687_v52  ;;  %v2624_v54 = vmax.f32 %v2494_v29, %v7672_v5  ;;  %v2748_v40 = vmax.f32 %v2620_v27, 0.0  ;;  %v2872_v15 = vpack.c.bf16 %v2744_v7, %v2744_v7  ;;  %2997 = vst.msk [vmem:[%s6519_s10 + $0x88] sm:$0xf] %vm2962_vm5, %v2868_v63  ;;  %v3982_v7 = vld [vmem:[%s7134_s2 + $0x1] ss:$0 sm:$0xff]  ;;  %v7695_v4 = vld [vmem:[#allocation27_spill] sm:$0xff] }
 0x401   : > { %v2499_v21 = vadd.f32 %v7662_v50, %v7688_v51  ;;  %v2625_v34 = vmax.f32 %v2495_v59, %v7672_v5  ;;  %v2749_v12 = vmax.f32 %v2621_v2, 0.0  ;;  %v2873_v58 = vpack.c.bf16 %v2745_v44, %v2745_v44  ;;  %2998 = vst.msk [vmem:[%s6519_s10 + $0x8c] sm:$0xf] %vm2962_vm5, %v2869_v25 }
 0x402   : > { %v2500_v32 = vadd.f32 %v7662_v50, %v7689_v26  ;;  %v2626_v17 = vmax.f32 %v2496_v37, %v7672_v5  ;;  %v2750_v41 = vmax.f32 %v2622_v60, 0.0  ;;  %v2874_v6 = vpack.c.bf16 %v2746_v22, %v2746_v22  ;;  %2999 = vst.msk [vmem:[%s6519_s10 + $0x90] sm:$0xf] %vm2962_vm5, %v2870_v11  ;;  %v7694_v37 = vld [vmem:[#allocation25_spill] sm:$0xff] }
 0x403   : > { %v2501_v62 = vadd.f32 %v7662_v50, %v7690_v55  ;;  %v2627_v49 = vmax.f32 %v2497_v36, %v7672_v5  ;;  %v2751_v9 = vmax.f32 %v2623_v35, 0.0  ;;  %v2875_v8 = vpack.c.bf16 %v2747_v38, %v2747_v38  ;;  %3000 = vst.msk [vmem:[%s6519_s10 + $0x94] sm:$0xf] %vm2962_vm5, %v2871_v43 }
 0x404   : > { %v2502_v16 = vadd.f32 %v7662_v50, %v7691_v18  ;;  %v2628_v53 = vmax.f32 %v2498_v10, %v7672_v5  ;;  %v2752_v1 = vmax.f32 %v2624_v54, 0.0  ;;  %v2876_v45 = vpack.c.bf16 %v2748_v40, %v2748_v40  ;;  %3001 = vst.msk [vmem:[%s6519_s10 + $0x98] sm:$0xf] %vm2962_vm5, %v2872_v15 }
 0x405   : > { %v2503_v19 = vadd.f32 %v7662_v50, %v6461_v56  ;;  %v2629_v48 = vmax.f32 %v2499_v21, %v7672_v5  ;;  %v2753_v33 = vmax.f32 %v2625_v34, 0.0  ;;  %v2877_v46 = vpack.c.bf16 %v2749_v12, %v2749_v12  ;;  %3002 = vst.msk [vmem:[%s6519_s10 + $0x9c] sm:$0xf] %vm2962_vm5, %v2873_v58 }
 0x406   : > { %v2504_v47 = vadd.f32 %v7662_v50, %v6467_v24  ;;  %v2630_v61 = vmax.f32 %v2500_v32, %v7672_v5  ;;  %v2754_v13 = vmax.f32 %v2626_v17, 0.0  ;;  %v2878_v30 = vpack.c.bf16 %v2750_v41, %v2750_v41  ;;  %3003 = vst.msk [vmem:[%s6519_s10 + $0xa0] sm:$0xf] %vm2962_vm5, %v2874_v6 }
 0x407   : > { %v2505_v56 = vadd.f32 %v7662_v50, %v7692_v23  ;;  %v2631_v20 = vmax.f32 %v2501_v62, %v7672_v5  ;;  %v2755_v14 = vmax.f32 %v2627_v49, 0.0  ;;  %v2879_v28 = vpack.c.bf16 %v2751_v9, %v2751_v9  ;;  %3004 = vst.msk [vmem:[%s6519_s10 + $0xa4] sm:$0xf] %vm2962_vm5, %v2875_v8  ;;  %v7696_v8 = vld [vmem:[#allocation50_spill] sm:$0xff] }
 0x408   : > { %v2506_v24 = vadd.f32 %v7662_v50, %v7693_v57  ;;  %v2632_v42 = vmax.f32 %v2502_v16, %v7672_v5  ;;  %v2756_v29 = vmax.f32 %v2628_v53, 0.0  ;;  %v2880_v27 = vpack.c.bf16 %v2752_v1, %v2752_v1  ;;  %3005 = vst.msk [vmem:[%s6519_s10 + $0xa8] sm:$0xf] %vm2962_vm5, %v2876_v45  ;;  %v7698_v1 = vld [vmem:[#allocation52_spill] sm:$0xff] }
 0x409   : > { %v2507_v63 = vadd.f32 %v3982_v7, %v6481_v31  ;;  %v2633_v0 = vmax.f32 %v2503_v19, %v7672_v5  ;;  %v2757_v59 = vmax.f32 %v2629_v48, 0.0  ;;  %v2881_v2 = vpack.c.bf16 %v2753_v33, %v2753_v33  ;;  %3006 = vst.msk [vmem:[%s6519_s10 + $0xac] sm:$0xf] %vm2962_vm5, %v2877_v46  ;;  %v7700_v33 = vld [vmem:[#allocation54_spill] sm:$0xff] }
 0x40a   : > { %v2508_v50 = vadd.f32 %v3982_v7, %v6488_v39  ;;  %v2634_v44 = vmax.f32 %v2504_v47, %v7672_v5  ;;  %v2758_v25 = vmax.f32 %v2630_v61, 0.0  ;;  %v2882_v3 = vpack.c.bf16 %v2754_v13, %v2754_v13  ;;  %3007 = vst.msk [vmem:[%s6519_s10 + $0xb0] sm:$0xf] %vm2962_vm5, %v2878_v30  ;;  %v7702_v13 = vld [vmem:[#allocation56_spill] sm:$0xff] }
 0x40b   : > { %v2509_v60 = vadd.f32 %v3982_v7, %v7694_v37  ;;  %v2635_v31 = vmax.f32 %v2505_v56, %v7672_v5  ;;  %v2759_v22 = vmax.f32 %v2631_v20, 0.0  ;;  %v2883_v11 = vpack.c.bf16 %v2755_v14, %v2755_v14  ;;  %3008 = vst.msk [vmem:[%s6519_s10 + $0xb4] sm:$0xf] %vm2962_vm5, %v2879_v28  ;;  %v7704_v20 = vld [vmem:[#allocation58_spill] sm:$0xff] }
 0x40c   : > { %v2510_v36 = vadd.f32 %v3982_v7, %v7695_v4  ;;  %v2636_v39 = vmax.f32 %v2506_v24, %v7672_v5  ;;  %v2760_v35 = vmax.f32 %v2632_v42, 0.0  ;;  %v2884_v38 = vpack.c.bf16 %v2756_v29, %v2756_v29  ;;  %3009 = vst.msk [vmem:[%s6519_s10 + $0xb8] sm:$0xf] %vm2962_vm5, %v2880_v27  ;;  %v7706_v24 = vld [vmem:[#allocation60_spill] sm:$0xff]  ;;  %v7708_v7 = vld [vmem:[#allocation62_spill] sm:$0xff] }
 0x40d   : > { %v2637_v43 = vmax.f32 %v2507_v63, %v7672_v5  ;;  %v2761_v52 = vmax.f32 %v2633_v0, 0.0  ;;  %v2885_v10 = vpack.c.bf16 %v2757_v59, %v2757_v59  ;;  %3010 = vst.msk [vmem:[%s6519_s10 + $0xbc] sm:$0xf] %vm2962_vm5, %v2881_v2  ;;  %v2638_v54 = vmax.f32 %v2508_v50, %v7672_v5  ;;  %v7710_v2 = vld [vmem:[#allocation64_spill] sm:$0xff] }
 0x40e   : > { %v2762_v40 = vmax.f32 %v2634_v44, 0.0  ;;  %v2886_v15 = vpack.c.bf16 %v2758_v25, %v2758_v25  ;;  %3011 = vst.msk [vmem:[%s6519_s10 + $0xc0] sm:$0xf] %vm2962_vm5, %v2882_v3  ;;  %v2639_v51 = vmax.f32 %v2509_v60, %v7672_v5  ;;  %v2763_v21 = vmax.f32 %v2635_v31, 0.0  ;;  %v7712_v3 = vld [vmem:[#allocation66_spill] sm:$0xff] }
 0x40f   : > { %v2887_v34 = vpack.c.bf16 %v2759_v22, %v2759_v22  ;;  %3012 = vst.msk [vmem:[%s6519_s10 + $0xc4] sm:$0xf] %vm2962_vm5, %v2883_v11  ;;  %v2640_v12 = vmax.f32 %v2510_v36, %v7672_v5  ;;  %v2764_v58 = vmax.f32 %v2636_v39, 0.0  ;;  %v2888_v26 = vpack.c.bf16 %v2760_v35, %v2760_v35  ;;  %v7714_v22 = vld [vmem:[#allocation68_spill] sm:$0xff]  ;;  %v7716_v39 = vld [vmem:[#allocation70_spill] sm:$0xff] }
 0x410   : > { %3013 = vst.msk [vmem:[%s6519_s10 + $0xc8] sm:$0xf] %vm2962_vm5, %v2884_v38  ;;  %v2765_v32 = vmax.f32 %v2637_v43, 0.0  ;;  %v2889_v17 = vpack.c.bf16 %v2761_v52, %v2761_v52  ;;  %v2766_v41 = vmax.f32 %v2638_v54, 0.0  ;;  %v2890_v6 = vpack.c.bf16 %v2762_v40, %v2762_v40  ;;  %v7718_v52 = vld [vmem:[#allocation72_spill] sm:$0xff] }
 0x411   : > { %3014 = vst.msk [vmem:[%s6519_s10 + $0xcc] sm:$0xf] %vm2962_vm5, %v2885_v10  ;;  %v2767_v55 = vmax.f32 %v2639_v51, 0.0  ;;  %v2891_v62 = vpack.c.bf16 %v2763_v21, %v2763_v21  ;;  %v2768_v49 = vmax.f32 %v2640_v12, 0.0  ;;  %v2892_v9 = vpack.c.bf16 %v2764_v58, %v2764_v58  ;;  %v7722_v12 = vld [vmem:[#allocation80_spill] sm:$0xff] }
 0x412   : > { %3015 = vst.msk [vmem:[%s6519_s10 + $0xd0] sm:$0xf] %vm2962_vm5, %v2886_v15  ;;  %v7697_v18 = vmax.f32 %v7696_v8, %v7672_v5  ;;  %v2893_v53 = vpack.c.bf16 %v2765_v32, %v2765_v32  ;;  %v7699_v45 = vmax.f32 %v7698_v1, %v7672_v5  ;;  %v2894_v48 = vpack.c.bf16 %v2766_v41, %v2766_v41  ;;  %v7720_v15 = vld [vmem:[#allocation76_spill] sm:$0xff] }
 0x413   : > { %3016 = vst.msk [vmem:[%s6519_s10 + $0xd4] sm:$0xf] %vm2962_vm5, %v2887_v34  ;;  %v7701_v46 = vmax.f32 %v7700_v33, %v7672_v5  ;;  %v2895_v61 = vpack.c.bf16 %v2767_v55, %v2767_v55  ;;  %v7703_v30 = vmax.f32 %v7702_v13, %v7672_v5  ;;  %v2896_v56 = vpack.c.bf16 %v2768_v49, %v2768_v49 }
 0x414   : > { %3017 = vst.msk [vmem:[%s6519_s10 + $0xd8] sm:$0xf] %vm2962_vm5, %v2888_v26  ;;  %v2769_v16 = vmax.f32 %v7697_v18, 0.0  ;;  %v2770_v19 = vmax.f32 %v7699_v45, 0.0  ;;  %v7705_v14 = vmax.f32 %v7704_v20, %v7672_v5  ;;  %v7707_v42 = vmax.f32 %v7706_v24, %v7672_v5  ;;  %v7728_v18 = vld [vmem:[#allocation89_spill] sm:$0xff]  ;;  %v7730_v45 = vld [vmem:[#allocation92_spill] sm:$0xff] }
 0x415   : > { %3018 = vst.msk [vmem:[%s6519_s10 + $0xdc] sm:$0xf] %vm2962_vm5, %v2889_v17  ;;  %v2771_v47 = vmax.f32 %v7701_v46, 0.0  ;;  %v2772_v23 = vmax.f32 %v7703_v30, 0.0  ;;  %v7709_v63 = vmax.f32 %v7708_v7, %v7672_v5  ;;  %v7711_v50 = vmax.f32 %v7710_v2, %v7672_v5  ;;  %v7724_v17 = vld [vmem:[#allocation82_spill] sm:$0xff]  ;;  %v7732_v46 = vld [vmem:[#allocation93_spill] sm:$0xff] }
 0x416   : > { %3019 = vst.msk [vmem:[%s6519_s10 + $0xe0] sm:$0xf] %vm2962_vm5, %v2890_v6  ;;  %v2773_v28 = vmax.f32 %v7705_v14, 0.0  ;;  %v2897_v57 = vpack.c.bf16 %v2769_v16, %v2769_v16  ;;  %v2774_v29 = vmax.f32 %v7707_v42, 0.0  ;;  %v2898_v27 = vpack.c.bf16 %v2770_v19, %v2770_v19  ;;  %v7734_v30 = vld [vmem:[#allocation94_spill] sm:$0xff] }
 0x417   : > { %3020 = vst.msk [vmem:[%s6519_s10 + $0xe4] sm:$0xf] %vm2962_vm5, %v2891_v62  ;;  %v2775_v0 = vmax.f32 %v7709_v63, 0.0  ;;  %v2899_v59 = vpack.c.bf16 %v2771_v47, %v2771_v47  ;;  %v2776_v44 = vmax.f32 %v7711_v50, 0.0  ;;  %v2900_v25 = vpack.c.bf16 %v2772_v23, %v2772_v23  ;;  %v7726_v62 = vld [vmem:[#allocation85_spill] sm:$0xff]  ;;  %v7736_v14 = vld [vmem:[#allocation14_spill] sm:$0xff] }
 0x418   : > { %3021 = vst.msk [vmem:[%s6519_s10 + $0xe8] sm:$0xf] %vm2962_vm5, %v2892_v9  ;;  %v7713_v37 = vmax.f32 %v7712_v3, %v7672_v5  ;;  %v2901_v31 = vpack.c.bf16 %v2773_v28, %v2773_v28  ;;  %v7715_v11 = vmax.f32 %v7714_v22, %v7672_v5  ;;  %v2902_v36 = vpack.c.bf16 %v2774_v29, %v2774_v29  ;;  %v7738_v42 = vld [vmem:[#allocation18_spill] sm:$0xff]  ;;  %v7740_v63 = vld [vmem:[#allocation20_spill] sm:$0xff] }
 0x419   : > { %3022 = vst.msk [vmem:[%s6519_s10 + $0xec] sm:$0xf] %vm2962_vm5, %v2893_v53  ;;  %v7717_v35 = vmax.f32 %v7716_v39, %v7672_v5  ;;  %v2903_v43 = vpack.c.bf16 %v2775_v0, %v2775_v0  ;;  %v7719_v10 = vmax.f32 %v7718_v52, %v7672_v5  ;;  %v2904_v40 = vpack.c.bf16 %v2776_v44, %v2776_v44  ;;  %v7742_v50 = vld [vmem:[#allocation22_spill] sm:$0xff] }
 0x41a   : > { %3023 = vst.msk [vmem:[%s6519_s10 + $0xf0] sm:$0xf] %vm2962_vm5, %v2894_v48  ;;  %v2777_v60 = vmax.f32 %v7713_v37, 0.0  ;;  %v2778_v4 = vmax.f32 %v7715_v11, 0.0  ;;  %v7721_v51 = vmax.f32 %v7720_v15, %v7672_v5  ;;  %v7723_v58 = vmax.f32 %v7722_v12, %v7672_v5  ;;  %v7744_v37 = vld [vmem:[#allocation24_spill] sm:$0xff]  ;;  %v7746_v11 = vld [vmem:[#allocation26_spill] sm:$0xff] }
 0x41b   : > { %3024 = vst.msk [vmem:[%s6519_s10 + $0xf4] sm:$0xf] %vm2962_vm5, %v2895_v61  ;;  %v2779_v38 = vmax.f32 %v7717_v35, 0.0  ;;  %v2780_v54 = vmax.f32 %v7719_v10, 0.0  ;;  %v7725_v41 = vmax.f32 %v7724_v17, %v7672_v5  ;;  %v7727_v49 = vmax.f32 %v7726_v62, %v7672_v5  ;;  %v7748_v35 = vld [vmem:[#allocation28_spill] sm:$0xff] }
 0x41c   : > { %3025 = vst.msk [vmem:[%s6519_s10 + $0xf8] sm:$0xf] %vm2962_vm5, %v2896_v56  ;;  %v2781_v21 = vmax.f32 %v7721_v51, 0.0  ;;  %v2905_v34 = vpack.c.bf16 %v2777_v60, %v2777_v60  ;;  %v2782_v26 = vmax.f32 %v7723_v58, 0.0  ;;  %v2906_v32 = vpack.c.bf16 %v2778_v4, %v2778_v4  ;;  %v7750_v10 = vld [vmem:[#allocation32_spill] sm:$0xff]  ;;  %v7752_v51 = vld [vmem:[#allocation105_spill] sm:$0xff] }
 0x41d   : > { %3026 = vst.msk [vmem:[%s6519_s10 + $0xfc] sm:$0xf] %vm2962_vm5, %v2897_v57  ;;  %v2783_v6 = vmax.f32 %v7725_v41, 0.0  ;;  %v2907_v55 = vpack.c.bf16 %v2779_v38, %v2779_v38  ;;  %v2784_v9 = vmax.f32 %v7727_v49, 0.0  ;;  %v2908_v8 = vpack.c.bf16 %v2780_v54, %v2780_v54  ;;  %v7754_v58 = vld [vmem:[#allocation34_spill] sm:$0xff]  ;;  %v7756_v41 = vld [vmem:[#allocation36_spill] sm:$0xff] }
 0x41e   : > { %3027 = vst.msk [vmem:[%s6519_s10 + $0x100] sm:$0xf] %vm2962_vm5, %v2898_v27  ;;  %v7729_v16 = vmax.f32 %v7728_v18, %v7672_v5  ;;  %v2909_v1 = vpack.c.bf16 %v2781_v21, %v2781_v21  ;;  %v7731_v19 = vmax.f32 %v7730_v45, %v7672_v5  ;;  %v2910_v33 = vpack.c.bf16 %v2782_v26, %v2782_v26  ;;  %v7758_v49 = vld [vmem:[#allocation38_spill] sm:$0xff] }
 0x41f   : > { %3028 = vst.msk [vmem:[%s6519_s10 + $0x104] sm:$0xf] %vm2962_vm5, %v2899_v59  ;;  %v7733_v47 = vmax.f32 %v7732_v46, %v7672_v5  ;;  %v2911_v13 = vpack.c.bf16 %v2783_v6, %v2783_v6  ;;  %v7735_v23 = vmax.f32 %v7734_v30, %v7672_v5  ;;  %v2912_v20 = vpack.c.bf16 %v2784_v9, %v2784_v9 }
 0x420   : > { %3029 = vst.msk [vmem:[%s6519_s10 + $0x108] sm:$0xf] %vm2962_vm5, %v2900_v25  ;;  %v2785_v53 = vmax.f32 %v7729_v16, 0.0  ;;  %v2786_v48 = vmax.f32 %v7731_v19, 0.0  ;;  %v7737_v28 = vmax.f32 %v7736_v14, %v7672_v5  ;;  %v7739_v29 = vmax.f32 %v7738_v42, %v7672_v5  ;;  %v7760_v16 = vld [vmem:[#allocation106_spill] sm:$0xff]  ;;  %v7762_v19 = vld [vmem:[#allocation40_spill] sm:$0xff] }
 0x421   : > { %3030 = vst.msk [vmem:[%s6519_s10 + $0x10c] sm:$0xf] %vm2962_vm5, %v2901_v31  ;;  %v2787_v61 = vmax.f32 %v7733_v47, 0.0  ;;  %v2788_v56 = vmax.f32 %v7735_v23, 0.0  ;;  %v7741_v0 = vmax.f32 %v7740_v63, %v7672_v5  ;;  %v7743_v44 = vmax.f32 %v7742_v50, %v7672_v5  ;;  %v7764_v47 = vld [vmem:[#allocation107_spill] sm:$0xff]  ;;  %v7766_v23 = vld [vmem:[#allocation42_spill] sm:$0xff] }
 0x422   : > { %3031 = vst.msk [vmem:[%s6519_s10 + $0x110] sm:$0xf] %vm2962_vm5, %v2902_v36  ;;  %v2789_v57 = vmax.f32 %v7737_v28, 0.0  ;;  %v2913_v24 = vpack.c.bf16 %v2785_v53, %v2785_v53  ;;  %v2790_v27 = vmax.f32 %v7739_v29, 0.0  ;;  %v2914_v7 = vpack.c.bf16 %v2786_v48, %v2786_v48  ;;  %v7768_v28 = vld [vmem:[#allocation108_spill] sm:$0xff]  ;;  %v7770_v29 = vld [vmem:[#allocation109_spill] sm:$0xff] }
 0x423   : > { %3032 = vst.msk [vmem:[%s6519_s10 + $0x114] sm:$0xf] %vm2962_vm5, %v2903_v43  ;;  %v2791_v59 = vmax.f32 %v7741_v0, 0.0  ;;  %v2915_v2 = vpack.c.bf16 %v2787_v61, %v2787_v61  ;;  %v2792_v25 = vmax.f32 %v7743_v44, 0.0  ;;  %v2916_v3 = vpack.c.bf16 %v2788_v56, %v2788_v56  ;;  %v7772_v0 = vld [vmem:[#allocation110_spill] sm:$0xff]  ;;  %v7774_v44 = vld [vmem:[#allocation111_spill] sm:$0xff] }
 0x424   : > { %3033 = vst.msk [vmem:[%s6519_s10 + $0x118] sm:$0xf] %vm2962_vm5, %v2904_v40  ;;  %v7745_v60 = vmax.f32 %v7744_v37, %v7672_v5  ;;  %v2917_v22 = vpack.c.bf16 %v2789_v57, %v2789_v57  ;;  %v7747_v4 = vmax.f32 %v7746_v11, %v7672_v5  ;;  %v2918_v39 = vpack.c.bf16 %v2790_v27, %v2790_v27 }
 0x425   : > { %3034 = vst.msk [vmem:[%s6519_s10 + $0x11c] sm:$0xf] %vm2962_vm5, %v2905_v34  ;;  %v7749_v38 = vmax.f32 %v7748_v35, %v7672_v5  ;;  %v2919_v52 = vpack.c.bf16 %v2791_v59, %v2791_v59  ;;  %v7751_v54 = vmax.f32 %v7750_v10, %v7672_v5  ;;  %v2920_v15 = vpack.c.bf16 %v2792_v25, %v2792_v25 }
 0x426   : > { %3035 = vst.msk [vmem:[%s6519_s10 + $0x120] sm:$0xf] %vm2962_vm5, %v2906_v32  ;;  %v2793_v31 = vmax.f32 %v7745_v60, 0.0  ;;  %v2794_v36 = vmax.f32 %v7747_v4, 0.0  ;;  %v7753_v21 = vmax.f32 %v7752_v51, %v7672_v5  ;;  %v7755_v26 = vmax.f32 %v7754_v58, %v7672_v5  ;;  %v7776_v60 = vld [vmem:[#allocation112_spill] sm:$0xff]  ;;  %v7778_v4 = vld [vmem:[#allocation113_spill] sm:$0xff] }
 0x427   : > { %3036 = vst.msk [vmem:[%s6519_s10 + $0x124] sm:$0xf] %vm2962_vm5, %v2907_v55  ;;  %v2795_v43 = vmax.f32 %v7749_v38, 0.0  ;;  %v2796_v40 = vmax.f32 %v7751_v54, 0.0  ;;  %v7757_v6 = vmax.f32 %v7756_v41, %v7672_v5  ;;  %v7759_v9 = vmax.f32 %v7758_v49, %v7672_v5  ;;  %v7780_v38 = vld [vmem:[#allocation114_spill] sm:$0xff]  ;;  %v7782_v54 = vld [vmem:[#allocation115_spill] sm:$0xff] }
 0x428   : > { %3037 = vst.msk [vmem:[%s6519_s10 + $0x128] sm:$0xf] %vm2962_vm5, %v2908_v8  ;;  %v2797_v34 = vmax.f32 %v7753_v21, 0.0  ;;  %v2921_v12 = vpack.c.bf16 %v2793_v31, %v2793_v31  ;;  %v2798_v32 = vmax.f32 %v7755_v26, 0.0  ;;  %v2922_v17 = vpack.c.bf16 %v2794_v36, %v2794_v36  ;;  %v7784_v21 = vld [vmem:[#allocation116_spill] sm:$0xff]  ;;  %v7786_v26 = vld [vmem:[#allocation117_spill] sm:$0xff] }
 0x429   : > { %3038 = vst.msk [vmem:[%s6519_s10 + $0x12c] sm:$0xf] %vm2962_vm5, %v2909_v1  ;;  %v2799_v55 = vmax.f32 %v7757_v6, 0.0  ;;  %v2923_v62 = vpack.c.bf16 %v2795_v43, %v2795_v43  ;;  %v2800_v8 = vmax.f32 %v7759_v9, 0.0  ;;  %v2924_v18 = vpack.c.bf16 %v2796_v40, %v2796_v40  ;;  %v7788_v6 = vld [vmem:[#allocation44_spill] sm:$0xff]  ;;  %v7790_v9 = vld [vmem:[#allocation118_spill] sm:$0xff] }
 0x42a   : > { %3039 = vst.msk [vmem:[%s6519_s10 + $0x130] sm:$0xf] %vm2962_vm5, %v2910_v33  ;;  %v7761_v53 = vmax.f32 %v7760_v16, %v7672_v5  ;;  %v2925_v45 = vpack.c.bf16 %v2797_v34, %v2797_v34  ;;  %v7763_v48 = vmax.f32 %v7762_v19, %v7672_v5  ;;  %v2926_v46 = vpack.c.bf16 %v2798_v32, %v2798_v32 }
 0x42b   : > { %3040 = vst.msk [vmem:[%s6519_s10 + $0x134] sm:$0xf] %vm2962_vm5, %v2911_v13  ;;  %v7765_v61 = vmax.f32 %v7764_v47, %v7672_v5  ;;  %v2927_v30 = vpack.c.bf16 %v2799_v55, %v2799_v55  ;;  %v7767_v56 = vmax.f32 %v7766_v23, %v7672_v5  ;;  %v2928_v14 = vpack.c.bf16 %v2800_v8, %v2800_v8 }
 0x42c   : > { %3041 = vst.msk [vmem:[%s6519_s10 + $0x138] sm:$0xf] %vm2962_vm5, %v2912_v20  ;;  %v2801_v1 = vmax.f32 %v7761_v53, 0.0  ;;  %v2802_v33 = vmax.f32 %v7763_v48, 0.0  ;;  %v7769_v57 = vmax.f32 %v7768_v28, %v7672_v5  ;;  %v7771_v27 = vmax.f32 %v7770_v29, %v7672_v5  ;;  %v7792_v53 = vld [vmem:[#allocation119_spill] sm:$0xff]  ;;  %v7794_v48 = vld [vmem:[#allocation120_spill] sm:$0xff] }
 0x42d   : > { %3042 = vst.msk [vmem:[%s6519_s10 + $0x13c] sm:$0xf] %vm2962_vm5, %v2913_v24  ;;  %v2803_v13 = vmax.f32 %v7765_v61, 0.0  ;;  %v2804_v20 = vmax.f32 %v7767_v56, 0.0  ;;  %v7773_v59 = vmax.f32 %v7772_v0, %v7672_v5  ;;  %v7775_v25 = vmax.f32 %v7774_v44, %v7672_v5  ;;  %v7796_v61 = vld [vmem:[#allocation121_spill] sm:$0xff]  ;;  %v7798_v56 = vld [vmem:[#allocation122_spill] sm:$0xff] }
 0x42e   : > { %3043 = vst.msk [vmem:[%s6519_s10 + $0x140] sm:$0xf] %vm2962_vm5, %v2914_v7  ;;  %v2805_v24 = vmax.f32 %v7769_v57, 0.0  ;;  %v2929_v42 = vpack.c.bf16 %v2801_v1, %v2801_v1  ;;  %v2806_v7 = vmax.f32 %v7771_v27, 0.0  ;;  %v2930_v63 = vpack.c.bf16 %v2802_v33, %v2802_v33  ;;  %v7800_v57 = vld [vmem:[#allocation46_spill] sm:$0xff]  ;;  %v7802_v27 = vld [vmem:[#allocation123_spill] sm:$0xff] }
 0x42f   : > { %3044 = vst.msk [vmem:[%s6519_s10 + $0x144] sm:$0xf] %vm2962_vm5, %v2915_v2  ;;  %v2807_v2 = vmax.f32 %v7773_v59, 0.0  ;;  %v2931_v50 = vpack.c.bf16 %v2803_v13, %v2803_v13  ;;  %v2932_v37 = vpack.c.bf16 %v2804_v20, %v2804_v20  ;;  %v7777_v31 = vmax.f32 %v7776_v60, %v7672_v5  ;;  %v7804_v59 = vld [vmem:[#allocation124_spill] sm:$0xff] }
 0x430   : > { %3045 = vst.msk [vmem:[%s6519_s10 + $0x148] sm:$0xf] %vm2962_vm5, %v2916_v3  ;;  %v2808_v3 = vmax.f32 %v7775_v25, 0.0  ;;  %v2933_v11 = vpack.c.bf16 %v2805_v24, %v2805_v24  ;;  %v7779_v36 = vmax.f32 %v7778_v4, %v7672_v5  ;;  %v2934_v35 = vpack.c.bf16 %v2806_v7, %v2806_v7  ;;  %v7806_v25 = vld [vmem:[#allocation125_spill] sm:$0xff] }
 0x431   : > { %3046 = vst.msk [vmem:[%s6519_s10 + $0x14c] sm:$0xf] %vm2962_vm5, %v2917_v22  ;;  %v2809_v22 = vmax.f32 %v7777_v31, 0.0  ;;  %v7781_v43 = vmax.f32 %v7780_v38, %v7672_v5  ;;  %v2935_v10 = vpack.c.bf16 %v2807_v2, %v2807_v2  ;;  %v7783_v40 = vmax.f32 %v7782_v54, %v7672_v5  ;;  %v7808_v31 = vld [vmem:[#allocation126_spill] sm:$0xff] }
 0x432   : > { %3047 = vst.msk [vmem:[%s6519_s10 + $0x150] sm:$0xf] %vm2962_vm5, %v2918_v39  ;;  %v2810_v39 = vmax.f32 %v7779_v36, 0.0  ;;  %v2936_v51 = vpack.c.bf16 %v2808_v3, %v2808_v3  ;;  %v7785_v34 = vmax.f32 %v7784_v21, %v7672_v5  ;;  %v7787_v32 = vmax.f32 %v7786_v26, %v7672_v5  ;;  %v7810_v36 = vld [vmem:[#allocation127_spill] sm:$0xff] }
 0x433   : > { %3048 = vst.msk [vmem:[%s6519_s10 + $0x154] sm:$0xf] %vm2962_vm5, %v2919_v52  ;;  %v2811_v52 = vmax.f32 %v7781_v43, 0.0  ;;  %v2937_v58 = vpack.c.bf16 %v2809_v22, %v2809_v22  ;;  %v7789_v55 = vmax.f32 %v7788_v6, %v7672_v5  ;;  %v7791_v8 = vmax.f32 %v7790_v9, %v7672_v5  ;;  %v7812_v43 = vld [vmem:[#allocation128_spill] sm:$0xff] }
 0x434   : > { %3049 = vst.msk [vmem:[%s6519_s10 + $0x158] sm:$0xf] %vm2962_vm5, %v2920_v15  ;;  %v2812_v15 = vmax.f32 %v7783_v40, 0.0  ;;  %v2938_v41 = vpack.c.bf16 %v2810_v39, %v2810_v39  ;;  %v7793_v1 = vmax.f32 %v7792_v53, %v7672_v5  ;;  %v7795_v33 = vmax.f32 %v7794_v48, %v7672_v5  ;;  %v7814_v40 = vld [vmem:[#allocation48_spill] sm:$0xff] }
 0x435   : > { %3050 = vst.msk [vmem:[%s6519_s10 + $0x15c] sm:$0xf] %vm2962_vm5, %v2921_v12  ;;  %v2813_v12 = vmax.f32 %v7785_v34, 0.0  ;;  %v2939_v49 = vpack.c.bf16 %v2811_v52, %v2811_v52  ;;  %v7797_v13 = vmax.f32 %v7796_v61, %v7672_v5  ;;  %v7799_v20 = vmax.f32 %v7798_v56, %v7672_v5  ;;  %v7816_v34 = vld [vmem:[#allocation74_spill] sm:$0xff] }
 0x436   : > { %3051 = vst.msk [vmem:[%s6519_s10 + $0x160] sm:$0xf] %vm2962_vm5, %v2922_v17  ;;  %v2814_v17 = vmax.f32 %v7787_v32, 0.0  ;;  %v2940_v16 = vpack.c.bf16 %v2812_v15, %v2812_v15  ;;  %v7801_v24 = vmax.f32 %v7800_v57, %v7672_v5  ;;  %v7803_v7 = vmax.f32 %v7802_v27, %v7672_v5  ;;  %v7818_v32 = vld [vmem:[#allocation129_spill] sm:$0xff] }
 0x437   : > { %3052 = vst.msk [vmem:[%s6519_s10 + $0x164] sm:$0xf] %vm2962_vm5, %v2923_v62  ;;  %v2815_v62 = vmax.f32 %v7789_v55, 0.0  ;;  %v2941_v19 = vpack.c.bf16 %v2813_v12, %v2813_v12  ;;  %v7805_v2 = vmax.f32 %v7804_v59, %v7672_v5  ;;  %v7807_v3 = vmax.f32 %v7806_v25, %v7672_v5  ;;  %v7820_v55 = vld [vmem:[#allocation130_spill] sm:$0xff] }
 0x438   : > { %3053 = vst.msk [vmem:[%s6519_s10 + $0x168] sm:$0xf] %vm2962_vm5, %v2924_v18  ;;  %v2816_v18 = vmax.f32 %v7791_v8, 0.0  ;;  %v2942_v47 = vpack.c.bf16 %v2814_v17, %v2814_v17  ;;  %v7809_v22 = vmax.f32 %v7808_v31, %v7672_v5  ;;  %v7811_v39 = vmax.f32 %v7810_v36, %v7672_v5  ;;  %v7822_v8 = vld [vmem:[#allocation131_spill] sm:$0xff] }
 0x439   : > { %3054 = vst.msk [vmem:[%s6519_s10 + $0x16c] sm:$0xf] %vm2962_vm5, %v2925_v45  ;;  %v2817_v45 = vmax.f32 %v7793_v1, 0.0  ;;  %v2943_v23 = vpack.c.bf16 %v2815_v62, %v2815_v62  ;;  %v7813_v52 = vmax.f32 %v7812_v43, %v7672_v5  ;;  %v7815_v15 = vmax.f32 %v7814_v40, %v7672_v5  ;;  %v7824_v1 = vld [vmem:[#allocation132_spill] sm:$0xff] }
 0x43a   : > { %3055 = vst.msk [vmem:[%s6519_s10 + $0x170] sm:$0xf] %vm2962_vm5, %v2926_v46  ;;  %v2818_v46 = vmax.f32 %v7795_v33, 0.0  ;;  %v2944_v28 = vpack.c.bf16 %v2816_v18, %v2816_v18  ;;  %v7817_v12 = vmax.f32 %v7816_v34, %v7672_v5  ;;  %v7819_v17 = vmax.f32 %v7818_v32, %v7672_v5 }
 0x43b   : > { %3056 = vst.msk [vmem:[%s6519_s10 + $0x174] sm:$0xf] %vm2962_vm5, %v2927_v30  ;;  %v2819_v30 = vmax.f32 %v7797_v13, 0.0  ;;  %v2945_v29 = vpack.c.bf16 %v2817_v45, %v2817_v45  ;;  %v7821_v62 = vmax.f32 %v7820_v55, %v7672_v5  ;;  %v7823_v18 = vmax.f32 %v7822_v8, %v7672_v5 }
 0x43c   : > { %3057 = vst.msk [vmem:[%s6519_s10 + $0x178] sm:$0xf] %vm2962_vm5, %v2928_v14  ;;  %v2820_v14 = vmax.f32 %v7799_v20, 0.0  ;;  %v2946_v0 = vpack.c.bf16 %v2818_v46, %v2818_v46  ;;  %v7825_v45 = vmax.f32 %v7824_v1, %v7672_v5 }
 0x43d   : > { %3058 = vst.msk [vmem:[%s6519_s10 + $0x17c] sm:$0xf] %vm2962_vm5, %v2929_v42  ;;  %v2821_v42 = vmax.f32 %v7801_v24, 0.0  ;;  %v2947_v44 = vpack.c.bf16 %v2819_v30, %v2819_v30 }
 0x43e   : > { %3059 = vst.msk [vmem:[%s6519_s10 + $0x180] sm:$0xf] %vm2962_vm5, %v2930_v63  ;;  %v2822_v63 = vmax.f32 %v7803_v7, 0.0  ;;  %v2948_v60 = vpack.c.bf16 %v2820_v14, %v2820_v14 }
 0x43f   : > { %3060 = vst.msk [vmem:[%s6519_s10 + $0x184] sm:$0xf] %vm2962_vm5, %v2931_v50  ;;  %v2823_v50 = vmax.f32 %v7805_v2, 0.0  ;;  %v2949_v4 = vpack.c.bf16 %v2821_v42, %v2821_v42 }
 0x440   : > { %3061 = vst.msk [vmem:[%s6519_s10 + $0x188] sm:$0xf] %vm2962_vm5, %v2932_v37  ;;  %v2824_v37 = vmax.f32 %v7807_v3, 0.0  ;;  %v2950_v38 = vpack.c.bf16 %v2822_v63, %v2822_v63 }
 0x441   : > { %3062 = vst.msk [vmem:[%s6519_s10 + $0x18c] sm:$0xf] %vm2962_vm5, %v2933_v11  ;;  %v2825_v11 = vmax.f32 %v7809_v22, 0.0  ;;  %v2951_v54 = vpack.c.bf16 %v2823_v50, %v2823_v50 }
 0x442   : > { %3063 = vst.msk [vmem:[%s6519_s10 + $0x190] sm:$0xf] %vm2962_vm5, %v2934_v35  ;;  %v2826_v35 = vmax.f32 %v7811_v39, 0.0  ;;  %v2952_v21 = vpack.c.bf16 %v2824_v37, %v2824_v37 }
 0x443   : > { %3064 = vst.msk [vmem:[%s6519_s10 + $0x194] sm:$0xf] %vm2962_vm5, %v2935_v10  ;;  %v2827_v10 = vmax.f32 %v7813_v52, 0.0  ;;  %v2953_v26 = vpack.c.bf16 %v2825_v11, %v2825_v11 }
 0x444   : > { %3065 = vst.msk [vmem:[%s6519_s10 + $0x198] sm:$0xf] %vm2962_vm5, %v2936_v51  ;;  %v2828_v51 = vmax.f32 %v7815_v15, 0.0  ;;  %v2954_v6 = vpack.c.bf16 %v2826_v35, %v2826_v35 }
 0x445   : > { %3066 = vst.msk [vmem:[%s6519_s10 + $0x19c] sm:$0xf] %vm2962_vm5, %v2937_v58  ;;  %v2829_v58 = vmax.f32 %v7817_v12, 0.0  ;;  %v2955_v9 = vpack.c.bf16 %v2827_v10, %v2827_v10 }
 0x446   : > { %3067 = vst.msk [vmem:[%s6519_s10 + $0x1a0] sm:$0xf] %vm2962_vm5, %v2938_v41  ;;  %v2830_v41 = vmax.f32 %v7819_v17, 0.0  ;;  %v2956_v53 = vpack.c.bf16 %v2828_v51, %v2828_v51 }
 0x447   : > { %3068 = vst.msk [vmem:[%s6519_s10 + $0x1a4] sm:$0xf] %vm2962_vm5, %v2939_v49  ;;  %v2831_v49 = vmax.f32 %v7821_v62, 0.0  ;;  %v2957_v48 = vpack.c.bf16 %v2829_v58, %v2829_v58 }
 0x448   : > { %3069 = vst.msk [vmem:[%s6519_s10 + $0x1a8] sm:$0xf] %vm2962_vm5, %v2940_v16  ;;  %v2832_v16 = vmax.f32 %v7823_v18, 0.0  ;;  %v2958_v33 = vpack.c.bf16 %v2830_v41, %v2830_v41 }
 0x449   : > { %3070 = vst.msk [vmem:[%s6519_s10 + $0x1ac] sm:$0xf] %vm2962_vm5, %v2941_v19  ;;  %v2833_v19 = vmax.f32 %v7825_v45, 0.0  ;;  %v2959_v46 = vpack.c.bf16 %v2831_v49, %v2831_v49 }
 0x44a   : > { %3071 = vst.msk [vmem:[%s6519_s10 + $0x1b0] sm:$0xf] %vm2962_vm5, %v2942_v47  ;;  %v2960_v47 = vpack.c.bf16 %v2832_v16, %v2832_v16 }
 0x44b   : > { %3072 = vst.msk [vmem:[%s6519_s10 + $0x1b4] sm:$0xf] %vm2962_vm5, %v2943_v23  ;;  %v2961_v61 = vpack.c.bf16 %v2833_v19, %v2833_v19 }
 0x44c   : > { %3073 = vst.msk [vmem:[%s6519_s10 + $0x1b8] sm:$0xf] %vm2962_vm5, %v2944_v28 }
 0x44d   : > { %3074 = vst.msk [vmem:[%s6519_s10 + $0x1bc] sm:$0xf] %vm2962_vm5, %v2945_v29 }
 0x44e   : > { %3075 = vst.msk [vmem:[%s6519_s10 + $0x1c0] sm:$0xf] %vm2962_vm5, %v2946_v0 }
 0x44f   : > { %3076 = vst.msk [vmem:[%s6519_s10 + $0x1c4] sm:$0xf] %vm2962_vm5, %v2947_v44 }
 0x450   : > { %3077 = vst.msk [vmem:[%s6519_s10 + $0x1c8] sm:$0xf] %vm2962_vm5, %v2948_v60 }
 0x451   : > { %3078 = vst.msk [vmem:[%s6519_s10 + $0x1cc] sm:$0xf] %vm2962_vm5, %v2949_v4 }
 0x452   : > { %3079 = vst.msk [vmem:[%s6519_s10 + $0x1d0] sm:$0xf] %vm2962_vm5, %v2950_v38 }
 0x453   : > { %3080 = vst.msk [vmem:[%s6519_s10 + $0x1d4] sm:$0xf] %vm2962_vm5, %v2951_v54 }
 0x454   : > { %3081 = vst.msk [vmem:[%s6519_s10 + $0x1d8] sm:$0xf] %vm2962_vm5, %v2952_v21 }
 0x455   : > { %3082 = vst.msk [vmem:[%s6519_s10 + $0x1dc] sm:$0xf] %vm2962_vm5, %v2953_v26 }
 0x456   : > { %3083 = vst.msk [vmem:[%s6519_s10 + $0x1e0] sm:$0xf] %vm2962_vm5, %v2954_v6 }
 0x457   : > { %3084 = vst.msk [vmem:[%s6519_s10 + $0x1e4] sm:$0xf] %vm2962_vm5, %v2955_v9 }
 0x458   : > { %3085 = vst.msk [vmem:[%s6519_s10 + $0x1e8] sm:$0xf] %vm2962_vm5, %v2956_v53 }
 0x459   : > { %3086 = vst.msk [vmem:[%s6519_s10 + $0x1ec] sm:$0xf] %vm2962_vm5, %v2957_v48 }
 0x45a   : > { %3087 = vst.msk [vmem:[%s6519_s10 + $0x1f0] sm:$0xf] %vm2962_vm5, %v2958_v33 }
 0x45b   : > { %3088 = vst.msk [vmem:[%s6519_s10 + $0x1f4] sm:$0xf] %vm2962_vm5, %v2959_v46 }
 0x45c   : > { %3089 = vst.msk [vmem:[%s6519_s10 + $0x1f8] sm:$0xf] %vm2962_vm5, %v2960_v47 }
 0x45d   : > { %3090 = vst.msk [vmem:[%s6519_s10 + $0x1fc] sm:$0xf] %vm2962_vm5, %v2961_v61 }
 0x45e PF: > { %s13_s14 = sadd.s32 1, %s4005_s14   ;;  %s7826_s12 = smov %s4001_s13 }
 0x45f   : > { %p10_p5 = scmp.ge.s32.totalorder %s13_s14, 4   ;;  %s7827_s13 = smov %s7829_s15 }
 0x461   :  { %12 = sbr.rel (!%p10_p5) target bundleno = 2 (0x2), region = 68 }

</bundles_post_ra>
